<compile_context>
chip_gen: v6e
topology: v6e:2x2x1
jax: 0.10.0
libtpu: 0.0.40
codegen_flags: <defaults>
</compile_context>

<pallas_src>
import jax
import jax.numpy as jnp
from jax import lax
from jax.experimental import pallas as pl
from jax.experimental.pallas import tpu as pltpu

# ----------------------------- configuration -----------------------------
DIM = 32                   # C
WINDOW = (4, 4)            # (Wh, Ww)  -> N = 16
NUM_HEADS = 4              # H
HEAD_DIM = DIM // NUM_HEADS
N_TOKENS = WINDOW[0] * WINDOW[1]
BATCH_WINDOWS = 8          # B_ = num_windows * batch
GRID_STEPS = 2             # 2 parallel grid steps -> both TCs used on v7x
B_BLOCK = BATCH_WINDOWS // GRID_STEPS


# ------------------------------ Pallas kernel ------------------------------
def _window_attn_kernel(scale_ref,      # SMEM (H,)    exp(clamped logit_scale)
                        x_ref,          # VMEM (Bb, N, C)
                        wqkv_t_ref,     # VMEM (C, 3C)  pre-transposed qkv weight
                        bqkv_ref,       # VMEM (1, 3C)  [q_bias, 0, v_bias]
                        bias_ref,       # VMEM (H, N, N) 16*sigmoid(cpb)
                        wproj_t_ref,    # VMEM (C, C)   pre-transposed proj weight
                        bproj_ref,      # VMEM (1, C)
                        o_ref):         # VMEM (Bb, N, C)
    Bb, N, C = x_ref.shape
    H, HD = NUM_HEADS, HEAD_DIM

    # Batched QKV projection over all windows in this block:
    # (Bb*N, C) @ (C, 3C) + (1, 3C)  -- single MXU call with M = Bb*N.
    x2 = x_ref[...].reshape(Bb * N, C)
    qkv = jnp.dot(x2, wqkv_t_ref[...],
                  preferred_element_type=jnp.float32) + bqkv_ref[...]
    qkv3 = qkv.reshape(Bb, N, 3 * C)                               # (Bb, N, 3C)

    out2 = None
    for h in range(H):                       # static unroll, H = 4
        q = qkv3[..., h * HD:(h + 1) * HD]                         # (Bb, N, HD)
        k = qkv3[..., C + h * HD:C + (h + 1) * HD]
        v = qkv3[..., 2 * C + h * HD:2 * C + (h + 1) * HD]

        # cosine attention: L2-normalize q and k (F.normalize, eps=1e-12).
        # rsqrt(max(sumsq, eps^2)) == 1 / max(norm, eps); per-head logit
        # scale is folded into the q multiplier.
        inv_q = lax.rsqrt(
            jnp.maximum(jnp.sum(q * q, axis=-1, keepdims=True), 1e-24))
        inv_k = lax.rsqrt(
            jnp.maximum(jnp.sum(k * k, axis=-1, keepdims=True), 1e-24))
        qn = q * (inv_q * scale_ref[h])
        kn = k * inv_k

        # window-batched QK^T and relative position bias
        s = jnp.einsum('bnd,bmd->bnm', qn, kn,
                       preferred_element_type=jnp.float32)         # (Bb, N, N)
        s = s + bias_ref[h]

        # TODO(synk): optional shifted-window `mask` path not wired in
        # (forward is called with mask=None here).

        # softmax over the last axis
        s = s - jnp.max(s, axis=-1, keepdims=True)
        e = jnp.exp(s)
        p = e * pl.reciprocal(jnp.sum(e, axis=-1, keepdims=True), approx=True)

        # attn @ v, window-batched
        ctx = jnp.einsum('bnm,bmd->bnd', p, v,
                         preferred_element_type=jnp.float32)       # (Bb, N, HD)

        # fold the head merge into the output projection: each head
        # contributes ctx_h @ Wproj^T[h*HD:(h+1)*HD, :]; accumulate.
        part = jnp.dot(ctx.reshape(Bb * N, HD),
                       wproj_t_ref[h * HD:(h + 1) * HD, :],
                       preferred_element_type=jnp.float32)         # (Bb*N, C)
        out2 = part if out2 is None else out2 + part

    out2 = out2 + bproj_ref[...]
    o_ref[...] = out2.reshape(Bb, N, C).astype(o_ref.dtype)


def window_attention_pallas(x, scale, wqkv_t, bqkv, rel_bias, wproj_t, bproj):
    """x: (B_, N, C) float32. Returns (B_, N, C) float32."""
    B_, N, C = x.shape
    H = rel_bias.shape[0]
    Bb = B_BLOCK
    assert B_ % Bb == 0

    grid_spec = pltpu.PrefetchScalarGridSpec(
        num_scalar_prefetch=0,
        grid=(B_ // Bb,),
        in_specs=[
            # per-head scale as scalars in SMEM
            pl.BlockSpec(memory_space=pltpu.MemorySpace.SMEM),
            pl.BlockSpec((Bb, N, C), lambda b: (b, 0, 0)),
            pl.BlockSpec((C, 3 * C), lambda b: (0, 0)),      # resident weight
            pl.BlockSpec((1, 3 * C), lambda b: (0, 0)),
            pl.BlockSpec((H, N, N), lambda b: (0, 0, 0)),
            pl.BlockSpec((C, C), lambda b: (0, 0)),
            pl.BlockSpec((1, C), lambda b: (0, 0)),
        ],
        out_specs=pl.BlockSpec((Bb, N, C), lambda b: (b, 0, 0)),
    )

    return pl.pallas_call(
        _window_attn_kernel,
        out_shape=jax.ShapeDtypeStruct((B_, N, C), jnp.float32),
        grid_spec=grid_spec,
        compiler_params=pltpu.CompilerParams(
            dimension_semantics=("parallel",)),
    )(scale, x, wqkv_t, bqkv, rel_bias, wproj_t, bproj)


# ----------------------------- JAX glue (setup) -----------------------------
def make_params(key):
    ks = jax.random.split(key, 8)
    p = {}
    p["wqkv"] = 0.02 * jax.random.normal(ks[0], (3 * DIM, DIM), jnp.float32)
    p["q_bias"] = 0.02 * jax.random.normal(ks[1], (DIM,), jnp.float32)
    p["v_bias"] = 0.02 * jax.random.normal(ks[2], (DIM,), jnp.float32)
    p["logit_scale"] = jnp.log(10.0 * jnp.ones((NUM_HEADS, 1, 1), jnp.float32))
    p["cpb_w1"] = 0.02 * jax.random.normal(ks[3], (512, 2), jnp.float32)
    p["cpb_b1"] = 0.02 * jax.random.normal(ks[4], (512,), jnp.float32)
    p["cpb_w2"] = 0.02 * jax.random.normal(ks[5], (NUM_HEADS, 512), jnp.float32)
    p["wproj"] = 0.02 * jax.random.normal(ks[6], (DIM, DIM), jnp.float32)
    p["bproj"] = 0.02 * jax.random.normal(ks[7], (DIM,), jnp.float32)
    return p


def relative_coords_table(window, pretrained_window=(0, 0)):
    Wh, Ww = window
    rh = jnp.arange(-(Wh - 1), Wh, dtype=jnp.float32)
    rw = jnp.arange(-(Ww - 1), Ww, dtype=jnp.float32)
    tbl = jnp.stack(jnp.meshgrid(rh, rw, indexing="ij"), axis=-1)  # (2Wh-1,2Ww-1,2)
    if pretrained_window[0] > 0:
        denom = jnp.array([pretrained_window[0] - 1, pretrained_window[1] - 1],
                          jnp.float32)
    else:
        denom = jnp.array([Wh - 1, Ww - 1], jnp.float32)
    tbl = tbl / denom
    tbl = tbl * 8.0
    tbl = jnp.sign(tbl) * jnp.log2(jnp.abs(tbl) + 1.0) / jnp.log2(jnp.float32(8.0))
    return tbl  # (2Wh-1, 2Ww-1, 2)


def relative_position_index(window):
    Wh, Ww = window
    ch = jnp.arange(Wh)
    cw = jnp.arange(Ww)
    coords = jnp.stack(jnp.meshgrid(ch, cw, indexing="ij"))        # (2, Wh, Ww)
    flat = coords.reshape(2, -1)                                   # (2, N)
    rel = flat[:, :, None] - flat[:, None, :]                      # (2, N, N)
    rel = rel.transpose(1, 2, 0)                                   # (N, N, 2)
    rel = rel.at[:, :, 0].add(Wh - 1)
    rel = rel.at[:, :, 1].add(Ww - 1)
    rel = rel.at[:, :, 0].multiply(2 * Ww - 1)
    return rel.sum(-1)                                             # (N, N)


def compute_rel_bias(p):
    """Continuous position bias MLP + gather -> (H, N, N), 16*sigmoid applied."""
    tbl = relative_coords_table(WINDOW).reshape(-1, 2)             # (L, 2)
    h = jnp.maximum(tbl @ p["cpb_w1"].T + p["cpb_b1"], 0.0)        # (L, 512)
    bias_table = h @ p["cpb_w2"].T                                 # (L, H)
    idx = relative_position_index(WINDOW).reshape(-1)              # (N*N,)
    rpb = bias_table[idx].reshape(N_TOKENS, N_TOKENS, NUM_HEADS)
    rpb = jnp.transpose(rpb, (2, 0, 1))                            # (H, N, N)
    return 16.0 * jax.nn.sigmoid(rpb)


def prepare_kernel_args(p):
    qkv_bias = jnp.concatenate(
        [p["q_bias"], jnp.zeros_like(p["v_bias"]), p["v_bias"]])   # (3C,)
    scale = jnp.exp(
        jnp.minimum(p["logit_scale"], jnp.log(jnp.float32(1.0 / 0.01)))
    ).reshape(NUM_HEADS)                                           # (H,)
    rel_bias = compute_rel_bias(p)                                 # (H, N, N)
    # pre-transpose weights once in plain JAX (no in-kernel relayout)
    wqkv_t = p["wqkv"].T                                           # (C, 3C)
    wproj_t = p["wproj"].T                                         # (C, C)
    return (scale, wqkv_t, qkv_bias[None, :], rel_bias, wproj_t,
            p["bproj"][None, :])


# --------------------------- pure-JAX reference ---------------------------
def reference_forward(x, p):
    B_, N, C = x.shape
    H, HD = NUM_HEADS, HEAD_DIM
    qkv_bias = jnp.concatenate(
        [p["q_bias"], jnp.zeros_like(p["v_bias"]), p["v_bias"]])
    qkv = x @ p["wqkv"].T + qkv_bias                               # (B_, N, 3C)
    qkv = qkv.reshape(B_, N, 3, H, HD).transpose(2, 0, 3, 1, 4)
    q, k, v = qkv[0], qkv[1], qkv[2]                               # (B_, H, N, HD)
    qn = q / jnp.maximum(jnp.linalg.norm(q, axis=-1, keepdims=True), 1e-12)
    kn = k / jnp.maximum(jnp.linalg.norm(k, axis=-1, keepdims=True), 1e-12)
    attn = qn @ jnp.swapaxes(kn, -2, -1)
    scale = jnp.exp(
        jnp.minimum(p["logit_scale"], jnp.log(jnp.float32(1.0 / 0.01))))
    attn = attn * scale[None]                                      # (B_, H, N, N)
    attn = attn + compute_rel_bias(p)[None]
    attn = jax.nn.softmax(attn, axis=-1)
    out = (attn @ v).transpose(0, 2, 1, 3).reshape(B_, N, C)
    return out @ p["wproj"].T + p["bproj"]


# ---------------------------------- main ----------------------------------
if __name__ == "__main__":
    key = jax.random.PRNGKey(0)
    kx, kp = jax.random.split(key)

    x = jax.random.normal(kx, (BATCH_WINDOWS, N_TOKENS, DIM), jnp.float32)
    params = make_params(kp)

    scale, wqkv_t, bqkv, rel_bias, wproj_t, bproj = prepare_kernel_args(params)

    out = window_attention_pallas(x, scale, wqkv_t, bqkv, rel_bias,
                                  wproj_t, bproj)
    out = jax.block_until_ready(out)

    ref = jax.block_until_ready(reference_forward(x, params))
    assert out.shape == (BATCH_WINDOWS, N_TOKENS, DIM)
    assert jnp.allclose(out, ref, atol=1e-2, rtol=1e-2), (
        float(jnp.max(jnp.abs(out - ref))))

    print("KERNEL_OK")
</pallas_src>

<mosaic_0001>
module attributes {stable_mosaic.version = 11 : i64} {
  func.func @_window_attn_kernel(%arg0: i32, %arg1: memref<4xf32, #tpu.memory_space<smem>>, %arg2: memref<4x16x32xf32, #tpu.memory_space<vmem>>, %arg3: memref<32x96xf32, #tpu.memory_space<vmem>>, %arg4: memref<1x96xf32, #tpu.memory_space<vmem>>, %arg5: memref<4x16x16xf32, #tpu.memory_space<vmem>>, %arg6: memref<32x32xf32, #tpu.memory_space<vmem>>, %arg7: memref<1x32xf32, #tpu.memory_space<vmem>>, %arg8: memref<4x16x32xf32, #tpu.memory_space<vmem>>) attributes {dimension_semantics = [#tpu.dimension_semantics<parallel>], iteration_bounds = array<i64: 2>, scalar_prefetch = 0 : i64, scratch_operands = 0 : i64, tpu.core_type = #tpu.core_type<tc>, window_params = [{transform_indices = @transform_0, window_bounds = array<i64: 4>}, {transform_indices = @transform_1, window_bounds = array<i64: 4, 16, 32>}, {pipeline_mode = #tpu.pipeline_mode<synchronous>, transform_indices = @transform_2, window_bounds = array<i64: 32, 96>}, {pipeline_mode = #tpu.pipeline_mode<synchronous>, transform_indices = @transform_3, window_bounds = array<i64: 1, 96>}, {pipeline_mode = #tpu.pipeline_mode<synchronous>, transform_indices = @transform_4, window_bounds = array<i64: 4, 16, 16>}, {pipeline_mode = #tpu.pipeline_mode<synchronous>, transform_indices = @transform_5, window_bounds = array<i64: 32, 32>}, {pipeline_mode = #tpu.pipeline_mode<synchronous>, transform_indices = @transform_6, window_bounds = array<i64: 1, 32>}, {transform_indices = @transform_7, window_bounds = array<i64: 4, 16, 32>}]} {
    %c0 = arith.constant 0 : index
    %c0_0 = arith.constant 0 : index
    %c0_1 = arith.constant 0 : index
    %0 = vector.load %arg2[%c0, %c0_0, %c0_1] : memref<4x16x32xf32, #tpu.memory_space<vmem>>, vector<4x16x32xf32>
    %1 = vector.shape_cast %0 : vector<4x16x32xf32> to vector<64x32xf32>
    %c0_2 = arith.constant 0 : index
    %c0_3 = arith.constant 0 : index
    %2 = vector.load %arg3[%c0_2, %c0_3] : memref<32x96xf32, #tpu.memory_space<vmem>>, vector<32x96xf32>
    %cst = arith.constant dense<0.000000e+00> : vector<64x96xf32>
    %3 = tpu.matmul %1, %2, %cst {dimension_numbers = #tpu.dot_dimension_numbers<[1], [0], [0], [1], [0, 0, 1, 1], [], []>} : vector<64x32xf32>, vector<32x96xf32>, vector<64x96xf32> -> vector<64x96xf32>
    %c0_4 = arith.constant 0 : index
    %c0_5 = arith.constant 0 : index
    %4 = vector.load %arg4[%c0_4, %c0_5] : memref<1x96xf32, #tpu.memory_space<vmem>>, vector<1x96xf32>
    %5 = vector.broadcast %4 : vector<1x96xf32> to vector<64x96xf32>
    %6 = arith.addf %3, %5 : vector<64x96xf32>
    %7 = vector.shape_cast %6 : vector<64x96xf32> to vector<4x16x96xf32>
    %8 = vector.extract_strided_slice %7 {offsets = [0, 0, 0], sizes = [4, 16, 8], strides = [1, 1, 1]} : vector<4x16x96xf32> to vector<4x16x8xf32>
    %9 = vector.extract_strided_slice %7 {offsets = [0, 0, 32], sizes = [4, 16, 8], strides = [1, 1, 1]} : vector<4x16x96xf32> to vector<4x16x8xf32>
    %10 = vector.extract_strided_slice %7 {offsets = [0, 0, 64], sizes = [4, 16, 8], strides = [1, 1, 1]} : vector<4x16x96xf32> to vector<4x16x8xf32>
    %11 = arith.mulf %8, %8 : vector<4x16x8xf32>
    %cst_6 = arith.constant dense<0.000000e+00> : vector<4x16xf32>
    %12 = vector.multi_reduction <add>, %11, %cst_6 [2] : vector<4x16x8xf32> to vector<4x16xf32>
    %13 = vector.shape_cast %12 : vector<4x16xf32> to vector<4x16x1xf32>
    %cst_7 = arith.constant 1.000000e-24 : f32
    %14 = vector.broadcast %cst_7 : f32 to vector<4x16x1xf32>
    %15 = arith.maximumf %13, %14 : vector<4x16x1xf32>
    %16 = math.rsqrt %15 : vector<4x16x1xf32>
    %17 = arith.mulf %9, %9 : vector<4x16x8xf32>
    %cst_8 = arith.constant dense<0.000000e+00> : vector<4x16xf32>
    %18 = vector.multi_reduction <add>, %17, %cst_8 [2] : vector<4x16x8xf32> to vector<4x16xf32>
    %19 = vector.shape_cast %18 : vector<4x16xf32> to vector<4x16x1xf32>
    %cst_9 = arith.constant 1.000000e-24 : f32
    %20 = vector.broadcast %cst_9 : f32 to vector<4x16x1xf32>
    %21 = arith.maximumf %19, %20 : vector<4x16x1xf32>
    %22 = math.rsqrt %21 : vector<4x16x1xf32>
    %c0_10 = arith.constant 0 : index
    %23 = memref.load %arg1[%c0_10] : memref<4xf32, #tpu.memory_space<smem>>
    %24 = vector.broadcast %23 : f32 to vector<4x16x1xf32>
    %25 = arith.mulf %16, %24 : vector<4x16x1xf32>
    %26 = vector.broadcast %25 : vector<4x16x1xf32> to vector<4x16x8xf32>
    %27 = arith.mulf %8, %26 : vector<4x16x8xf32>
    %28 = vector.broadcast %22 : vector<4x16x1xf32> to vector<4x16x8xf32>
    %29 = arith.mulf %9, %28 : vector<4x16x8xf32>
    "tpu.trace_start"() <{level = 10 : i32, message = "bnd,bmd->bnm"}> : () -> ()
    %cst_11 = arith.constant dense<0.000000e+00> : vector<4x16x16xf32>
    %30 = tpu.matmul %27, %29, %cst_11 {dimension_numbers = #tpu.dot_dimension_numbers<[2], [2], [1], [1], [0, 0, 0, 1, 1, 1], [0], [0]>} : vector<4x16x8xf32>, vector<4x16x8xf32>, vector<4x16x16xf32> -> vector<4x16x16xf32>
    "tpu.trace_stop"() : () -> ()
    %c0_12 = arith.constant 0 : index
    %c0_13 = arith.constant 0 : index
    %c0_14 = arith.constant 0 : index
    %31 = vector.load %arg5[%c0_12, %c0_13, %c0_14] : memref<4x16x16xf32, #tpu.memory_space<vmem>>, vector<1x16x16xf32>
    %32 = vector.shape_cast %31 : vector<1x16x16xf32> to vector<16x16xf32>
    %33 = vector.shape_cast %32 : vector<16x16xf32> to vector<1x16x16xf32>
    %34 = vector.broadcast %33 : vector<1x16x16xf32> to vector<4x16x16xf32>
    %35 = arith.addf %30, %34 : vector<4x16x16xf32>
    %cst_15 = arith.constant dense<0xFF800000> : vector<4x16xf32>
    %36 = vector.multi_reduction <maximumf>, %35, %cst_15 [2] : vector<4x16x16xf32> to vector<4x16xf32>
    %37 = vector.shape_cast %36 : vector<4x16xf32> to vector<4x16x1xf32>
    %38 = vector.broadcast %37 : vector<4x16x1xf32> to vector<4x16x16xf32>
    %39 = arith.subf %35, %38 : vector<4x16x16xf32>
    %40 = math.exp %39 : vector<4x16x16xf32>
    %cst_16 = arith.constant dense<0.000000e+00> : vector<4x16xf32>
    %41 = vector.multi_reduction <add>, %40, %cst_16 [2] : vector<4x16x16xf32> to vector<4x16xf32>
    %42 = vector.shape_cast %41 : vector<4x16xf32> to vector<4x16x1xf32>
    %43 = tpu.reciprocal %42 {approx = true} : vector<4x16x1xf32> -> vector<4x16x1xf32>
    %44 = vector.broadcast %43 : vector<4x16x1xf32> to vector<4x16x16xf32>
    %45 = arith.mulf %40, %44 : vector<4x16x16xf32>
    "tpu.trace_start"() <{level = 10 : i32, message = "bnm,bmd->bnd"}> : () -> ()
    %cst_17 = arith.constant dense<0.000000e+00> : vector<4x16x8xf32>
    %46 = tpu.matmul %45, %10, %cst_17 {dimension_numbers = #tpu.dot_dimension_numbers<[2], [1], [1], [2], [0, 0, 0, 1, 1, 2], [0], [0]>} : vector<4x16x16xf32>, vector<4x16x8xf32>, vector<4x16x8xf32> -> vector<4x16x8xf32>
    "tpu.trace_stop"() : () -> ()
    %47 = vector.shape_cast %46 : vector<4x16x8xf32> to vector<64x8xf32>
    %c0_18 = arith.constant 0 : index
    %c0_19 = arith.constant 0 : index
    %48 = vector.load %arg6[%c0_18, %c0_19] : memref<32x32xf32, #tpu.memory_space<vmem>>, vector<8x32xf32>
    %cst_20 = arith.constant dense<0.000000e+00> : vector<64x32xf32>
    %49 = tpu.matmul %47, %48, %cst_20 {dimension_numbers = #tpu.dot_dimension_numbers<[1], [0], [0], [1], [0, 0, 1, 1], [], []>} : vector<64x8xf32>, vector<8x32xf32>, vector<64x32xf32> -> vector<64x32xf32>
    %50 = vector.extract_strided_slice %7 {offsets = [0, 0, 8], sizes = [4, 16, 8], strides = [1, 1, 1]} : vector<4x16x96xf32> to vector<4x16x8xf32>
    %51 = vector.extract_strided_slice %7 {offsets = [0, 0, 40], sizes = [4, 16, 8], strides = [1, 1, 1]} : vector<4x16x96xf32> to vector<4x16x8xf32>
    %52 = vector.extract_strided_slice %7 {offsets = [0, 0, 72], sizes = [4, 16, 8], strides = [1, 1, 1]} : vector<4x16x96xf32> to vector<4x16x8xf32>
    %53 = arith.mulf %50, %50 : vector<4x16x8xf32>
    %cst_21 = arith.constant dense<0.000000e+00> : vector<4x16xf32>
    %54 = vector.multi_reduction <add>, %53, %cst_21 [2] : vector<4x16x8xf32> to vector<4x16xf32>
    %55 = vector.shape_cast %54 : vector<4x16xf32> to vector<4x16x1xf32>
    %cst_22 = arith.constant 1.000000e-24 : f32
    %56 = vector.broadcast %cst_22 : f32 to vector<4x16x1xf32>
    %57 = arith.maximumf %55, %56 : vector<4x16x1xf32>
    %58 = math.rsqrt %57 : vector<4x16x1xf32>
    %59 = arith.mulf %51, %51 : vector<4x16x8xf32>
    %cst_23 = arith.constant dense<0.000000e+00> : vector<4x16xf32>
    %60 = vector.multi_reduction <add>, %59, %cst_23 [2] : vector<4x16x8xf32> to vector<4x16xf32>
    %61 = vector.shape_cast %60 : vector<4x16xf32> to vector<4x16x1xf32>
    %cst_24 = arith.constant 1.000000e-24 : f32
    %62 = vector.broadcast %cst_24 : f32 to vector<4x16x1xf32>
    %63 = arith.maximumf %61, %62 : vector<4x16x1xf32>
    %64 = math.rsqrt %63 : vector<4x16x1xf32>
    %c1 = arith.constant 1 : index
    %65 = memref.load %arg1[%c1] : memref<4xf32, #tpu.memory_space<smem>>
    %66 = vector.broadcast %65 : f32 to vector<4x16x1xf32>
    %67 = arith.mulf %58, %66 : vector<4x16x1xf32>
    %68 = vector.broadcast %67 : vector<4x16x1xf32> to vector<4x16x8xf32>
    %69 = arith.mulf %50, %68 : vector<4x16x8xf32>
    %70 = vector.broadcast %64 : vector<4x16x1xf32> to vector<4x16x8xf32>
    %71 = arith.mulf %51, %70 : vector<4x16x8xf32>
    "tpu.trace_start"() <{level = 10 : i32, message = "bnd,bmd->bnm"}> : () -> ()
    %cst_25 = arith.constant dense<0.000000e+00> : vector<4x16x16xf32>
    %72 = tpu.matmul %69, %71, %cst_25 {dimension_numbers = #tpu.dot_dimension_numbers<[2], [2], [1], [1], [0, 0, 0, 1, 1, 1], [0], [0]>} : vector<4x16x8xf32>, vector<4x16x8xf32>, vector<4x16x16xf32> -> vector<4x16x16xf32>
    "tpu.trace_stop"() : () -> ()
    %c1_26 = arith.constant 1 : index
    %c0_27 = arith.constant 0 : index
    %c0_28 = arith.constant 0 : index
    %73 = vector.load %arg5[%c1_26, %c0_27, %c0_28] : memref<4x16x16xf32, #tpu.memory_space<vmem>>, vector<1x16x16xf32>
    %74 = vector.shape_cast %73 : vector<1x16x16xf32> to vector<16x16xf32>
    %75 = vector.shape_cast %74 : vector<16x16xf32> to vector<1x16x16xf32>
    %76 = vector.broadcast %75 : vector<1x16x16xf32> to vector<4x16x16xf32>
    %77 = arith.addf %72, %76 : vector<4x16x16xf32>
    %cst_29 = arith.constant dense<0xFF800000> : vector<4x16xf32>
    %78 = vector.multi_reduction <maximumf>, %77, %cst_29 [2] : vector<4x16x16xf32> to vector<4x16xf32>
    %79 = vector.shape_cast %78 : vector<4x16xf32> to vector<4x16x1xf32>
    %80 = vector.broadcast %79 : vector<4x16x1xf32> to vector<4x16x16xf32>
    %81 = arith.subf %77, %80 : vector<4x16x16xf32>
    %82 = math.exp %81 : vector<4x16x16xf32>
    %cst_30 = arith.constant dense<0.000000e+00> : vector<4x16xf32>
    %83 = vector.multi_reduction <add>, %82, %cst_30 [2] : vector<4x16x16xf32> to vector<4x16xf32>
    %84 = vector.shape_cast %83 : vector<4x16xf32> to vector<4x16x1xf32>
    %85 = tpu.reciprocal %84 {approx = true} : vector<4x16x1xf32> -> vector<4x16x1xf32>
    %86 = vector.broadcast %85 : vector<4x16x1xf32> to vector<4x16x16xf32>
    %87 = arith.mulf %82, %86 : vector<4x16x16xf32>
    "tpu.trace_start"() <{level = 10 : i32, message = "bnm,bmd->bnd"}> : () -> ()
    %cst_31 = arith.constant dense<0.000000e+00> : vector<4x16x8xf32>
    %88 = tpu.matmul %87, %52, %cst_31 {dimension_numbers = #tpu.dot_dimension_numbers<[2], [1], [1], [2], [0, 0, 0, 1, 1, 2], [0], [0]>} : vector<4x16x16xf32>, vector<4x16x8xf32>, vector<4x16x8xf32> -> vector<4x16x8xf32>
    "tpu.trace_stop"() : () -> ()
    %89 = vector.shape_cast %88 : vector<4x16x8xf32> to vector<64x8xf32>
    %c8 = arith.constant 8 : index
    %c0_32 = arith.constant 0 : index
    %90 = vector.load %arg6[%c8, %c0_32] : memref<32x32xf32, #tpu.memory_space<vmem>>, vector<8x32xf32>
    %cst_33 = arith.constant dense<0.000000e+00> : vector<64x32xf32>
    %91 = tpu.matmul %89, %90, %cst_33 {dimension_numbers = #tpu.dot_dimension_numbers<[1], [0], [0], [1], [0, 0, 1, 1], [], []>} : vector<64x8xf32>, vector<8x32xf32>, vector<64x32xf32> -> vector<64x32xf32>
    %92 = arith.addf %49, %91 : vector<64x32xf32>
    %93 = vector.extract_strided_slice %7 {offsets = [0, 0, 16], sizes = [4, 16, 8], strides = [1, 1, 1]} : vector<4x16x96xf32> to vector<4x16x8xf32>
    %94 = vector.extract_strided_slice %7 {offsets = [0, 0, 48], sizes = [4, 16, 8], strides = [1, 1, 1]} : vector<4x16x96xf32> to vector<4x16x8xf32>
    %95 = vector.extract_strided_slice %7 {offsets = [0, 0, 80], sizes = [4, 16, 8], strides = [1, 1, 1]} : vector<4x16x96xf32> to vector<4x16x8xf32>
    %96 = arith.mulf %93, %93 : vector<4x16x8xf32>
    %cst_34 = arith.constant dense<0.000000e+00> : vector<4x16xf32>
    %97 = vector.multi_reduction <add>, %96, %cst_34 [2] : vector<4x16x8xf32> to vector<4x16xf32>
    %98 = vector.shape_cast %97 : vector<4x16xf32> to vector<4x16x1xf32>
    %cst_35 = arith.constant 1.000000e-24 : f32
    %99 = vector.broadcast %cst_35 : f32 to vector<4x16x1xf32>
    %100 = arith.maximumf %98, %99 : vector<4x16x1xf32>
    %101 = math.rsqrt %100 : vector<4x16x1xf32>
    %102 = arith.mulf %94, %94 : vector<4x16x8xf32>
    %cst_36 = arith.constant dense<0.000000e+00> : vector<4x16xf32>
    %103 = vector.multi_reduction <add>, %102, %cst_36 [2] : vector<4x16x8xf32> to vector<4x16xf32>
    %104 = vector.shape_cast %103 : vector<4x16xf32> to vector<4x16x1xf32>
    %cst_37 = arith.constant 1.000000e-24 : f32
    %105 = vector.broadcast %cst_37 : f32 to vector<4x16x1xf32>
    %106 = arith.maximumf %104, %105 : vector<4x16x1xf32>
    %107 = math.rsqrt %106 : vector<4x16x1xf32>
    %c2 = arith.constant 2 : index
    %108 = memref.load %arg1[%c2] : memref<4xf32, #tpu.memory_space<smem>>
    %109 = vector.broadcast %108 : f32 to vector<4x16x1xf32>
    %110 = arith.mulf %101, %109 : vector<4x16x1xf32>
    %111 = vector.broadcast %110 : vector<4x16x1xf32> to vector<4x16x8xf32>
    %112 = arith.mulf %93, %111 : vector<4x16x8xf32>
    %113 = vector.broadcast %107 : vector<4x16x1xf32> to vector<4x16x8xf32>
    %114 = arith.mulf %94, %113 : vector<4x16x8xf32>
    "tpu.trace_start"() <{level = 10 : i32, message = "bnd,bmd->bnm"}> : () -> ()
    %cst_38 = arith.constant dense<0.000000e+00> : vector<4x16x16xf32>
    %115 = tpu.matmul %112, %114, %cst_38 {dimension_numbers = #tpu.dot_dimension_numbers<[2], [2], [1], [1], [0, 0, 0, 1, 1, 1], [0], [0]>} : vector<4x16x8xf32>, vector<4x16x8xf32>, vector<4x16x16xf32> -> vector<4x16x16xf32>
    "tpu.trace_stop"() : () -> ()
    %c2_39 = arith.constant 2 : index
    %c0_40 = arith.constant 0 : index
    %c0_41 = arith.constant 0 : index
    %116 = vector.load %arg5[%c2_39, %c0_40, %c0_41] : memref<4x16x16xf32, #tpu.memory_space<vmem>>, vector<1x16x16xf32>
    %117 = vector.shape_cast %116 : vector<1x16x16xf32> to vector<16x16xf32>
    %118 = vector.shape_cast %117 : vector<16x16xf32> to vector<1x16x16xf32>
    %119 = vector.broadcast %118 : vector<1x16x16xf32> to vector<4x16x16xf32>
    %120 = arith.addf %115, %119 : vector<4x16x16xf32>
    %cst_42 = arith.constant dense<0xFF800000> : vector<4x16xf32>
    %121 = vector.multi_reduction <maximumf>, %120, %cst_42 [2] : vector<4x16x16xf32> to vector<4x16xf32>
    %122 = vector.shape_cast %121 : vector<4x16xf32> to vector<4x16x1xf32>
    %123 = vector.broadcast %122 : vector<4x16x1xf32> to vector<4x16x16xf32>
    %124 = arith.subf %120, %123 : vector<4x16x16xf32>
    %125 = math.exp %124 : vector<4x16x16xf32>
    %cst_43 = arith.constant dense<0.000000e+00> : vector<4x16xf32>
    %126 = vector.multi_reduction <add>, %125, %cst_43 [2] : vector<4x16x16xf32> to vector<4x16xf32>
    %127 = vector.shape_cast %126 : vector<4x16xf32> to vector<4x16x1xf32>
    %128 = tpu.reciprocal %127 {approx = true} : vector<4x16x1xf32> -> vector<4x16x1xf32>
    %129 = vector.broadcast %128 : vector<4x16x1xf32> to vector<4x16x16xf32>
    %130 = arith.mulf %125, %129 : vector<4x16x16xf32>
    "tpu.trace_start"() <{level = 10 : i32, message = "bnm,bmd->bnd"}> : () -> ()
    %cst_44 = arith.constant dense<0.000000e+00> : vector<4x16x8xf32>
    %131 = tpu.matmul %130, %95, %cst_44 {dimension_numbers = #tpu.dot_dimension_numbers<[2], [1], [1], [2], [0, 0, 0, 1, 1, 2], [0], [0]>} : vector<4x16x16xf32>, vector<4x16x8xf32>, vector<4x16x8xf32> -> vector<4x16x8xf32>
    "tpu.trace_stop"() : () -> ()
    %132 = vector.shape_cast %131 : vector<4x16x8xf32> to vector<64x8xf32>
    %c16 = arith.constant 16 : index
    %c0_45 = arith.constant 0 : index
    %133 = vector.load %arg6[%c16, %c0_45] : memref<32x32xf32, #tpu.memory_space<vmem>>, vector<8x32xf32>
    %cst_46 = arith.constant dense<0.000000e+00> : vector<64x32xf32>
    %134 = tpu.matmul %132, %133, %cst_46 {dimension_numbers = #tpu.dot_dimension_numbers<[1], [0], [0], [1], [0, 0, 1, 1], [], []>} : vector<64x8xf32>, vector<8x32xf32>, vector<64x32xf32> -> vector<64x32xf32>
    %135 = arith.addf %92, %134 : vector<64x32xf32>
    %136 = vector.extract_strided_slice %7 {offsets = [0, 0, 24], sizes = [4, 16, 8], strides = [1, 1, 1]} : vector<4x16x96xf32> to vector<4x16x8xf32>
    %137 = vector.extract_strided_slice %7 {offsets = [0, 0, 56], sizes = [4, 16, 8], strides = [1, 1, 1]} : vector<4x16x96xf32> to vector<4x16x8xf32>
    %138 = vector.extract_strided_slice %7 {offsets = [0, 0, 88], sizes = [4, 16, 8], strides = [1, 1, 1]} : vector<4x16x96xf32> to vector<4x16x8xf32>
    %139 = arith.mulf %136, %136 : vector<4x16x8xf32>
    %cst_47 = arith.constant dense<0.000000e+00> : vector<4x16xf32>
    %140 = vector.multi_reduction <add>, %139, %cst_47 [2] : vector<4x16x8xf32> to vector<4x16xf32>
    %141 = vector.shape_cast %140 : vector<4x16xf32> to vector<4x16x1xf32>
    %cst_48 = arith.constant 1.000000e-24 : f32
    %142 = vector.broadcast %cst_48 : f32 to vector<4x16x1xf32>
    %143 = arith.maximumf %141, %142 : vector<4x16x1xf32>
    %144 = math.rsqrt %143 : vector<4x16x1xf32>
    %145 = arith.mulf %137, %137 : vector<4x16x8xf32>
    %cst_49 = arith.constant dense<0.000000e+00> : vector<4x16xf32>
    %146 = vector.multi_reduction <add>, %145, %cst_49 [2] : vector<4x16x8xf32> to vector<4x16xf32>
    %147 = vector.shape_cast %146 : vector<4x16xf32> to vector<4x16x1xf32>
    %cst_50 = arith.constant 1.000000e-24 : f32
    %148 = vector.broadcast %cst_50 : f32 to vector<4x16x1xf32>
    %149 = arith.maximumf %147, %148 : vector<4x16x1xf32>
    %150 = math.rsqrt %149 : vector<4x16x1xf32>
    %c3 = arith.constant 3 : index
    %151 = memref.load %arg1[%c3] : memref<4xf32, #tpu.memory_space<smem>>
    %152 = vector.broadcast %151 : f32 to vector<4x16x1xf32>
    %153 = arith.mulf %144, %152 : vector<4x16x1xf32>
    %154 = vector.broadcast %153 : vector<4x16x1xf32> to vector<4x16x8xf32>
    %155 = arith.mulf %136, %154 : vector<4x16x8xf32>
    %156 = vector.broadcast %150 : vector<4x16x1xf32> to vector<4x16x8xf32>
    %157 = arith.mulf %137, %156 : vector<4x16x8xf32>
    "tpu.trace_start"() <{level = 10 : i32, message = "bnd,bmd->bnm"}> : () -> ()
    %cst_51 = arith.constant dense<0.000000e+00> : vector<4x16x16xf32>
    %158 = tpu.matmul %155, %157, %cst_51 {dimension_numbers = #tpu.dot_dimension_numbers<[2], [2], [1], [1], [0, 0, 0, 1, 1, 1], [0], [0]>} : vector<4x16x8xf32>, vector<4x16x8xf32>, vector<4x16x16xf32> -> vector<4x16x16xf32>
    "tpu.trace_stop"() : () -> ()
    %c3_52 = arith.constant 3 : index
    %c0_53 = arith.constant 0 : index
    %c0_54 = arith.constant 0 : index
    %159 = vector.load %arg5[%c3_52, %c0_53, %c0_54] : memref<4x16x16xf32, #tpu.memory_space<vmem>>, vector<1x16x16xf32>
    %160 = vector.shape_cast %159 : vector<1x16x16xf32> to vector<16x16xf32>
    %161 = vector.shape_cast %160 : vector<16x16xf32> to vector<1x16x16xf32>
    %162 = vector.broadcast %161 : vector<1x16x16xf32> to vector<4x16x16xf32>
    %163 = arith.addf %158, %162 : vector<4x16x16xf32>
    %cst_55 = arith.constant dense<0xFF800000> : vector<4x16xf32>
    %164 = vector.multi_reduction <maximumf>, %163, %cst_55 [2] : vector<4x16x16xf32> to vector<4x16xf32>
    %165 = vector.shape_cast %164 : vector<4x16xf32> to vector<4x16x1xf32>
    %166 = vector.broadcast %165 : vector<4x16x1xf32> to vector<4x16x16xf32>
    %167 = arith.subf %163, %166 : vector<4x16x16xf32>
    %168 = math.exp %167 : vector<4x16x16xf32>
    %cst_56 = arith.constant dense<0.000000e+00> : vector<4x16xf32>
    %169 = vector.multi_reduction <add>, %168, %cst_56 [2] : vector<4x16x16xf32> to vector<4x16xf32>
    %170 = vector.shape_cast %169 : vector<4x16xf32> to vector<4x16x1xf32>
    %171 = tpu.reciprocal %170 {approx = true} : vector<4x16x1xf32> -> vector<4x16x1xf32>
    %172 = vector.broadcast %171 : vector<4x16x1xf32> to vector<4x16x16xf32>
    %173 = arith.mulf %168, %172 : vector<4x16x16xf32>
    "tpu.trace_start"() <{level = 10 : i32, message = "bnm,bmd->bnd"}> : () -> ()
    %cst_57 = arith.constant dense<0.000000e+00> : vector<4x16x8xf32>
    %174 = tpu.matmul %173, %138, %cst_57 {dimension_numbers = #tpu.dot_dimension_numbers<[2], [1], [1], [2], [0, 0, 0, 1, 1, 2], [0], [0]>} : vector<4x16x16xf32>, vector<4x16x8xf32>, vector<4x16x8xf32> -> vector<4x16x8xf32>
    "tpu.trace_stop"() : () -> ()
    %175 = vector.shape_cast %174 : vector<4x16x8xf32> to vector<64x8xf32>
    %c24 = arith.constant 24 : index
    %c0_58 = arith.constant 0 : index
    %176 = vector.load %arg6[%c24, %c0_58] : memref<32x32xf32, #tpu.memory_space<vmem>>, vector<8x32xf32>
    %cst_59 = arith.constant dense<0.000000e+00> : vector<64x32xf32>
    %177 = tpu.matmul %175, %176, %cst_59 {dimension_numbers = #tpu.dot_dimension_numbers<[1], [0], [0], [1], [0, 0, 1, 1], [], []>} : vector<64x8xf32>, vector<8x32xf32>, vector<64x32xf32> -> vector<64x32xf32>
    %178 = arith.addf %135, %177 : vector<64x32xf32>
    %c0_60 = arith.constant 0 : index
    %c0_61 = arith.constant 0 : index
    %179 = vector.load %arg7[%c0_60, %c0_61] : memref<1x32xf32, #tpu.memory_space<vmem>>, vector<1x32xf32>
    %180 = vector.broadcast %179 : vector<1x32xf32> to vector<64x32xf32>
    %181 = arith.addf %178, %180 : vector<64x32xf32>
    %182 = vector.shape_cast %181 : vector<64x32xf32> to vector<4x16x32xf32>
    %c0_62 = arith.constant 0 : index
    %c0_63 = arith.constant 0 : index
    %c0_64 = arith.constant 0 : index
    %183 = vector.load %arg8[%c0_62, %c0_63, %c0_64] : memref<4x16x32xf32, #tpu.memory_space<vmem>>, vector<4x16x32xf32>
    tpu.vector_store %arg8[%c0_62, %c0_63, %c0_64], %182 {strides = array<i32>} : memref<4x16x32xf32, #tpu.memory_space<vmem>>, vector<4x16x32xf32>,
    return
  }
  func.func @transform_0(%arg0: i32) -> i32 {
    %c0_i32 = arith.constant 0 : i32
    %c0_i32_0 = arith.constant 0 : i32
    return %c0_i32 : i32
  }
  func.func @transform_1(%arg0: i32) -> (i32, i32, i32) {
    %c0_i32 = arith.constant 0 : i32
    %c0_i32_0 = arith.constant 0 : i32
    %c0_i32_1 = arith.constant 0 : i32
    return %arg0, %c0_i32, %c0_i32_0 : i32, i32, i32
  }
  func.func @transform_2(%arg0: i32) -> (i32, i32) {
    %c0_i32 = arith.constant 0 : i32
    %c0_i32_0 = arith.constant 0 : i32
    %c0_i32_1 = arith.constant 0 : i32
    return %c0_i32, %c0_i32_0 : i32, i32
  }
  func.func @transform_3(%arg0: i32) -> (i32, i32) {
    %c0_i32 = arith.constant 0 : i32
    %c0_i32_0 = arith.constant 0 : i32
    %c0_i32_1 = arith.constant 0 : i32
    return %c0_i32, %c0_i32_0 : i32, i32
  }
  func.func @transform_4(%arg0: i32) -> (i32, i32, i32) {
    %c0_i32 = arith.constant 0 : i32
    %c0_i32_0 = arith.constant 0 : i32
    %c0_i32_1 = arith.constant 0 : i32
    %c0_i32_2 = arith.constant 0 : i32
    return %c0_i32, %c0_i32_0, %c0_i32_1 : i32, i32, i32
  }
  func.func @transform_5(%arg0: i32) -> (i32, i32) {
    %c0_i32 = arith.constant 0 : i32
    %c0_i32_0 = arith.constant 0 : i32
    %c0_i32_1 = arith.constant 0 : i32
    return %c0_i32, %c0_i32_0 : i32, i32
  }
  func.func @transform_6(%arg0: i32) -> (i32, i32) {
    %c0_i32 = arith.constant 0 : i32
    %c0_i32_0 = arith.constant 0 : i32
    %c0_i32_1 = arith.constant 0 : i32
    return %c0_i32, %c0_i32_0 : i32, i32
  }
  func.func @transform_7(%arg0: i32) -> (i32, i32, i32) {
    %c0_i32 = arith.constant 0 : i32
    %c0_i32_0 = arith.constant 0 : i32
    %c0_i32_1 = arith.constant 0 : i32
    return %arg0, %c0_i32, %c0_i32_0 : i32, i32, i32
  }
}

</mosaic_0001>

<bundles_post_ra>
// kernel: tpu_custom_call.1
= control target key start
LH: loop header
LB: loop body
LE: loop exit
PB: predicated region body
PF: predicated region fallthrough
CT: control target
= control target key end

     0   :  { %s7607_s0 = inlined_call_operand.hbm [shape: f32[4], index: 0, kind: input, shape index: {}]   ;;  %s7608_s1 = inlined_call_operand.hbm [shape: f32[8,16,32], index: 1, kind: input, shape index: {}]   ;;  %s7609_s2 = inlined_call_operand.hbm [shape: f32[32,96], index: 2, kind: input, shape index: {}]   ;;  %s7610_s3 = inlined_call_operand.vmem [shape: f32[1,96], index: 3, kind: input, shape index: {}]   ;;  %s7611_s4 = inlined_call_operand.hbm [shape: f32[4,16,16], index: 4, kind: input, shape index: {}]   ;;  %s7612_s5 = inlined_call_operand.hbm [shape: f32[32,32], index: 5, kind: input, shape index: {}]   ;;  %s7613_s6 = inlined_call_operand.vmem [shape: f32[1,32], index: 6, kind: input, shape index: {}]   ;;  %s7614_s7 = inlined_call_operand.hbm [shape: f32[8,16,32], index: 7, kind: output, shape index: {}]  }
   0x1   :  { %7621 = sst [smem:[#allocation18_spill]] %s7607_s0 }
   0x2   :  { %12 = vsyncpa [#allocation5], 0 }
   0x3   :  { %13 = vsyncpa [#allocation3], 0 }
   0x4   :  { %15 = vsyncpa [#allocation3 + $0x1], 0 }
   0x5   :  { %16 = vsyncpa [#allocation8], 0 }
   0x6   :  { %17 = vsyncpa [#allocation11], 0 }
   0x7   :  { %18 = vsyncpa [#allocation4], 0 }
   0x8   :  { %20 = vsyncpa [#allocation4 + $0x1], 0  ;;  %s6329_s24 = smov 0   ;;  %s6331_s25 = smov 0  }
   0x9   :  { %s6333_s26 = smov 0   ;;  %s6335_s27 = smov 0  }
   0xa LB: > { %s6350_s28 = sadd.s32 4294967295, %s6266_s27   ;;  %s5070_s29 = sadd.s32 4294967294, %s6266_s27   ;;  %s6266_s27 = sphi %s6335_s27, %s7645_s27   ;;  %s6262_s26 = sphi %s6333_s26, %s7644_s26   ;;  %s6258_s25 = sphi %s6331_s25, %s7643_s25   ;;  %s6254_s24 = sphi %s6329_s24, %s7642_s24  }
   0xb   : > { %p67_p0 = scmp.ne.s32.totalorder %s6258_s25, %s6254_s24  ;;  %p7616_p1 = scmp.eq.s32.totalorder %s6350_s28, 0 }
   0xc   : > { %p196_p2 = scmp.eq.s32.totalorder %s6350_s28, 1  ;;  %p202_p3 = scmp.eq.s32.totalorder %s5070_s29, 1 }
   0xd   : > { %p6359_p4 = por %p7616_p1, %p67_p0  ;;  %p5071_p5 = scmp.ge.s32.totalorder %s6266_s27, 1 }
   0xe   : > { %p6364_p6 = por %p202_p3, %p67_p0  ;;  %p209_p7 = scmp.lt.s32.totalorder %s6266_s27, 3 }
   0xf   : > { %s7622_s30 = scalar_select %p6359_p4, 1, 0 }
  0x10   : > { %s7623_s8 = scalar_select %p6364_p6, 1, 0 }
  0x11   : > { %p6369_p8 = pnand %p5071_p5, %p209_p7  ;;  %s6268_s10 = smov [#allocation7]  }
  0x12   : > { %s230_s11 = sshll.u32 %s6268_s10, 4  ;;  %s6269_s13 = smov [#allocation9]   ;;  %s231_s11 = int_to_ptr.vmem [resolvable:$true] %s230_s11 }
  0x13   : > { %s7624_s9 = scalar_select %p6369_p8, 1, 0 }
  0x14   : > { %p5735_p9 = pneg %p6369_p8  ;;  %s246_s14 = sshll.u32 %s6269_s13, 4  ;;  %s247_s14 = int_to_ptr.vmem [resolvable:$true] %s246_s14 }
  0x15   : > { %s6084_s15 = scalar_lea.vmem %s231_s11, 512  ;;  %p6092_p5 = scmp.lt.s32.totalorder %s231_s11, %s231_s11 }
  0x16   : > { %p6378_p11 = pnand %p5735_p9, %p7616_p1  ;;  %p6085_p13 = scmp.ne.s32.totalorder %s231_s11, %s6084_s15 }
  0x17   : > { %p6093_p7 = scmp.lt.s32.totalorder %s6084_s15, %s6084_s15 }
  0x18   : > { %p6075_p12 = pneg %p6378_p11 }
  0x19   : > { %p6094_p10 = por %p6093_p7, %p6092_p5 }
  0x1a   : > { %p6087_p0 = pnand %p6085_p13, %p6075_p12 }
  0x1c   : > { %p6088_p3 = pneg %p6087_p0 }
  0x1e   : > { %p6095_p9 = pnand %p6094_p10, %p6088_p3 }
  0x20   : > { %6098 = shalt.err (!%p6095_p9)
}
  0x21   : > { %s7615_s16 = smov 128   ;;  %s7617_s17 = smov 8  }
  0x22   : > { %5741 = dma.hbm_to_vmem [thread:$0]  (!%p6378_p11), %s7609_s2, 512, %s231_s11, [#allocation8], %s7615_s16, %s7615_s16, %s7617_s17  }
  0x23   : > { %s6272_s20 = smov [#allocation2]   ;;  %s7626_s0 = sld [smem:[#allocation18_spill]] }
  0x24   : > { %s6121_s23 = scalar_lea.vmem %s247_s14, 1024  ;;  %p6129_p3 = scmp.lt.s32.totalorder %s247_s14, %s247_s14 }
  0x25   : > { %p6122_p10 = scmp.ne.s32.totalorder %s247_s14, %s6121_s23  ;;  %p6130_p5 = scmp.lt.s32.totalorder %s6121_s23, %s6121_s23 }
  0x27   : > { %p6124_p13 = pnand %p6122_p10, %p6075_p12  ;;  %p6131_p7 = por %p6130_p5, %p6129_p3 }
  0x29   : > { %5738 = dma.hbm_to_smem (!%p6378_p11), %s7626_s0, 16, %s6272_s20, [#allocation5]  }
  0x2a   : > { %p6125_p0 = pneg %p6124_p13 }
  0x2c   : > { %p6132_p9 = pnand %p6131_p7, %p6125_p0 }
  0x2e   : > { %6135 = shalt.err (!%p6132_p9)
}
  0x2f   : > { %5744 = dma.hbm_to_vmem [thread:$0]  (!%p6378_p11), %s7611_s4, 1024, %s247_s14, [#allocation8], %s7615_s16, %s7615_s16, %s7617_s17  }
  0x30   : > { %s6273_s11 = smov [#allocation10]  }
  0x31   : > { %s259_s13 = sshll.u32 %s6273_s11, 4  ;;  %s260_s13 = int_to_ptr.vmem [resolvable:$true] %s259_s13 }
  0x32   : > { %s6147_s15 = scalar_lea.vmem %s260_s13, 512  ;;  %p6155_p3 = scmp.lt.s32.totalorder %s260_s13, %s260_s13 }
  0x33   : > { %p6148_p10 = scmp.ne.s32.totalorder %s260_s13, %s6147_s15  ;;  %p6156_p5 = scmp.lt.s32.totalorder %s6147_s15, %s6147_s15 }
  0x35   : > { %p6150_p13 = pnand %p6148_p10, %p6075_p12  ;;  %p6157_p7 = por %p6156_p5, %p6155_p3 }
  0x37   : > { %p6151_p0 = pneg %p6150_p13 }
  0x39   : > { %p6158_p9 = pnand %p6157_p7, %p6151_p0 }
  0x3b   : > { %6161 = shalt.err (!%p6158_p9)
}
  0x3c   : > { %5747 = dma.hbm_to_vmem [thread:$0]  (!%p6378_p11), %s7612_s5, 512, %s260_s13, [#allocation11], %s7615_s16, %s7615_s16, %s7617_s17  }
  0x3d   : > { %s6423_s19 = sadd.s32 1, %s6266_s27   ;;  %s54_s12 = sadd.s32 1, %s6262_s26 }
  0x3e   : > { %s51_s20 = ssub.s32 %s6266_s27, %s6423_s19  ;;  %p61_p12 = scmp.ne.s32.totalorder %s6262_s26, %s6258_s25 }
  0x3f   : > { %p52_p10 = scmp.eq.s32.totalorder %s51_s20, 0  ;;  %p62_p13 = scmp.eq.s32.totalorder %s6266_s27, 0 }
  0x40   : > { %p6433_p0 = por %p196_p2, %p61_p12  ;;  %p5760_p3 = scmp.lt.s32.totalorder %s6266_s27, 2 }
  0x41   : > { %s6439_s22 = scalar_select %p52_p10, %s6262_s26, %s54_s12  }
  0x42   : > { %s7627_s21 = scalar_select %p6433_p0, 1, 0 }
  0x43   : > { %p63_p5 = por %p62_p13, %p61_p12  ;;  %s276_s23 = sand.u32 1, %s6262_s26  }
  0x44   : > { %s5077_s29 = sshll.u32 %s276_s23, 6  ;;  %s5236_s10 = sshll.u32 %s6266_s27, 10 }
  0x45   : > { %s6446_s15 = scalar_lea.hbm %s7608_s1, %s5236_s10  ;;  %s280_s14 = scalar_lea.vmem [#allocation6], %s5077_s29 }
  0x46   : > { %s288_s18 = sshll.u32 %s280_s14, 4  ;;  %p6450_p2 = pnand %p5760_p3, %p63_p5  ;;  %s6448_s18 = int_to_ptr.vmem [resolvable:$true] %s288_s18 }
  0x47   : > { %s6454_s12 = scalar_lea.sflag [#allocation3], %s276_s23  ;;  %s6162_s16 = scalar_lea.hbm %s6446_s15, 1024 }
  0x48   : > { %p6163_p11 = scmp.ne.s32.totalorder %s6446_s15, %s6162_s16  ;;  %p6164_p7 = pneg %p6450_p2 }
  0x49   : > { %s6167_s29 = scalar_lea.hbm %s7608_s1, 2048  ;;  %p6168_p10 = scmp.lt.s32.totalorder %s6446_s15, %s7608_s1 }
  0x4a   : > { %p6165_p9 = pnand %p6164_p7, %p6163_p11  ;;  %p6169_p13 = scmp.lt.s32.totalorder %s6167_s29, %s6162_s16 }
  0x4c   : > { %p6166_p12 = pneg %p6165_p9  ;;  %p6170_p3 = por %p6169_p13, %p6168_p10 }
  0x4e   : > { %p6171_p5 = pnand %p6170_p3, %p6166_p12 }
  0x50   : > { %6174 = shalt.err (!%p6171_p5)
}
  0x51   : > { %s6175_s23 = scalar_lea.vmem %s6448_s18, 1024  ;;  %s6274_s17 = smov [#allocation6]  }
  0x52   : > { %p6176_p1 = scmp.ne.s32.totalorder %s6448_s18, %s6175_s23  ;;  %s6180_s0 = sshll.u32 %s6274_s17, 4  ;;  %s6181_s0 = int_to_ptr.vmem [resolvable:$false] %s6180_s0 }
  0x53   : > { %s6182_s10 = scalar_lea.vmem %s6181_s0, 2048  ;;  %p6183_p9 = scmp.lt.s32.totalorder %s6448_s18, %s6181_s0 }
  0x54   : > { %p6178_p6 = pnand %p6176_p1, %p6164_p7  ;;  %p6184_p0 = scmp.lt.s32.totalorder %s6182_s10, %s6175_s23 }
  0x56   : > { %p6179_p11 = pneg %p6178_p6  ;;  %p6185_p4 = por %p6184_p0, %p6183_p9 }
  0x58   : > { %p6186_p8 = pnand %p6185_p4, %p6179_p11 }
  0x5a   : > { %6189 = shalt.err (!%p6186_p8)
}
  0x5b   : > { %s7629_s16 = smov 8   ;;  %s7630_s11 = smov 128  }
  0x5c   : > { %5751 = dma.hbm_to_vmem [thread:$0]  (!%p6450_p2), %s6446_s15, 1024, %s6448_s18, %s6454_s12, %s7630_s11, %s7630_s11, %s7629_s16  }
  0x5d   : > { %p7631_p1 = scmp.ne.s32.totalorder %s7624_s9, 0 }
  0x5e   : > { %p7632_p6 = scmp.eq.s32.totalorder (!%p7631_p1), %s6350_s28, 0 }
  0x5f   : > { %300 = sbr.rel (%p7631_p1) target bundleno = 4035 (0xfc3), region = 48 }
  0x64   : > { %6233 = dma.done.wait (%p7632_p6), [#allocation5], 16   ;;  %p7633_p7 = pmov %p7632_p6 }
  0x65   : > { %s6485_s0 = sand.u32 1, %s6258_s25   ;;  %p7634_p4 = scmp.ne.s32.totalorder %s7622_s30, 0 }
  0x66   : > { %6235 = vsyncadd (%p7633_p7), [#allocation5], 4294967280  ;;  %s5083_s17 = sshll.u32 %s6485_s0, 6  ;;  %s307_s20 = scalar_lea.sflag [#allocation3], %s6485_s0 }
  0x67   : > { %s6491_s15 = scalar_lea.vmem [#allocation6], %s5083_s17 }
  0x68   : > { %6237 = dma.done.wait (%p7634_p4), %s307_s20, 1024  }
  0x69   : > { %6239 = vsyncadd (%p7634_p4), %s307_s20, 4294966272  ;;  %p7635_p8 = pmov %p7632_p6 }
  0x6a   : > { %p7636_p0 = pmov %p7632_p6 }
  0x6b   : > { %6241 = dma.done.wait (%p7635_p8), [#allocation8], 1536  }
  0x6c   : > { %6243 = vsyncadd (%p7636_p0), [#allocation8], 4294965760  ;;  %p7637_p2 = pmov %p7636_p0 }
  0x6d   : > { %p7638_p12 = pmov %p7636_p0 }
  0x6e   : > { %6245 = dma.done.wait (%p7637_p2), [#allocation11], 512  }
  0x6f   : > { %6247 = vsyncadd (%p7638_p12), [#allocation11], 4294966784 }
  0x70   : > { %327 = sfence }
  0x71   : > { %v367_v0 = vld [vmem:[#allocation7 + $0x18] sm:$0xff]  ;;  %v366_v1 = vld [vmem:[#allocation7 + $0x10] sm:$0xff]  ;;  %vm375_vm0 = vcmask 261120   ;;  %v356_v2 = vld [vmem:[%s6491_s15] sm:$0xff]  ;;  %s6275_s18 = smov 96   ;;  %vm513_vm1 = vcmask 64512  }
  0x72   : > { %5415 = vmatprep.subr.mxu0 %v367_v0  ;;  %v365_v3 = vld [vmem:[#allocation7 + $0x8] sm:$0xff]  ;;  %5423 = vmatprep.mubr.msk.f32.mxu0 %vm375_vm0, %v356_v2  ;;  %v364_v4 = vld [vmem:[#allocation7] sm:$0xff]  ;;  %v358_v6 = vld [vmem:[%s6491_s15 + $0x10] sm:$0xff]  ;;  %s626_s12 = sld [smem:[#allocation2]]  ;;  %s6276_s29 = smov 88   ;;  %vm1018_vm2 = vcmask 130048  }
  0x73   : > { %5416 = vmatpush3.msra.mxu0 %v367_v0  ;;  %v357_v5 = vld [vmem:[%s6491_s15 + $0x8] sm:$0xff]  ;;  %v359_v7 = vld [vmem:[%s6491_s15 + $0x18] sm:$0xff]  ;;  %v360_v8 = vld [vmem:[%s6491_s15 + $0x20] sm:$0xff]  ;;  %s6277_s13 = smov 120   ;;  %s6278_s14 = smov 64  }
  0x74   : > { %5417 = vmatprep.subr.mxu0 %v366_v1  ;;  %v361_v9 = vld [vmem:[%s6491_s15 + $0x28] sm:$0xff]  ;;  %v362_v10 = vld [vmem:[%s6491_s15 + $0x30] sm:$0xff]  ;;  %v363_v11 = vld [vmem:[%s6491_s15 + $0x38] sm:$0xff]  ;;  %s5121_s23 = sld [smem:[#allocation2 + $0x1]]  ;;  %s6279_s10 = smov 56  }
  0x75   : > { %5418 = vmatpush3.msra.mxu0 %v366_v1  ;;  %v5088_v12 = vld [vmem:[%s7610_s3] ss:$0 sm:$0xff]  ;;  %s6280_s16 = smov 80   ;;  %s6281_s11 = smov 112  }
  0x76   : > { %5419 = vmatprep.subr.mxu0 %v365_v3  ;;  %s5162_s20 = sld [smem:[#allocation2 + $0x2]]  ;;  %s6282_s15 = smov 48  }
  0x77   : > { %5420 = vmatpush3.msra.mxu0 %v365_v3  ;;  %s6283_s30 = smov 72   ;;  %s6284_s9 = smov 104  }
  0x78   : > { %5421 = vmatprep.subr.mxu0 %v364_v4  ;;  %p7639_p13 = scmp.ne.s32.totalorder %s7627_s21, 0 }
  0x79   : > { %5422 = vmatpush3.msra.mxu0 %v364_v4 }
  0x7a   : > { %5424 = vmatmul.mubr.msk.f32.vlgmr.msra.gmra.mxu0 %vm375_vm0, %v357_v5 }
  0x7b   : > { %5426 = vmatprep.mubr.msk.f32.mxu0 %vm375_vm0, %v358_v6 }
  0x7e   : > { %5427 = vmatmul.mubr.msk.f32.gmra.mxu0 %vm375_vm0, %v359_v7 }
  0x7f   : > { %5429 = vmatprep.mubr.msk.f32.mxu0 %vm375_vm0, %v360_v8 }
  0x82   : > { %5430 = vmatmul.mubr.msk.f32.gmra.mxu0 %vm375_vm0, %v361_v9 }
  0x83   : > { %5432 = vmatprep.mubr.msk.f32.mxu0 %vm375_vm0, %v362_v10 }
  0x86   : > { %5433 = vmatmul.mubr.msk.f32.gmra.mxu0 %vm375_vm0, %v363_v11 }
 0x13a   : > { %v5425_v13 = vpop.f32.mrf.mxu0 }
 0x13b   : > { %v6524_v14 = vadd.f32 %v5425_v13, %v5088_v12 }
 0x13c   : > { %v466_v15 = vpop.f32.mrf.mxu0 }
 0x13d   : > { %v6526_v16 = vadd.f32 %v5088_v12, %v466_v15  ;;  %v6530_v17 = vmul.f32 %v6524_v14, %v6524_v14 }
 0x13e   : > { %v5428_v18 = vpop.f32.mrf.mxu0 }
 0x13f   : > { %v6532_v19 = vadd.f32 %v5428_v18, %v5088_v12  ;;  %564 = vrot.lane.b32.xlu0 %v6530_v17, %s6275_s18  ;;  %v6544_v23 = vmul.f32 %v6526_v16, %v6526_v16  ;;  %v517_v54 = vsel %vm513_vm1, %v6530_v17, 0.0 }
 0x140   : > { %v476_v20 = vpop.f32.mrf.mxu0 }
 0x141   : > { %v6536_v21 = vadd.f32 %v5088_v12, %v476_v20  ;;  %v6540_v22 = vmul.f32 %v6532_v19, %v6532_v19  ;;  %v514_v53 = vsel %vm513_vm1, %v6544_v23, 0.0 }
 0x142   : > { %v5431_v24 = vpop.f32.mrf.mxu0 }
 0x143   : > { %v6546_v25 = vadd.f32 %v5431_v24, %v5088_v12  ;;  %568 = vrot.lane.b32.xlu1 %v6540_v22, %s6275_s18  ;;  %562 = vrot.lane.b32.xlu0 %v6544_v23, %s6275_s18  ;;  %v6556_v28 = vmul.f32 %v6536_v21, %v6536_v21  ;;  %v523_v56 = vsel %vm513_vm1, %v6540_v22, 0.0 }
 0x144   : > { %v486_v26 = vpop.f32.mrf.mxu0 }
 0x145   : > { %v6552_v27 = vadd.f32 %v5088_v12, %v486_v26  ;;  %v6560_v29 = vmul.f32 %v6546_v25, %v6546_v25  ;;  %v520_v55 = vsel %vm513_vm1, %v6556_v28, 0.0 }
 0x146   : > { %v5434_v30 = vpop.f32.mrf.mxu0 }
 0x147   : > { %v6562_v31 = vadd.f32 %v5434_v30, %v5088_v12  ;;  %566 = vrot.lane.b32.xlu1 %v6556_v28, %s6275_s18  ;;  %572 = vrot.lane.b32.xlu0 %v6560_v29, %s6275_s18  ;;  %v6570_v32 = vmul.f32 %v6552_v27, %v6552_v27  ;;  %v529_v58 = vsel %vm513_vm1, %v6560_v29, 0.0 }
 0x148   : > { %v496_v33 = vpop.f32.mrf.mxu0 }
 0x149   : > { %v6572_v34 = vadd.f32 %v5088_v12, %v496_v33  ;;  %v6576_v35 = vmul.f32 %v6562_v31, %v6562_v31  ;;  %v526_v57 = vsel %vm513_vm1, %v6570_v32, 0.0 }
 0x14b   : > { %570 = vrot.lane.b32.xlu1 %v6570_v32, %s6275_s18  ;;  %576 = vrot.lane.b32.xlu0 %v6576_v35, %s6275_s18  ;;  %v6584_v36 = vmul.f32 %v6572_v34, %v6572_v34  ;;  %v535_v60 = vsel %vm513_vm1, %v6576_v35, 0.0 }
 0x14d   : > { %v532_v59 = vsel %vm513_vm1, %v6584_v36, 0.0 }
 0x14f   : > { %574 = vrot.lane.b32.xlu1 %v6584_v36, %s6275_s18 }
 0x1b1   : > { %v565_v37 = vpop.permute.xlu0 %564 }
 0x1b2   : > { %v589_v38 = vsel %vm513_vm1, %v565_v37, 0.0 }
 0x1b3   : > { %590 = vadd.xlane.f32.xlu0 %v589_v38 }
 0x1b5   : > { %v569_v39 = vpop.permute.xlu1 %568  ;;  %v563_v40 = vpop.permute.xlu0 %562 }
 0x1b6   : > { %v595_v41 = vsel %vm513_vm1, %v569_v39, 0.0  ;;  %v586_v42 = vsel %vm513_vm1, %v563_v40, 0.0 }
 0x1b7   : > { %596 = vadd.xlane.f32.xlu0 %v595_v41  ;;  %587 = vadd.xlane.f32.xlu1 %v586_v42 }
 0x1b9   : > { %v567_v43 = vpop.permute.xlu1 %566  ;;  %v573_v44 = vpop.permute.xlu0 %572 }
 0x1ba   : > { %v592_v45 = vsel %vm513_vm1, %v567_v43, 0.0  ;;  %v601_v46 = vsel %vm513_vm1, %v573_v44, 0.0 }
 0x1bb   : > { %593 = vadd.xlane.f32.xlu0 %v592_v45  ;;  %602 = vadd.xlane.f32.xlu1 %v601_v46 }
 0x1bd   : > { %v571_v47 = vpop.permute.xlu1 %570  ;;  %v577_v48 = vpop.permute.xlu0 %576 }
 0x1be   : > { %v598_v49 = vsel %vm513_vm1, %v571_v47, 0.0  ;;  %v607_v50 = vsel %vm513_vm1, %v577_v48, 0.0  ;;  %v6624_v47 = vstv %s626_s12  ;;  %s6285_s12 = smov 40  }
 0x1bf   : > { %599 = vadd.xlane.f32.xlu0 %v598_v49  ;;  %608 = vadd.xlane.f32.xlu1 %v607_v50 }
 0x1c1   : > { %v575_v51 = vpop.permute.xlu1 %574 }
 0x1c2   : > { %v604_v52 = vsel %vm513_vm1, %v575_v51, 0.0 }
 0x1c3   : > { %605 = vadd.xlane.f32.xlu0 %v604_v52  ;;  %515 = vadd.xlane.f32.xlu1 %v514_v53 }
 0x1c7   : > { %518 = vadd.xlane.f32.xlu0 %v517_v54  ;;  %521 = vadd.xlane.f32.xlu1 %v520_v55 }
 0x1cb   : > { %524 = vadd.xlane.f32.xlu0 %v523_v56  ;;  %527 = vadd.xlane.f32.xlu1 %v526_v57 }
 0x1cf   : > { %530 = vadd.xlane.f32.xlu0 %v529_v58  ;;  %533 = vadd.xlane.f32.xlu1 %v532_v59 }
 0x1d3   : > { %536 = vadd.xlane.f32.xlu0 %v535_v60 }
 0x23c   : > { %v591_v61 = vpop.xlane.xlu0 %590 }
 0x23d   : > { %v611_v62 = vmax.f32 %v591_v61, 1e-24 }
 0x23f   : > { %5817 = vrsqrt.f32 %v611_v62 }
 0x240   : > { %v588_v63 = vpop.xlane.xlu1 %587  ;;  %v597_v0 = vpop.xlane.xlu0 %596 }
 0x241   : > { %v610_v1 = vmax.f32 %v588_v63, 1e-24  ;;  %v613_v2 = vmax.f32 %v597_v0, 1e-24 }
 0x243   : > { %5819 = vrsqrt.f32 %v610_v1 }
 0x244   : > { %5821 = vrsqrt.f32 %v613_v2  ;;  %v603_v3 = vpop.xlane.xlu1 %602  ;;  %v594_v4 = vpop.xlane.xlu0 %593 }
 0x245   : > { %v615_v5 = vmax.f32 %v603_v3, 1e-24  ;;  %v612_v6 = vmax.f32 %v594_v4, 1e-24 }
 0x247   : > { %5823 = vrsqrt.f32 %v615_v5 }
 0x248   : > { %5825 = vrsqrt.f32 %v612_v6  ;;  %v609_v7 = vpop.xlane.xlu1 %608  ;;  %v600_v8 = vpop.xlane.xlu0 %599 }
 0x249   : > { %v617_v9 = vmax.f32 %v609_v7, 1e-24  ;;  %v614_v10 = vmax.f32 %v600_v8, 1e-24 }
 0x24b   : > { %5827 = vrsqrt.f32 %v617_v9 }
 0x24c   : > { %v5818_v11 = vpop.eup %5817  ;;  %5829 = vrsqrt.f32 %v614_v10  ;;  %v606_v12 = vpop.xlane.xlu0 %605 }
 0x24d   : > { %v516_v13 = vpop.xlane.xlu1 %515  ;;  %v616_v15 = vmax.f32 %v606_v12, 1e-24  ;;  %v645_v20 = vmul.f32 %v5818_v11, %v6524_v14 }
 0x24e   : > { %v538_v18 = vmax.f32 %v516_v13, 1e-24 }
 0x24f   : > { %5831 = vrsqrt.f32 %v616_v15  ;;  %658 = vrot.lane.b32.xlu1 %v645_v20, %s6275_s18 }
 0x250   : > { %v5820_v24 = vpop.eup %5819  ;;  %5833 = vrsqrt.f32 %v538_v18  ;;  %v519_v56 = vpop.xlane.xlu0 %518 }
 0x251   : > { %v522_v26 = vpop.xlane.xlu1 %521  ;;  %v5822_v30 = vpop.eup %5821  ;;  %v644_v37 = vmul.f32 %v5820_v24, %v6526_v16  ;;  %v539_v59 = vmax.f32 %v519_v56, 1e-24 }
 0x252   : > { %v540_v33 = vmax.f32 %v522_v26, 1e-24  ;;  %v647_v38 = vmul.f32 %v5822_v30, %v6532_v19 }
 0x253   : > { %656 = vrot.lane.b32.xlu0 %v644_v37, %s6275_s18 }
 0x254   : > { %v5824_v39 = vpop.eup %5823  ;;  %5835 = vrsqrt.f32 %v540_v33  ;;  %749 = vrot.lane.b32.xlu1 %v647_v38, %s6275_s18  ;;  %v525_v57 = vpop.xlane.xlu0 %524 }
 0x255   : > { %v5826_v40 = vpop.eup %5825  ;;  %v649_v41 = vmul.f32 %v5824_v39, %v6546_v25  ;;  %v528_v58 = vpop.xlane.xlu1 %527  ;;  %5837 = vrsqrt.f32 %v539_v59  ;;  %v541_v63 = vmax.f32 %v525_v57, 1e-24 }
 0x256   : > { %v646_v42 = vmul.f32 %v5826_v40, %v6536_v21  ;;  %v542_v60 = vmax.f32 %v528_v58, 1e-24 }
 0x257   : > { %840 = vrot.lane.b32.xlu0 %v649_v41, %s6275_s18 }
 0x258   : > { %v5828_v43 = vpop.eup %5827  ;;  %747 = vrot.lane.b32.xlu1 %v646_v42, %s6275_s18  ;;  %v531_v61 = vpop.xlane.xlu0 %530  ;;  %5839 = vrsqrt.f32 %v542_v60 }
 0x259   : > { %v5830_v44 = vpop.eup %5829  ;;  %v651_v45 = vmul.f32 %v5828_v43, %v6562_v31  ;;  %v534_v62 = vpop.xlane.xlu1 %533  ;;  %5841 = vrsqrt.f32 %v541_v63  ;;  %v543_v1 = vmax.f32 %v531_v61, 1e-24 }
 0x25a   : > { %v648_v46 = vmul.f32 %v5830_v44, %v6552_v27  ;;  %v544_v0 = vmax.f32 %v534_v62, 1e-24 }
 0x25b   : > { %931 = vrot.lane.b32.xlu0 %v651_v45, %s6275_s18 }
 0x25c   : > { %v5832_v48 = vpop.eup %5831  ;;  %838 = vrot.lane.b32.xlu1 %v648_v46, %s6275_s18  ;;  %v537_v2 = vpop.xlane.xlu0 %536  ;;  %5843 = vrsqrt.f32 %v544_v0 }
 0x25d   : > { %v5834_v49 = vpop.eup %5833  ;;  %v650_v50 = vmul.f32 %v5832_v48, %v6572_v34  ;;  %5845 = vrsqrt.f32 %v543_v1  ;;  %v545_v3 = vmax.f32 %v537_v2, 1e-24 }
 0x25e   : > { %v628_v51 = vmul.f32 %v5834_v49, %v6624_v47 }
 0x25f   : > { %1530 = vrot.lane.b32.xlu0 %v6530_v17, %s6276_s29  ;;  %5847 = vrsqrt.f32 %v545_v3 }
 0x260   : > { %929 = vrot.lane.b32.xlu1 %v650_v50, %s6275_s18  ;;  %v636_v52 = vmul.f32 %v628_v51, %v6526_v16  ;;  %s5195_s18 = sld [smem:[#allocation2 + $0x3]] }
 0x261   : > { %v5836_v53 = vpop.eup %5835 }
 0x262   : > { %5439 = vmatprep.mubr.msk.f32.mxu0 %vm513_vm1, %v636_v52  ;;  %v630_v54 = vmul.f32 %v5836_v53, %v6624_v47  ;;  %v5838_v4 = vpop.eup %5837 }
 0x263   : > { %1534 = vrot.lane.b32.xlu0 %v6540_v22, %s6276_s29  ;;  %v629_v7 = vmul.f32 %v5838_v4, %v6624_v47 }
 0x264   : > { %1528 = vrot.lane.b32.xlu1 %v6544_v23, %s6276_s29  ;;  %v638_v55 = vmul.f32 %v630_v54, %v6536_v21 }
 0x265   : > { %v5840_v6 = vpop.eup %5839  ;;  %v637_v13 = vmul.f32 %v629_v7, %v6524_v14 }
 0x266   : > { %5446 = vmatprep.mubr.msk.f32.mxu1 %vm513_vm1, %v638_v55  ;;  %v5842_v9 = vpop.eup %5841  ;;  %v632_v11 = vmul.f32 %v5840_v6, %v6624_v47 }
 0x267   : > { %1466 = vrot.lane.b32.xlu0 %v6530_v17, %s6277_s13  ;;  %v631_v18 = vmul.f32 %v5842_v9, %v6624_v47 }
 0x268   : > { %1464 = vrot.lane.b32.xlu1 %v6544_v23, %s6277_s13  ;;  %v640_v26 = vmul.f32 %v632_v11, %v6552_v27 }
 0x269   : > { %v5844_v12 = vpop.eup %5843  ;;  %v639_v37 = vmul.f32 %v631_v18, %v6532_v19 }
 0x26a   : > { %v5846_v20 = vpop.eup %5845  ;;  %v634_v30 = vmul.f32 %v5844_v12, %v6624_v47 }
 0x26b   : > { %1538 = vrot.lane.b32.xlu0 %v6560_v29, %s6276_s29  ;;  %v633_v38 = vmul.f32 %v5846_v20, %v6624_v47 }
 0x26c   : > { %1532 = vrot.lane.b32.xlu1 %v6556_v28, %s6276_s29  ;;  %v5848_v39 = vpop.eup %5847  ;;  %v642_v41 = vmul.f32 %v634_v30, %v6572_v34 }
 0x26d   : > { %v641_v43 = vmul.f32 %v633_v38, %v6546_v25  ;;  %v635_v44 = vmul.f32 %v5848_v39, %v6624_v47  ;;  %v653_v39 = vld [vmem:[#allocation9 + $0x8] sm:$0xff] }
 0x26f   : > { %1470 = vrot.lane.b32.xlu0 %v6540_v22, %s6277_s13  ;;  %v643_v49 = vmul.f32 %v635_v44, %v6562_v31 }
 0x270   : > { %1468 = vrot.lane.b32.xlu1 %v6556_v28, %s6277_s13 }
 0x273   : > { %1542 = vrot.lane.b32.xlu0 %v6576_v35, %s6276_s29 }
 0x274   : > { %1536 = vrot.lane.b32.xlu1 %v6570_v32, %s6276_s29 }
 0x277   : > { %1474 = vrot.lane.b32.xlu0 %v6560_v29, %s6277_s13 }
 0x278   : > { %1472 = vrot.lane.b32.xlu1 %v6570_v32, %s6277_s13 }
 0x27b   : > { %1476 = vrot.lane.b32.xlu0 %v6584_v36, %s6277_s13 }
 0x27c   : > { %1540 = vrot.lane.b32.xlu1 %v6584_v36, %s6276_s29 }
 0x280   : > { %1478 = vrot.lane.b32.xlu1 %v6576_v35, %s6277_s13 }
 0x2c1   : > { %v659_v5 = vpop.permute.xlu1 %658 }
 0x2c2   : > { %5435 = vmatprep.subr.msk.mxu0 %vm513_vm1, %v659_v5 }
 0x2c3   : > { %5436 = vmatpush3.xpose.msk.msra.mxu0 %vm513_vm1, %v659_v5 }
 0x2c5   : > { %v657_v8 = vpop.permute.xlu0 %656 }
 0x2c6   : > { %v750_v10 = vpop.permute.xlu1 %749  ;;  %5437 = vmatprep.subr.msk.mxu0 %vm513_vm1, %v657_v8 }
 0x2c7   : > { %5442 = vmatprep.subr.msk.mxu1 %vm513_vm1, %v750_v10  ;;  %5438 = vmatpush3.xpose.msk.msra.mxu0 %vm513_vm1, %v657_v8 }
 0x2c8   : > { %5443 = vmatpush3.xpose.msk.msra.mxu1 %vm513_vm1, %v750_v10 }
 0x2c9   : > { %v841_v15 = vpop.permute.xlu0 %840 }
 0x2ca   : > { %v748_v24 = vpop.permute.xlu1 %747  ;;  %5440 = vmatmul.mubr.msk.f32.vlgmr.msra.gmra.mxu0 %vm513_vm1, %v637_v13  ;;  %5449 = vmatprep.subr.msk.mxu0 %vm513_vm1, %v841_v15 }
 0x2cb   : > { %5444 = vmatprep.subr.msk.mxu1 %vm513_vm1, %v748_v24  ;;  %5450 = vmatpush3.xpose.msk.msra.mxu0 %vm513_vm1, %v841_v15 }
 0x2cc   : > { %5445 = vmatpush3.xpose.msk.msra.mxu1 %vm513_vm1, %v748_v24  ;;  %5453 = vmatprep.mubr.msk.f32.mxu0 %vm513_vm1, %v640_v26 }
 0x2cd   : > { %v932_v33 = vpop.permute.xlu0 %931 }
 0x2ce   : > { %v839_v40 = vpop.permute.xlu1 %838  ;;  %5456 = vmatprep.subr.msk.mxu1 %vm513_vm1, %v932_v33 }
 0x2cf   : > { %5447 = vmatmul.mubr.msk.f32.vlgmr.msra.gmra.mxu1 %vm513_vm1, %v639_v37  ;;  %5451 = vmatprep.subr.msk.mxu0 %vm513_vm1, %v839_v40 }
 0x2d0   : > { %5452 = vmatpush3.xpose.msk.msra.mxu0 %vm513_vm1, %v839_v40  ;;  %5457 = vmatpush3.xpose.msk.msra.mxu1 %vm513_vm1, %v932_v33 }
 0x2d1   : > { %5460 = vmatprep.mubr.msk.f32.mxu1 %vm513_vm1, %v642_v41  ;;  %v1531_v42 = vpop.permute.xlu0 %1530  ;;  %v6734_v41 = vld [vmem:[#allocation9] sm:$0xff] }
 0x2d2   : > { %v930_v45 = vpop.permute.xlu1 %929  ;;  %v1555_v46 = vsel %vm513_vm1, %v1531_v42, 0.0 }
 0x2d3   : > { %5454 = vmatmul.mubr.msk.f32.vlgmr.msra.gmra.mxu0 %vm513_vm1, %v641_v43  ;;  %5458 = vmatprep.subr.msk.mxu1 %vm513_vm1, %v930_v45 }
 0x2d4   : > { %1556 = vadd.xlane.f32.xlu1 %v1555_v46  ;;  %5459 = vmatpush3.xpose.msk.msra.mxu1 %vm513_vm1, %v930_v45 }
 0x2d5   : > { %v1535_v48 = vpop.permute.xlu0 %1534 }
 0x2d6   : > { %v1529_v50 = vpop.permute.xlu1 %1528  ;;  %v1561_v51 = vsel %vm513_vm1, %v1535_v48, 0.0 }
 0x2d7   : > { %5461 = vmatmul.mubr.msk.f32.vlgmr.msra.gmra.mxu1 %vm513_vm1, %v643_v49  ;;  %v1552_v47 = vsel %vm513_vm1, %v1529_v50, 0.0 }
 0x2d8   : > { %1562 = vadd.xlane.f32.xlu1 %v1561_v51  ;;  %1553 = vadd.xlane.f32.xlu0 %v1552_v47 }
 0x2d9   : > { %v1467_v52 = vpop.permute.xlu0 %1466 }
 0x2da   : > { %v1465_v53 = vpop.permute.xlu1 %1464  ;;  %v1491_v54 = vsel %vm513_vm1, %v1467_v52, 0.0 }
 0x2db   : > { %v1488_v55 = vsel %vm513_vm1, %v1465_v53, 0.0 }
 0x2dc   : > { %1492 = vadd.xlane.f32.xlu1 %v1491_v54  ;;  %1489 = vadd.xlane.f32.xlu0 %v1488_v55 }
 0x2dd   : > { %v1539_v56 = vpop.permute.xlu0 %1538 }
 0x2de   : > { %v1533_v57 = vpop.permute.xlu1 %1532  ;;  %v1567_v58 = vsel %vm513_vm1, %v1539_v56, 0.0 }
 0x2df   : > { %v1558_v59 = vsel %vm513_vm1, %v1533_v57, 0.0 }
 0x2e0   : > { %1568 = vadd.xlane.f32.xlu1 %v1567_v58  ;;  %1559 = vadd.xlane.f32.xlu0 %v1558_v59 }
 0x2e1   : > { %v1471_v60 = vpop.permute.xlu0 %1470 }
 0x2e2   : > { %v1469_v61 = vpop.permute.xlu1 %1468  ;;  %v1497_v62 = vsel %vm513_vm1, %v1471_v60, 0.0 }
 0x2e3   : > { %v1494_v63 = vsel %vm513_vm1, %v1469_v61, 0.0 }
 0x2e4   : > { %1498 = vadd.xlane.f32.xlu1 %v1497_v62  ;;  %1495 = vadd.xlane.f32.xlu0 %v1494_v63 }
 0x2e5   : > { %v1543_v0 = vpop.permute.xlu0 %1542 }
 0x2e6   : > { %v1537_v1 = vpop.permute.xlu1 %1536  ;;  %v1573_v2 = vsel %vm513_vm1, %v1543_v0, 0.0 }
 0x2e7   : > { %v1564_v3 = vsel %vm513_vm1, %v1537_v1, 0.0 }
 0x2e8   : > { %1574 = vadd.xlane.f32.xlu1 %v1573_v2  ;;  %1565 = vadd.xlane.f32.xlu0 %v1564_v3 }
 0x2e9   : > { %v1475_v4 = vpop.permute.xlu0 %1474 }
 0x2ea   : > { %v1473_v5 = vpop.permute.xlu1 %1472  ;;  %v1503_v6 = vsel %vm513_vm1, %v1475_v4, 0.0 }
 0x2eb   : > { %v1500_v7 = vsel %vm513_vm1, %v1473_v5, 0.0 }
 0x2ec   : > { %1504 = vadd.xlane.f32.xlu1 %v1503_v6  ;;  %1501 = vadd.xlane.f32.xlu0 %v1500_v7 }
 0x2ed   : > { %v1477_v8 = vpop.permute.xlu0 %1476 }
 0x2ee   : > { %v1541_v9 = vpop.permute.xlu1 %1540  ;;  %v1506_v10 = vsel %vm513_vm1, %v1477_v8, 0.0 }
 0x2ef   : > { %v1570_v11 = vsel %vm513_vm1, %v1541_v9, 0.0  ;;  %v6774_v9 = vstv %s5121_s23 }
 0x2f0   : > { %1507 = vadd.xlane.f32.xlu1 %v1506_v10  ;;  %1571 = vadd.xlane.f32.xlu0 %v1570_v11 }
 0x2f2   : > { %v1479_v12 = vpop.permute.xlu1 %1478 }
 0x2f3   : > { %v1509_v13 = vsel %vm513_vm1, %v1479_v12, 0.0 }
 0x2f4   : > { %1510 = vadd.xlane.f32.xlu0 %v1509_v13 }
 0x301   : > { %1111 = vrot.lane.b32.xlu1 %v6524_v14, %s6278_s14 }
 0x35d   : > { %v1557_v15 = vpop.xlane.xlu1 %1556 }
 0x35e   : > { %v1577_v60 = vmax.f32 %v1557_v15, 1e-24 }
 0x360   : > { %5849 = vrsqrt.f32 %v1577_v60 }
 0x361   : > { %v6720_v18 = vpop.xlane.xlu1 %1562  ;;  %v1554_v55 = vpop.xlane.xlu0 %1553 }
 0x362   : > { %v1576_v0 = vmax.f32 %v1554_v55, 1e-24  ;;  %v1579_v10 = vmax.f32 %v6720_v18, 1e-24 }
 0x364   : > { %5851 = vrsqrt.f32 %v1576_v0 }
 0x365   : > { %v6722_v20 = vpop.xlane.xlu1 %1492  ;;  %v1490_v61 = vpop.xlane.xlu0 %1489 }
 0x366   : > { %v1512_v1 = vmax.f32 %v1490_v61, 1e-24  ;;  %v1513_v11 = vmax.f32 %v6722_v20, 1e-24 }
 0x368   : > { %5853 = vrsqrt.f32 %v1512_v1 }
 0x369   : > { %v6724_v24 = vpop.xlane.xlu1 %1568  ;;  %v1560_v3 = vpop.xlane.xlu0 %1559 }
 0x36a   : > { %v1578_v4 = vmax.f32 %v1560_v3, 1e-24  ;;  %v1581_v18 = vmax.f32 %v6724_v24, 1e-24 }
 0x36c   : > { %5855 = vrsqrt.f32 %v1578_v4 }
 0x36d   : > { %v6726_v26 = vpop.xlane.xlu1 %1498  ;;  %v5850_v5 = vpop.eup %5849  ;;  %5857 = vrsqrt.f32 %v1579_v10 }
 0x36e   : > { %v1611_v7 = vmul.f32 %v5850_v5, %v6524_v14  ;;  %5859 = vrsqrt.f32 %v1513_v11 }
 0x36f   : > { %5861 = vrsqrt.f32 %v1581_v18 }
 0x371   : > { %v6728_v30 = vpop.xlane.xlu1 %1574  ;;  %v5852_v6 = vpop.eup %5851 }
 0x372   : > { %v1610_v12 = vmul.f32 %v5852_v6, %v6526_v16 }
 0x375   : > { %v6730_v33 = vpop.xlane.xlu1 %1504  ;;  %v5854_v8 = vpop.eup %5853 }
 0x376   : > { %v1594_v13 = vmul.f32 %v5854_v8, %v6774_v9 }
 0x378   : > { %v1602_v15 = vmul.f32 %v1594_v13, %v6526_v16 }
 0x379   : > { %v6732_v37 = vpop.xlane.xlu1 %1507 }
 0x37d   : > { %v1112_v38 = vpop.permute.xlu1 %1111 }
 0x37e   : > { %5463 = vmatprep.subr.mxu0 %v1112_v38 }
 0x37f   : > { %5464 = vmatpush3.msra.mxu0 %v1112_v38  ;;  %v5856_v38 = vpop.eup %5855 }
 0x380   : > { %v1612_v20 = vmul.f32 %v5856_v38, %v6536_v21 }
 0x38a   : > { %v5441_v40 = vpop.f32.mrf.mxu0 }
 0x38b   : > { %v6736_v42 = vadd.f32 %v5441_v40, %v653_v39 }
 0x38c   : > { %v736_v43 = vpop.f32.mrf.mxu0 }
 0x38d   : > { %v6739_v44 = vadd.f32 %v736_v43, %v6734_v41  ;;  %v1022_v45 = vsel %vm1018_vm2, %v6736_v42, -inf }
 0x38e   : > { %1023 = vmax.xlane.f32.xlu1 %v1022_v45 }
 0x38f   : > { %v5448_v46 = vpop.f32.mrf.mxu1  ;;  %v1019_v48 = vsel %vm1018_vm2, %v6739_v44, -inf }
 0x390   : > { %v6745_v49 = vadd.f32 %v5448_v46, %v653_v39  ;;  %1020 = vmax.xlane.f32.xlu0 %v1019_v48 }
 0x391   : > { %v827_v50 = vpop.f32.mrf.mxu1 }
 0x392   : > { %v6748_v51 = vadd.f32 %v827_v50, %v6734_v41  ;;  %v1028_v47 = vsel %vm1018_vm2, %v6745_v49, -inf  ;;  %v1496_v50 = vpop.xlane.xlu0 %1495 }
 0x393   : > { %1029 = vmax.xlane.f32.xlu1 %v1028_v47  ;;  %v5455_v52 = vpop.f32.mrf.mxu0  ;;  %v1514_v47 = vmax.f32 %v1496_v50, 1e-24 }
 0x394   : > { %v6752_v53 = vadd.f32 %v5455_v52, %v653_v39  ;;  %v1025_v54 = vsel %vm1018_vm2, %v6748_v51, -inf }
 0x395   : > { %v918_v56 = vpop.f32.mrf.mxu0  ;;  %1026 = vmax.xlane.f32.xlu0 %v1025_v54  ;;  %5863 = vrsqrt.f32 %v1514_v47 }
 0x396   : > { %v6757_v57 = vadd.f32 %v918_v56, %v6734_v41  ;;  %v1034_v58 = vsel %vm1018_vm2, %v6752_v53, -inf  ;;  %v1566_v60 = vpop.xlane.xlu0 %1565 }
 0x397   : > { %v5462_v59 = vpop.f32.mrf.mxu1 }
 0x398   : > { %v6761_v62 = vadd.f32 %v5462_v59, %v653_v39  ;;  %v1031_v63 = vsel %vm1018_vm2, %v6757_v57, -inf  ;;  %v5858_v39 = vpop.eup %5857 }
 0x399   : > { %1035 = vmax.xlane.f32.xlu0 %v1034_v58  ;;  %v5860_v40 = vpop.eup %5859  ;;  %v1613_v43 = vmul.f32 %v5858_v39, %v6532_v19  ;;  %v1009_v52 = vpop.f32.mrf.mxu1 }
 0x39a   : > { %v1040_v2 = vsel %vm1018_vm2, %v6761_v62, -inf  ;;  %v1595_v24 = vmul.f32 %v5860_v40, %v6774_v9  ;;  %v5862_v46 = vpop.eup %5861  ;;  %v6803_v54 = vadd.f32 %v1009_v52, %v6734_v41  ;;  %v6810_v61 = vpop.xlane.xlu0 %1501 }
 0x39b   : > { %v1615_v48 = vmul.f32 %v5862_v46, %v6546_v25  ;;  %v1580_v46 = vmax.f32 %v1566_v60, 1e-24 }
 0x39c   : > { %v1603_v45 = vmul.f32 %v1595_v24, %v6524_v14  ;;  %v1037_v55 = vsel %vm1018_vm2, %v6803_v54, -inf }
 0x39d   : > { %1032 = vmax.xlane.f32.xlu0 %v1031_v63 }
 0x39e   : > { %v6812_v63 = vpop.xlane.xlu0 %1571 }
 0x3a1   : > { %1041 = vmax.xlane.f32.xlu0 %v1040_v2 }
 0x3a2   : > { %v5864_v56 = vpop.eup %5863  ;;  %v6814_v0 = vpop.xlane.xlu0 %1510 }
 0x3a3   : > { %v1596_v58 = vmul.f32 %v5864_v56, %v6774_v9 }
 0x3a4   : > { %1200 = vrot.lane.b32.xlu1 %v6532_v19, %s6278_s14 }
 0x3a5   : > { %v1604_v59 = vmul.f32 %v1596_v58, %v6536_v21 }
 0x3a8   : > { %1289 = vrot.lane.b32.xlu1 %v6546_v25, %s6278_s14 }
 0x3ac   : > { %1287 = vrot.lane.b32.xlu1 %v6552_v27, %s6278_s14 }
 0x3b0   : > { %1631 = vrot.lane.b32.xlu1 %v1611_v7, %s6276_s29 }
 0x3b4   : > { %1629 = vrot.lane.b32.xlu1 %v1610_v12, %s6276_s29 }
 0x3b7   : > { %1109 = vrot.lane.b32.xlu0 %v6526_v16, %s6278_s14 }
 0x3b8   : > { %1623 = vrot.lane.b32.xlu1 %v1602_v15, %s6277_s13 }
 0x3bb   : > { %1198 = vrot.lane.b32.xlu0 %v6536_v21, %s6278_s14 }
 0x3bc   : > { %1724 = vrot.lane.b32.xlu1 %v1612_v20, %s6276_s29 }
 0x3bf   : > { %1378 = vrot.lane.b32.xlu0 %v6562_v31, %s6278_s14 }
 0x3c3   : > { %1376 = vrot.lane.b32.xlu0 %v6572_v34, %s6278_s14  ;;  %s7531_s14 = scalar_lea.vmem [#allocation12], %s5083_s17  ;;  %s5238_s17 = sshll.u32 %s6350_s28, 10 }
 0x3c4   : > { %s4956_s23 = sshll.u32 %s7531_s14, 4  ;;  %s4942_s28 = scalar_lea.sflag [#allocation4], %s6485_s0  ;;  %s7560_s23 = int_to_ptr.vmem [resolvable:$true] %s4956_s23 }
 0x3c7   : > { %1726 = vrot.lane.b32.xlu0 %v1613_v43, %s6276_s29 }
 0x3cb   : > { %1625 = vrot.lane.b32.xlu0 %v1603_v45, %s6277_s13 }
 0x3cf   : > { %1821 = vrot.lane.b32.xlu0 %v1615_v48, %s6276_s29 }
 0x3e0   : > { %1038 = vmax.xlane.f32.xlu1 %v1037_v55 }
 0x3f1   : > { %1718 = vrot.lane.b32.xlu1 %v1604_v59, %s6277_s13 }
 0x417   : > { %v1024_v41 = vpop.xlane.xlu1 %1023 }
 0x418   : > { %v1044_v1 = vsub.f32 %v6736_v42, %v1024_v41  ;;  %v1515_v41 = vmax.f32 %v6726_v26, 1e-24 }
 0x419   : > { %v1021_v2 = vpop.xlane.xlu0 %1020 }
 0x41a   : > { %v1053_v3 = vmul.f32 1.442695, %v1044_v1  ;;  %v1043_v4 = vsub.f32 %v6739_v44, %v1021_v2 }
 0x41c   : > { %5865 = vpow2.f32 %v1053_v3  ;;  %v1051_v5 = vmul.f32 1.442695, %v1043_v4  ;;  %v1030_v6 = vpop.xlane.xlu1 %1029  ;;  %v1583_v4 = vmax.f32 %v6728_v30, 1e-24 }
 0x41d   : > { %v1046_v7 = vsub.f32 %v6745_v49, %v1030_v6 }
 0x41e   : > { %5867 = vpow2.f32 %v1051_v5  ;;  %v1027_v8 = vpop.xlane.xlu0 %1026  ;;  %v1517_v5 = vmax.f32 %v6730_v33, 1e-24 }
 0x41f   : > { %v1057_v10 = vmul.f32 1.442695, %v1046_v7  ;;  %v1045_v11 = vsub.f32 %v6748_v51, %v1027_v8  ;;  %v1518_v7 = vmax.f32 %v6732_v37, 1e-24 }
 0x420   : > { %v1201_v12 = vpop.permute.xlu1 %1200 }
 0x421   : > { %5869 = vpow2.f32 %v1057_v10  ;;  %v1055_v13 = vmul.f32 1.442695, %v1045_v11  ;;  %5470 = vmatprep.subr.mxu1 %v1201_v12 }
 0x422   : > { %v1036_v15 = vpop.xlane.xlu0 %1035  ;;  %5471 = vmatpush3.msra.mxu1 %v1201_v12 }
 0x423   : > { %v1048_v42 = vsub.f32 %v6752_v53, %v1036_v15  ;;  %5871 = vpow2.f32 %v1055_v13 }
 0x424   : > { %v6833_v48 = vpop.permute.xlu1 %1289 }
 0x425   : > { %v1061_v44 = vmul.f32 1.442695, %v1048_v42 }
 0x426   : > { %v1033_v38 = vpop.xlane.xlu0 %1032 }
 0x427   : > { %5873 = vpow2.f32 %v1061_v44  ;;  %v1047_v18 = vsub.f32 %v6757_v57, %v1033_v38 }
 0x428   : > { %v6863_v8 = vpop.permute.xlu1 %1287 }
 0x429   : > { %v6822_v49 = vpop.eup %5865  ;;  %v1059_v20 = vmul.f32 1.442695, %v1047_v18 }
 0x42a   : > { %v1042_v39 = vpop.xlane.xlu0 %1041  ;;  %v1070_v51 = vsel %vm1018_vm2, %v6822_v49, 0.0 }
 0x42b   : > { %v6826_v40 = vpop.eup %5867  ;;  %5875 = vpow2.f32 %v1059_v20  ;;  %v1050_v43 = vsub.f32 %v6761_v62, %v1042_v39  ;;  %1071 = vadd.xlane.f32.xlu0 %v1070_v51 }
 0x42c   : > { %v1067_v53 = vsel %vm1018_vm2, %v6826_v40, 0.0  ;;  %v6867_v13 = vpop.permute.xlu1 %1631 }
 0x42d   : > { %v1065_v24 = vmul.f32 1.442695, %v1050_v43  ;;  %1068 = vadd.xlane.f32.xlu1 %v1067_v53 }
 0x42e   : > { %v6831_v45 = vpop.eup %5869  ;;  %v1110_v57 = vpop.permute.xlu0 %1109 }
 0x42f   : > { %5877 = vpow2.f32 %v1065_v24  ;;  %5465 = vmatprep.subr.mxu0 %v1110_v57  ;;  %v1076_v50 = vsel %vm1018_vm2, %v6831_v45, 0.0  ;;  %v1516_v24 = vmax.f32 %v6810_v61, 1e-24 }
 0x430   : > { %5466 = vmatpush3.msra.mxu0 %v1110_v57  ;;  %v6837_v47 = vpop.eup %5871  ;;  %5879 = vrsqrt.f32 %v1580_v46  ;;  %v6873_v42 = vpop.permute.xlu1 %1629  ;;  %v1582_v46 = vmax.f32 %v6812_v63, 1e-24 }
 0x431   : > { %5477 = vmatprep.subr.mxu0 %v6833_v48  ;;  %1077 = vadd.xlane.f32.xlu1 %v1076_v50  ;;  %v1073_v55 = vsel %vm1018_vm2, %v6837_v47, 0.0  ;;  %5881 = vrsqrt.f32 %v1515_v41  ;;  %v1519_v50 = vmax.f32 %v6814_v0, 1e-24 }
 0x432   : > { %v1199_v62 = vpop.permute.xlu0 %1198  ;;  %5883 = vrsqrt.f32 %v1583_v4 }
 0x433   : > { %5472 = vmatprep.subr.mxu1 %v1199_v62  ;;  %5885 = vrsqrt.f32 %v1517_v5 }
 0x434   : > { %v6840_v52 = vpop.eup %5873  ;;  %5473 = vmatpush3.msra.mxu1 %v1199_v62  ;;  %5887 = vrsqrt.f32 %v1518_v7  ;;  %v6879_v20 = vpop.permute.xlu1 %1623 }
 0x435   : > { %v1082_v56 = vsel %vm1018_vm2, %v6840_v52, 0.0  ;;  %1074 = vadd.xlane.f32.xlu1 %v1073_v55 }
 0x436   : > { %v6846_v58 = vpop.permute.xlu0 %1378  ;;  %1083 = vadd.xlane.f32.xlu0 %v1082_v56 }
 0x437   : > { %5484 = vmatprep.subr.mxu1 %v6846_v58 }
 0x438   : > { %v6849_v59 = vpop.eup %5875  ;;  %v6882_v39 = vpop.permute.xlu1 %1724 }
 0x439   : > { %v1079_v60 = vsel %vm1018_vm2, %v6849_v59, 0.0 }
 0x43a   : > { %1080 = vadd.xlane.f32.xlu0 %v1079_v60 }
 0x43c   : > { %v6854_v1 = vpop.eup %5877 }
 0x43d   : > { %v1088_v2 = vsel %vm1018_vm2, %v6854_v1, 0.0  ;;  %v5880_v3 = vpop.eup %5879 }
 0x43e   : > { %1089 = vadd.xlane.f32.xlu0 %v1088_v2  ;;  %v1614_v6 = vmul.f32 %v5880_v3, %v6552_v27  ;;  %v5882_v26 = vpop.eup %5881  ;;  %v1377_v2 = vpop.permute.xlu0 %1376 }
 0x43f   : > { %v1597_v10 = vmul.f32 %v5882_v26, %v6774_v9  ;;  %v5884_v11 = vpop.eup %5883 }
 0x440   : > { %v5886_v30 = vpop.eup %5885  ;;  %v1617_v33 = vmul.f32 %v5884_v11, %v6562_v31 }
 0x441   : > { %v1605_v12 = vmul.f32 %v1597_v10, %v6532_v19  ;;  %v1599_v37 = vmul.f32 %v5886_v30, %v6774_v9  ;;  %v5888_v15 = vpop.eup %5887 }
 0x442   : > { %v1600_v38 = vmul.f32 %v5888_v15, %v6774_v9  ;;  %v6900_v3 = vpop.permute.xlu0 %1726 }
 0x443   : > { %v1607_v44 = vmul.f32 %v1599_v37, %v6546_v25 }
 0x444   : > { %v1608_v18 = vmul.f32 %v1600_v38, %v6572_v34 }
 0x446   : > { %1819 = vrot.lane.b32.xlu1 %v1614_v6, %s6276_s29  ;;  %v1626_v4 = vpop.permute.xlu0 %1625 }
 0x44a   : > { %v1822_v5 = vpop.permute.xlu0 %1821 }
 0x454   : > { %1720 = vrot.lane.b32.xlu0 %v1605_v12, %s6277_s13 }
 0x458   : > { %1916 = vrot.lane.b32.xlu0 %v1617_v33, %s6276_s29 }
 0x45c   : > { %1815 = vrot.lane.b32.xlu0 %v1607_v44, %s6277_s13 }
 0x460   : > { %1908 = vrot.lane.b32.xlu0 %v1608_v18, %s6277_s13 }
 0x469   : > { %v1039_v51 = vpop.xlane.xlu1 %1038 }
 0x46a   : > { %v1049_v43 = vsub.f32 %v6803_v54, %v1039_v51 }
 0x46c   : > { %v1063_v53 = vmul.f32 1.442695, %v1049_v43 }
 0x46d   : > { %v6902_v6 = vpop.permute.xlu1 %1718 }
 0x46e   : > { %5889 = vpow2.f32 %v1063_v53 }
 0x46f   : > { %5891 = vrsqrt.f32 %v1516_v24 }
 0x470   : > { %5893 = vrsqrt.f32 %v1582_v46 }
 0x471   : > { %5895 = vrsqrt.f32 %v1519_v50 }
 0x47b   : > { %v6886_v57 = vpop.eup %5889 }
 0x47c   : > { %v1085_v62 = vsel %vm1018_vm2, %v6886_v57, 0.0  ;;  %v5892_v55 = vpop.eup %5891 }
 0x47d   : > { %1086 = vadd.xlane.f32.xlu1 %v1085_v62  ;;  %v1598_v54 = vmul.f32 %v5892_v55, %v6774_v9  ;;  %v5894_v56 = vpop.eup %5893 }
 0x47e   : > { %v5896_v61 = vpop.eup %5895  ;;  %v1616_v41 = vmul.f32 %v5894_v56, %v6572_v34 }
 0x47f   : > { %v1606_v60 = vmul.f32 %v1598_v54, %v6552_v27  ;;  %v1601_v63 = vmul.f32 %v5896_v61, %v6774_v9  ;;  %v1620_v54 = vld [vmem:[#allocation9 + $0x18] sm:$0xff] }
 0x481   : > { %v1609_v0 = vmul.f32 %v1601_v63, %v6562_v31 }
 0x48e   : > { %1813 = vrot.lane.b32.xlu1 %v1606_v60, %s6277_s13  ;;  %v1619_v60 = vld [vmem:[#allocation9 + $0x10] sm:$0xff] }
 0x492   : > { %1914 = vrot.lane.b32.xlu1 %v1616_v41, %s6276_s29 }
 0x496   : > { %1910 = vrot.lane.b32.xlu1 %v1609_v0, %s6277_s13 }
 0x4b4   : > { %v1072_v7 = vpop.xlane.xlu0 %1071 }
 0x4b5   : > { %5897 = vrcp.f32 %v1072_v7 }
 0x4b6   : > { %v1069_v26 = vpop.xlane.xlu1 %1068 }
 0x4b7   : > { %5899 = vrcp.f32 %v1069_v26 }
 0x4ba   : > { %v1078_v10 = vpop.xlane.xlu1 %1077 }
 0x4bb   : > { %5901 = vrcp.f32 %v1078_v10 }
 0x4be   : > { %v1075_v9 = vpop.xlane.xlu1 %1074 }
 0x4bf   : > { %v1084_v11 = vpop.xlane.xlu0 %1083  ;;  %5903 = vrcp.f32 %v1075_v9 }
 0x4c0   : > { %5905 = vrcp.f32 %v1084_v11 }
 0x4c2   : > { %v5898_v12 = vpop.eup %5897 }
 0x4c3   : > { %v1081_v30 = vpop.xlane.xlu0 %1080  ;;  %v1100_v15 = vmul.f32 %v5898_v12, %v6822_v49 }
 0x4c4   : > { %v5900_v33 = vpop.eup %5899  ;;  %5907 = vrcp.f32 %v1081_v30 }
 0x4c5   : > { %v1099_v37 = vmul.f32 %v5900_v33, %v6826_v40 }
 0x4c7   : > { %5467 = vmatprep.mubr.msk.f32.mxu0 %vm1018_vm2, %v1099_v37 }
 0x4c8   : > { %5468 = vmatmul.mubr.msk.f32.vlgmr.msra.gmra.mxu0 %vm1018_vm2, %v1100_v15  ;;  %v5902_v44 = vpop.eup %5901 }
 0x4c9   : > { %5478 = vmatpush3.msra.mxu0 %v6833_v48  ;;  %v1102_v40 = vmul.f32 %v5902_v44, %v6831_v45  ;;  %v1820_v45 = vpop.permute.xlu1 %1819 }
 0x4ca   : > { %5479 = vmatprep.subr.mxu0 %v6863_v8 }
 0x4cb   : > { %5480 = vmatpush3.msra.mxu0 %v6863_v8 }
 0x4cc   : > { %v5904_v38 = vpop.eup %5903  ;;  %5491 = vmatprep.subr.msk.mxu0 %vm513_vm1, %v6867_v13 }
 0x4cd   : > { %v1101_v18 = vmul.f32 %v5904_v38, %v6837_v47  ;;  %v5906_v49 = vpop.eup %5905  ;;  %v1090_v47 = vpop.xlane.xlu0 %1089 }
 0x4ce   : > { %v1104_v8 = vmul.f32 %v5906_v49, %v6840_v52  ;;  %5909 = vrcp.f32 %v1090_v47 }
 0x4cf   : > { %5474 = vmatprep.mubr.msk.f32.mxu1 %vm1018_vm2, %v1101_v18 }
 0x4d0   : > { %5475 = vmatmul.mubr.msk.f32.vlgmr.msra.gmra.mxu1 %vm1018_vm2, %v1102_v40 }
 0x4d1   : > { %v5908_v51 = vpop.eup %5907  ;;  %5485 = vmatpush3.msra.mxu1 %v6846_v58  ;;  %v1721_v52 = vpop.permute.xlu0 %1720 }
 0x4d2   : > { %5486 = vmatprep.subr.mxu1 %v1377_v2  ;;  %v1103_v48 = vmul.f32 %v5908_v51, %v6849_v59 }
 0x4d3   : > { %5487 = vmatpush3.msra.mxu1 %v1377_v2 }
 0x4d4   : > { %5481 = vmatprep.mubr.msk.f32.mxu0 %vm1018_vm2, %v1103_v48  ;;  %5498 = vmatprep.subr.msk.mxu1 %vm513_vm1, %v6900_v3 }
 0x4d5   : > { %5482 = vmatmul.mubr.msk.f32.vlgmr.msra.gmra.mxu0 %vm1018_vm2, %v1104_v8  ;;  %v1917_v58 = vpop.permute.xlu0 %1916 }
 0x4d6   : > { %5492 = vmatpush3.xpose.msk.msra.mxu0 %vm513_vm1, %v6867_v13  ;;  %5495 = vmatprep.mubr.msk.f32.mxu0 %vm513_vm1, %v6879_v20 }
 0x4d7   : > { %5493 = vmatprep.subr.msk.mxu0 %vm513_vm1, %v6873_v42 }
 0x4d9   : > { %v1816_v20 = vpop.permute.xlu0 %1815 }
 0x4da   : > { %5494 = vmatpush3.xpose.msk.msra.mxu0 %vm513_vm1, %v6873_v42 }
 0x4db   : > { %5505 = vmatprep.subr.msk.mxu0 %vm513_vm1, %v1822_v5  ;;  %v5910_v42 = vpop.eup %5909 }
 0x4dc   : > { %v1106_v24 = vmul.f32 %v5910_v42, %v6854_v1 }
 0x4dd   : > { %5496 = vmatmul.mubr.msk.f32.vlgmr.msra.gmra.mxu0 %vm513_vm1, %v1626_v4 }
 0x4de   : > { %5506 = vmatpush3.xpose.msk.msra.mxu0 %vm513_vm1, %v1822_v5 }
 0x4df   : > { %5507 = vmatprep.subr.msk.mxu0 %vm513_vm1, %v1820_v45 }
 0x4e2   : > { %5508 = vmatpush3.xpose.msk.msra.mxu0 %vm513_vm1, %v1820_v45 }
 0x506   : > { %v1087_v59 = vpop.xlane.xlu1 %1086 }
 0x507   : > { %5911 = vrcp.f32 %v1087_v59 }
 0x50a   : > { %v1814_v13 = vpop.permute.xlu1 %1813 }
 0x50b   : > { %5509 = vmatprep.mubr.msk.f32.mxu0 %vm513_vm1, %v1814_v13 }
 0x50c   : > { %5510 = vmatmul.mubr.msk.f32.vlgmr.msra.gmra.mxu0 %vm513_vm1, %v1816_v20 }
 0x50e   : > { %v1915_v1 = vpop.permute.xlu1 %1914 }
 0x512   : > { %v1911_v46 = vpop.permute.xlu1 %1910 }
 0x514   : > { %v5912_v43 = vpop.eup %5911 }
 0x515   : > { %v1105_v53 = vmul.f32 %v5912_v43, %v6886_v57  ;;  %v1909_v57 = vpop.permute.xlu0 %1908 }
 0x517   : > { %5488 = vmatprep.mubr.msk.f32.mxu1 %vm1018_vm2, %v1105_v53 }
 0x518   : > { %5489 = vmatmul.mubr.msk.f32.vlgmr.msra.gmra.mxu1 %vm1018_vm2, %v1106_v24 }
 0x519   : > { %5499 = vmatpush3.xpose.msk.msra.mxu1 %vm513_vm1, %v6900_v3  ;;  %5502 = vmatprep.mubr.msk.f32.mxu1 %vm513_vm1, %v6902_v6 }
 0x51a   : > { %5500 = vmatprep.subr.msk.mxu1 %vm513_vm1, %v6882_v39 }
 0x51d   : > { %5501 = vmatpush3.xpose.msk.msra.mxu1 %vm513_vm1, %v6882_v39 }
 0x51e   : > { %5512 = vmatprep.subr.msk.mxu1 %vm513_vm1, %v1917_v58 }
 0x520   : > { %5503 = vmatmul.mubr.msk.f32.vlgmr.msra.gmra.mxu1 %vm513_vm1, %v1721_v52 }
 0x521   : > { %5513 = vmatpush3.xpose.msk.msra.mxu1 %vm513_vm1, %v1917_v58  ;;  %5516 = vmatprep.mubr.msk.f32.mxu1 %vm513_vm1, %v1909_v57 }
 0x522   : > { %5514 = vmatprep.subr.msk.mxu1 %vm513_vm1, %v1915_v1 }
 0x525   : > { %5515 = vmatpush3.xpose.msk.msra.mxu1 %vm513_vm1, %v1915_v1 }
 0x528   : > { %5517 = vmatmul.mubr.msk.f32.vlgmr.msra.gmra.mxu1 %vm513_vm1, %v1911_v46 }
 0x588   : > { %v6958_v50 = vpop.f32.mrf.mxu0 }
 0x58a   : > { %v6960_v39 = vpop.f32.mrf.mxu0 }
 0x590   : > { %v6969_v7 = vpop.f32.mrf.mxu1 }
 0x592   : > { %v6971_v26 = vpop.f32.mrf.mxu1 }
 0x595   : > { %v6962_v62 = vpop.f32.mrf.mxu0 }
 0x597   : > { %v6964_v55 = vpop.f32.mrf.mxu0 }
 0x59d   : > { %v5497_v56 = vpop.f32.mrf.mxu0 }
 0x59e   : > { %v1713_v61 = vadd.f32 %v5497_v56, %v1620_v54 }
 0x59f   : > { %v1707_v41 = vpop.f32.mrf.mxu0 }
 0x5a0   : > { %v1708_v63 = vadd.f32 %v1707_v41, %v1619_v60  ;;  %v2004_v0 = vsel %vm1018_vm2, %v1713_v61, -inf }
 0x5a1   : > { %2005 = vmax.xlane.f32.xlu1 %v2004_v0 }
 0x5a2   : > { %v2001_v2 = vsel %vm1018_vm2, %v1708_v63, -inf }
 0x5a3   : > { %2002 = vmax.xlane.f32.xlu0 %v2001_v2 }
 0x5cc   : > { %v5511_v3 = vpop.f32.mrf.mxu0 }
 0x5cd   : > { %v1903_v44 = vadd.f32 %v5511_v3, %v1620_v54 }
 0x5ce   : > { %v1897_v4 = vpop.f32.mrf.mxu0 }
 0x5cf   : > { %v1898_v5 = vadd.f32 %v1897_v4, %v1619_v60  ;;  %v2016_v51 = vsel %vm1018_vm2, %v1903_v44, -inf }
 0x5d1   : > { %v2013_v6 = vsel %vm1018_vm2, %v1898_v5, -inf }
 0x5d2   : > { %2014 = vmax.xlane.f32.xlu1 %v2013_v6 }
 0x5d8   : > { %v6973_v10 = vpop.f32.mrf.mxu1 }
 0x5da   : > { %v6975_v9 = vpop.f32.mrf.mxu1 }
 0x5e0   : > { %v5504_v11 = vpop.f32.mrf.mxu1 }
 0x5e1   : > { %v1808_v33 = vadd.f32 %v5504_v11, %v1620_v54 }
 0x5e2   : > { %v1802_v12 = vpop.f32.mrf.mxu1 }
 0x5e3   : > { %v1803_v30 = vadd.f32 %v1802_v12, %v1619_v60  ;;  %v2010_v38 = vsel %vm1018_vm2, %v1808_v33, -inf }
 0x5e5   : > { %v2007_v37 = vsel %vm1018_vm2, %v1803_v30, -inf }
 0x5e6   : > { %2008 = vmax.xlane.f32.xlu0 %v2007_v37 }
 0x5e8   : > { %v5518_v15 = vpop.f32.mrf.mxu1 }
 0x5e9   : > { %v1998_v49 = vadd.f32 %v5518_v15, %v1620_v54 }
 0x5ea   : > { %2011 = vmax.xlane.f32.xlu0 %v2010_v38  ;;  %v1992_v18 = vpop.f32.mrf.mxu1 }
 0x5eb   : > { %v1993_v40 = vadd.f32 %v1992_v18, %v1619_v60  ;;  %v2022_v8 = vsel %vm1018_vm2, %v1998_v49, -inf }
 0x5ed   : > { %v2019_v48 = vsel %vm1018_vm2, %v1993_v40, -inf }
 0x5ee   : > { %2017 = vmax.xlane.f32.xlu0 %v2016_v51  ;;  %2020 = vmax.xlane.f32.xlu1 %v2019_v48 }
 0x5f2   : > { %2023 = vmax.xlane.f32.xlu0 %v2022_v8 }
 0x5ff   : > { %2091 = vrot.lane.b32.xlu1 %v6524_v14, %s6279_s10 }
 0x603   : > { %2178 = vrot.lane.b32.xlu1 %v6532_v19, %s6279_s10 }
 0x607   : > { %2176 = vrot.lane.b32.xlu1 %v6536_v21, %s6279_s10 }
 0x608   : > { %2089 = vrot.lane.b32.xlu0 %v6526_v16, %s6279_s10 }
 0x60b   : > { %2263 = vrot.lane.b32.xlu1 %v6552_v27, %s6279_s10 }
 0x60c   : > { %2265 = vrot.lane.b32.xlu0 %v6546_v25, %s6279_s10 }
 0x62a   : > { %v2006_v45 = vpop.xlane.xlu1 %2005 }
 0x62b   : > { %v2026_v47 = vsub.f32 %v1713_v61, %v2006_v45 }
 0x62c   : > { %v2003_v52 = vpop.xlane.xlu0 %2002 }
 0x62d   : > { %v2035_v58 = vmul.f32 1.442695, %v2026_v47  ;;  %v2025_v59 = vsub.f32 %v1708_v63, %v2003_v52 }
 0x62f   : > { %5913 = vpow2.f32 %v2035_v58  ;;  %v2033_v13 = vmul.f32 1.442695, %v2025_v59 }
 0x631   : > { %5915 = vpow2.f32 %v2033_v13 }
 0x63c   : > { %v6994_v20 = vpop.eup %5913 }
 0x63d   : > { %v2052_v42 = vsel %vm1018_vm2, %v6994_v20, 0.0 }
 0x63e   : > { %v6998_v43 = vpop.eup %5915  ;;  %2053 = vadd.xlane.f32.xlu0 %v2052_v42 }
 0x63f   : > { %v2049_v53 = vsel %vm1018_vm2, %v6998_v43, 0.0 }
 0x640   : > { %2050 = vadd.xlane.f32.xlu1 %v2049_v53 }
 0x65b   : > { %v2015_v24 = vpop.xlane.xlu1 %2014 }
 0x65c   : > { %v2029_v57 = vsub.f32 %v1898_v5, %v2015_v24 }
 0x65e   : > { %v2041_v54 = vmul.f32 1.442695, %v2029_v57 }
 0x66f   : > { %v2009_v1 = vpop.xlane.xlu0 %2008 }
 0x670   : > { %v2027_v46 = vsub.f32 %v1803_v30, %v2009_v1 }
 0x672   : > { %v2037_v56 = vmul.f32 1.442695, %v2027_v46 }
 0x673   : > { %v2012_v60 = vpop.xlane.xlu0 %2011 }
 0x674   : > { %5917 = vpow2.f32 %v2037_v56  ;;  %v2028_v61 = vsub.f32 %v1808_v33, %v2012_v60 }
 0x675   : > { %5919 = vpow2.f32 %v2041_v54 }
 0x676   : > { %v2039_v41 = vmul.f32 1.442695, %v2028_v61 }
 0x677   : > { %v2018_v63 = vpop.xlane.xlu0 %2017  ;;  %v2021_v0 = vpop.xlane.xlu1 %2020 }
 0x678   : > { %5921 = vpow2.f32 %v2039_v41  ;;  %v2030_v2 = vsub.f32 %v1903_v44, %v2018_v63  ;;  %v2031_v3 = vsub.f32 %v1993_v40, %v2021_v0 }
 0x67a   : > { %v2043_v4 = vmul.f32 1.442695, %v2030_v2  ;;  %v2045_v6 = vmul.f32 1.442695, %v2031_v3 }
 0x67b   : > { %v2024_v11 = vpop.xlane.xlu0 %2023  ;;  %v2092_v12 = vpop.permute.xlu1 %2091 }
 0x67c   : > { %5923 = vpow2.f32 %v2043_v4  ;;  %v2032_v5 = vsub.f32 %v1998_v49, %v2024_v11  ;;  %5519 = vmatprep.subr.mxu0 %v2092_v12  ;;  %v2437_v4 = vld [vmem:[#allocation10 + $0x8] sm:$0xff] }
 0x67d   : > { %5925 = vpow2.f32 %v2045_v6  ;;  %5520 = vmatpush3.msra.mxu0 %v2092_v12 }
 0x67e   : > { %v2047_v30 = vmul.f32 1.442695, %v2032_v5 }
 0x67f   : > { %v2090_v37 = vpop.permute.xlu0 %2089  ;;  %v2179_v15 = vpop.permute.xlu1 %2178 }
 0x680   : > { %5927 = vpow2.f32 %v2047_v30  ;;  %5521 = vmatprep.subr.mxu0 %v2090_v37  ;;  %5526 = vmatprep.subr.mxu1 %v2179_v15 }
 0x681   : > { %v7002_v33 = vpop.eup %5917  ;;  %5522 = vmatpush3.msra.mxu0 %v2090_v37  ;;  %5527 = vmatpush3.msra.mxu1 %v2179_v15 }
 0x682   : > { %v2055_v44 = vsel %vm1018_vm2, %v7002_v33, 0.0  ;;  %v7006_v38 = vpop.eup %5919 }
 0x683   : > { %v2266_v18 = vpop.permute.xlu0 %2265  ;;  %2056 = vadd.xlane.f32.xlu1 %v2055_v44  ;;  %v2177_v40 = vpop.permute.xlu1 %2176  ;;  %v2061_v48 = vsel %vm1018_vm2, %v7006_v38, 0.0 }
 0x684   : > { %5528 = vmatprep.subr.mxu1 %v2177_v40  ;;  %5533 = vmatprep.subr.mxu0 %v2266_v18 }
 0x685   : > { %v7008_v49 = vpop.eup %5921  ;;  %5529 = vmatpush3.msra.mxu1 %v2177_v40 }
 0x686   : > { %v2058_v51 = vsel %vm1018_vm2, %v7008_v49, 0.0 }
 0x687   : > { %2059 = vadd.xlane.f32.xlu0 %v2058_v51  ;;  %2062 = vadd.xlane.f32.xlu1 %v2061_v48  ;;  %v2264_v13 = vpop.permute.xlu1 %2263 }
 0x689   : > { %v7014_v8 = vpop.eup %5923 }
 0x68a   : > { %v7016_v45 = vpop.eup %5925  ;;  %v2064_v47 = vsel %vm1018_vm2, %v7014_v8, 0.0 }
 0x68b   : > { %2065 = vadd.xlane.f32.xlu0 %v2064_v47  ;;  %v2067_v52 = vsel %vm1018_vm2, %v7016_v45, 0.0 }
 0x68c   : > { %2068 = vadd.xlane.f32.xlu1 %v2067_v52 }
 0x68d   : > { %v7022_v58 = vpop.eup %5927 }
 0x68e   : > { %v2070_v59 = vsel %vm1018_vm2, %v7022_v58, 0.0 }
 0x68f   : > { %2071 = vadd.xlane.f32.xlu0 %v2070_v59 }
 0x69d   : > { %2350 = vrot.lane.b32.xlu1 %v6572_v34, %s6279_s10 }
 0x6a1   : > { %2760 = vrot.lane.b32.xlu1 %v6544_v23, %s6280_s16 }
 0x6a5   : > { %2696 = vrot.lane.b32.xlu1 %v6544_v23, %s6281_s11  ;;  %2352 = vrot.lane.b32.xlu0 %v6562_v31, %s6279_s10 }
 0x6a9   : > { %2764 = vrot.lane.b32.xlu1 %v6556_v28, %s6280_s16  ;;  %2762 = vrot.lane.b32.xlu0 %v6530_v17, %s6280_s16 }
 0x6ad   : > { %2700 = vrot.lane.b32.xlu1 %v6556_v28, %s6281_s11  ;;  %2766 = vrot.lane.b32.xlu0 %v6540_v22, %s6280_s16 }
 0x6b1   : > { %2768 = vrot.lane.b32.xlu1 %v6570_v32, %s6280_s16  ;;  %2698 = vrot.lane.b32.xlu0 %v6530_v17, %s6281_s11 }
 0x6b5   : > { %2704 = vrot.lane.b32.xlu1 %v6570_v32, %s6281_s11  ;;  %2770 = vrot.lane.b32.xlu0 %v6560_v29, %s6280_s16 }
 0x6b9   : > { %2772 = vrot.lane.b32.xlu1 %v6584_v36, %s6280_s16  ;;  %2702 = vrot.lane.b32.xlu0 %v6540_v22, %s6281_s11 }
 0x6bd   : > { %2710 = vrot.lane.b32.xlu1 %v6576_v35, %s6281_s11  ;;  %2774 = vrot.lane.b32.xlu0 %v6576_v35, %s6280_s16 }
 0x6c1   : > { %2706 = vrot.lane.b32.xlu0 %v6560_v29, %s6281_s11 }
 0x6c5   : > { %2708 = vrot.lane.b32.xlu0 %v6584_v36, %s6281_s11 }
 0x6c7   : > { %v2054_v42 = vpop.xlane.xlu0 %2053 }
 0x6c8   : > { %5929 = vrcp.f32 %v2054_v42 }
 0x6c9   : > { %v2051_v53 = vpop.xlane.xlu1 %2050 }
 0x6ca   : > { %5931 = vrcp.f32 %v2051_v53 }
 0x6d5   : > { %v5930_v24 = vpop.eup %5929 }
 0x6d6   : > { %v2082_v46 = vmul.f32 %v5930_v24, %v6994_v20 }
 0x6d7   : > { %v5932_v57 = vpop.eup %5931 }
 0x6d8   : > { %v2081_v1 = vmul.f32 %v5932_v57, %v6998_v43 }
 0x6da   : > { %5523 = vmatprep.mubr.msk.f32.mxu0 %vm1018_vm2, %v2081_v1 }
 0x6db   : > { %5524 = vmatmul.mubr.msk.f32.vlgmr.msra.gmra.mxu0 %vm1018_vm2, %v2082_v46 }
 0x6dc   : > { %5534 = vmatpush3.msra.mxu0 %v2266_v18  ;;  %v1463_v18 = vld [vmem:[#allocation10] sm:$0xff] }
 0x6dd   : > { %5535 = vmatprep.subr.mxu0 %v2264_v13 }
 0x6de   : > { %5536 = vmatpush3.msra.mxu0 %v2264_v13 }
 0x6df   : > { %5547 = vmatprep.subr.mxu0 %v2437_v4 }
 0x70c   : > { %v2057_v54 = vpop.xlane.xlu1 %2056 }
 0x70d   : > { %5933 = vrcp.f32 %v2057_v54 }
 0x710   : > { %v2060_v56 = vpop.xlane.xlu0 %2059  ;;  %v2063_v60 = vpop.xlane.xlu1 %2062 }
 0x711   : > { %5935 = vrcp.f32 %v2060_v56 }
 0x712   : > { %5937 = vrcp.f32 %v2063_v60 }
 0x714   : > { %v2066_v61 = vpop.xlane.xlu0 %2065 }
 0x715   : > { %5939 = vrcp.f32 %v2066_v61  ;;  %v2069_v41 = vpop.xlane.xlu1 %2068 }
 0x716   : > { %5941 = vrcp.f32 %v2069_v41 }
 0x718   : > { %v2072_v43 = vpop.xlane.xlu0 %2071 }
 0x719   : > { %5943 = vrcp.f32 %v2072_v43  ;;  %v2351_v20 = vpop.permute.xlu1 %2350 }
 0x71a   : > { %v5934_v63 = vpop.eup %5933 }
 0x71b   : > { %v2083_v0 = vmul.f32 %v5934_v63, %v7002_v33 }
 0x71c   : > { %v2353_v2 = vpop.permute.xlu0 %2352 }
 0x71d   : > { %v2761_v3 = vpop.permute.xlu1 %2760  ;;  %5530 = vmatprep.mubr.msk.f32.mxu1 %vm1018_vm2, %v2083_v0  ;;  %5540 = vmatprep.subr.mxu1 %v2353_v2 }
 0x71e   : > { %v5936_v6 = vpop.eup %5935  ;;  %v2784_v11 = vsel %vm513_vm1, %v2761_v3, 0.0 }
 0x71f   : > { %v5938_v12 = vpop.eup %5937  ;;  %2785 = vadd.xlane.f32.xlu1 %v2784_v11  ;;  %v2084_v5 = vmul.f32 %v5936_v6, %v7008_v49 }
 0x720   : > { %v2763_v30 = vpop.permute.xlu0 %2762  ;;  %v2085_v37 = vmul.f32 %v5938_v12, %v7006_v38 }
 0x721   : > { %v2697_v15 = vpop.permute.xlu1 %2696  ;;  %5531 = vmatmul.mubr.msk.f32.vlgmr.msra.gmra.mxu1 %vm1018_vm2, %v2084_v5  ;;  %v2787_v33 = vsel %vm513_vm1, %v2763_v30, 0.0 }
 0x722   : > { %v5940_v44 = vpop.eup %5939  ;;  %5537 = vmatprep.mubr.msk.f32.mxu0 %vm1018_vm2, %v2085_v37  ;;  %5541 = vmatpush3.msra.mxu1 %v2353_v2 }
 0x723   : > { %v5942_v40 = vpop.eup %5941  ;;  %2788 = vadd.xlane.f32.xlu0 %v2787_v33  ;;  %5542 = vmatprep.subr.mxu1 %v2351_v20  ;;  %v2086_v51 = vmul.f32 %v5940_v44, %v7014_v8 }
 0x724   : > { %5543 = vmatpush3.msra.mxu1 %v2351_v20  ;;  %v2767_v49 = vpop.permute.xlu0 %2766  ;;  %v2087_v48 = vmul.f32 %v5942_v40, %v7016_v45  ;;  %v2720_v45 = vsel %vm513_vm1, %v2697_v15, 0.0 }
 0x725   : > { %v2765_v38 = vpop.permute.xlu1 %2764  ;;  %5538 = vmatmul.mubr.msk.f32.vlgmr.msra.gmra.mxu0 %vm1018_vm2, %v2086_v51  ;;  %v2793_v47 = vsel %vm513_vm1, %v2767_v49, 0.0  ;;  %5561 = vmatprep.subr.mxu1 %v1463_v18 }
 0x726   : > { %v5944_v52 = vpop.eup %5943  ;;  %5544 = vmatprep.mubr.msk.f32.mxu1 %vm1018_vm2, %v2087_v48  ;;  %5548 = vmatpush3.msra.mxu0 %v2437_v4  ;;  %v2790_v57 = vsel %vm513_vm1, %v2765_v38, 0.0 }
 0x727   : > { %2794 = vadd.xlane.f32.xlu0 %v2793_v47  ;;  %v2088_v59 = vmul.f32 %v5944_v52, %v7022_v58 }
 0x728   : > { %v2699_v13 = vpop.permute.xlu0 %2698 }
 0x729   : > { %v2701_v42 = vpop.permute.xlu1 %2700  ;;  %5545 = vmatmul.mubr.msk.f32.vlgmr.msra.gmra.mxu1 %vm1018_vm2, %v2088_v59  ;;  %v2723_v8 = vsel %vm513_vm1, %v2699_v13, 0.0 }
 0x72a   : > { %5563 = vmatprep.mubr.msk.f32.mxu1 %vm513_vm1, %v6960_v39  ;;  %2724 = vadd.xlane.f32.xlu1 %v2723_v8 }
 0x72b   : > { %2721 = vadd.xlane.f32.xlu0 %v2720_v45  ;;  %5562 = vmatpush3.msra.mxu1 %v1463_v18 }
 0x72c   : > { %v2771_v53 = vpop.permute.xlu0 %2770 }
 0x72d   : > { %v2769_v24 = vpop.permute.xlu1 %2768  ;;  %5564 = vmatmul.mubr.msk.f32.vlgmr.msra.gmra.mxu1 %vm513_vm1, %v6958_v50  ;;  %v2799_v58 = vsel %vm513_vm1, %v2771_v53, 0.0  ;;  %v2726_v50 = vsel %vm513_vm1, %v2701_v42, 0.0 }
 0x72e   : > { %5566 = vmatprep.mubr.msk.f32.mxu1 %vm513_vm1, %v6971_v26  ;;  %2800 = vadd.xlane.f32.xlu1 %v2799_v58  ;;  %v7117_v58 = vstv %s5162_s20  ;;  %s6190_s20 = scalar_lea.vmem %s7560_s23, 1024 }
 0x72f   : > { %2791 = vadd.xlane.f32.xlu0 %v2790_v57  ;;  %p6191_p10 = scmp.ne.s32.totalorder %s7560_s23, %s6190_s20 }
 0x730   : > { %v2703_v39 = vpop.permute.xlu0 %2702 }
 0x731   : > { %5567 = vmatmul.mubr.msk.f32.gmra.mxu1 %vm513_vm1, %v6969_v7  ;;  %v2729_v1 = vsel %vm513_vm1, %v2703_v39, 0.0  ;;  %v2705_v46 = vpop.permute.xlu1 %2704  ;;  %v2796_v7 = vsel %vm513_vm1, %v2769_v24, 0.0  ;;  %p6192_p3 = pnand %p6191_p10, %p7639_p13 }
 0x732   : > { %5569 = vmatprep.mubr.msk.f32.mxu1 %vm513_vm1, %v6964_v55  ;;  %2730 = vadd.xlane.f32.xlu1 %v2729_v1  ;;  %v2732_v61 = vsel %vm513_vm1, %v2705_v46, 0.0 }
 0x733   : > { %2727 = vadd.xlane.f32.xlu0 %v2726_v50  ;;  %p6193_p5 = pneg %p6192_p3 }
 0x734   : > { %v2775_v54 = vpop.permute.xlu0 %2774 }
 0x735   : > { %5570 = vmatmul.mubr.msk.f32.gmra.mxu1 %vm513_vm1, %v6962_v62  ;;  %v2805_v26 = vsel %vm513_vm1, %v2775_v54, 0.0  ;;  %v2773_v55 = vpop.permute.xlu1 %2772 }
 0x736   : > { %5572 = vmatprep.mubr.msk.f32.mxu1 %vm513_vm1, %v6975_v9  ;;  %2806 = vadd.xlane.f32.xlu1 %v2805_v26  ;;  %v2802_v9 = vsel %vm513_vm1, %v2773_v55, 0.0 }
 0x737   : > { %2797 = vadd.xlane.f32.xlu0 %v2796_v7 }
 0x738   : > { %v2707_v56 = vpop.permute.xlu0 %2706 }
 0x739   : > { %5573 = vmatmul.mubr.msk.f32.gmra.mxu1 %vm513_vm1, %v6973_v10  ;;  %v2735_v60 = vsel %vm513_vm1, %v2707_v56, 0.0  ;;  %v2711_v43 = vpop.permute.xlu1 %2710 }
 0x73a   : > { %2736 = vadd.xlane.f32.xlu1 %v2735_v60  ;;  %v2741_v20 = vsel %vm513_vm1, %v2711_v43, 0.0 }
 0x73b   : > { %2733 = vadd.xlane.f32.xlu0 %v2732_v61 }
 0x73c   : > { %v2709_v62 = vpop.permute.xlu0 %2708 }
 0x73d   : > { %v2738_v41 = vsel %vm513_vm1, %v2709_v62, 0.0 }
 0x73e   : > { %2739 = vadd.xlane.f32.xlu1 %v2738_v41 }
 0x73f   : > { %2803 = vadd.xlane.f32.xlu0 %v2802_v9 }
 0x743   : > { %2742 = vadd.xlane.f32.xlu0 %v2741_v20 }
 0x79b   : > { %v5525_v63 = vpop.f32.mrf.mxu0 }
 0x79d   : > { %v2167_v0 = vpop.f32.mrf.mxu0 }
 0x79e   : > { %5549 = vmatprep.mubr.msk.f32.mxu0 %vm513_vm1, %v2167_v0 }
 0x79f   : > { %5550 = vmatmul.mubr.msk.f32.vlgmr.msra.gmra.mxu0 %vm513_vm1, %v5525_v63 }
 0x7a8   : > { %v2786_v10 = vpop.xlane.xlu1 %2785 }
 0x7a9   : > { %v2808_v2 = vmax.f32 %v2786_v10, 1e-24 }
 0x7ab   : > { %5945 = vrsqrt.f32 %v2808_v2 }
 0x7ac   : > { %v2789_v3 = vpop.xlane.xlu0 %2788 }
 0x7ad   : > { %v2809_v4 = vmax.f32 %v2789_v3, 1e-24 }
 0x7af   : > { %5947 = vrsqrt.f32 %v2809_v4 }
 0x7b0   : > { %v2795_v6 = vpop.xlane.xlu0 %2794 }
 0x7b1   : > { %v2811_v11 = vmax.f32 %v2795_v6, 1e-24 }
 0x7b3   : > { %5949 = vrsqrt.f32 %v2811_v11  ;;  %v2725_v12 = vpop.xlane.xlu1 %2724 }
 0x7b4   : > { %v2722_v5 = vpop.xlane.xlu0 %2721  ;;  %v2745_v30 = vmax.f32 %v2725_v12, 1e-24 }
 0x7b5   : > { %v2744_v37 = vmax.f32 %v2722_v5, 1e-24 }
 0x7b6   : > { %5951 = vrsqrt.f32 %v2745_v30 }
 0x7b7   : > { %5953 = vrsqrt.f32 %v2744_v37  ;;  %v2801_v15 = vpop.xlane.xlu1 %2800 }
 0x7b8   : > { %v5946_v33 = vpop.eup %5945  ;;  %v2792_v44 = vpop.xlane.xlu0 %2791  ;;  %v2813_v18 = vmax.f32 %v2801_v15, 1e-24 }
 0x7b9   : > { %v2810_v40 = vmax.f32 %v2792_v44, 1e-24  ;;  %v2842_v51 = vmul.f32 %v5946_v33, %v6526_v16 }
 0x7ba   : > { %5955 = vrsqrt.f32 %v2813_v18 }
 0x7bb   : > { %5957 = vrsqrt.f32 %v2810_v40  ;;  %2861 = vrot.lane.b32.xlu0 %v2842_v51, %s6280_s16  ;;  %v2731_v49 = vpop.xlane.xlu1 %2730 }
 0x7bc   : > { %v5948_v48 = vpop.eup %5947  ;;  %v2728_v38 = vpop.xlane.xlu0 %2727  ;;  %v2747_v47 = vmax.f32 %v2731_v49, 1e-24 }
 0x7bd   : > { %v2746_v52 = vmax.f32 %v2728_v38, 1e-24  ;;  %v2843_v59 = vmul.f32 %v5948_v48, %v6524_v14 }
 0x7be   : > { %5959 = vrsqrt.f32 %v2747_v47 }
 0x7bf   : > { %5961 = vrsqrt.f32 %v2746_v52  ;;  %2863 = vrot.lane.b32.xlu1 %v2843_v59, %s6280_s16  ;;  %v2807_v13 = vpop.xlane.xlu1 %2806 }
 0x7c0   : > { %v5950_v42 = vpop.eup %5949  ;;  %v2798_v8 = vpop.xlane.xlu0 %2797  ;;  %v2815_v45 = vmax.f32 %v2807_v13, 1e-24 }
 0x7c1   : > { %v2812_v53 = vmax.f32 %v2798_v8, 1e-24  ;;  %v2845_v24 = vmul.f32 %v5950_v42, %v6532_v19 }
 0x7c2   : > { %5963 = vrsqrt.f32 %v2815_v45 }
 0x7c3   : > { %v5952_v57 = vpop.eup %5951  ;;  %5965 = vrsqrt.f32 %v2812_v53  ;;  %2958 = vrot.lane.b32.xlu1 %v2845_v24, %s6280_s16  ;;  %v2737_v39 = vpop.xlane.xlu1 %2736 }
 0x7c4   : > { %v5954_v1 = vpop.eup %5953  ;;  %v2734_v50 = vpop.xlane.xlu0 %2733  ;;  %v2749_v46 = vmax.f32 %v2737_v39, 1e-24  ;;  %v2827_v54 = vmul.f32 %v5952_v57, %v7117_v58 }
 0x7c5   : > { %v2748_v26 = vmax.f32 %v2734_v50, 1e-24  ;;  %v2826_v7 = vmul.f32 %v5954_v1, %v7117_v58 }
 0x7c6   : > { %5967 = vrsqrt.f32 %v2749_v46  ;;  %v2835_v56 = vmul.f32 %v2827_v54, %v6524_v14 }
 0x7c7   : > { %v5956_v55 = vpop.eup %5955  ;;  %5969 = vrsqrt.f32 %v2748_v26  ;;  %v2740_v60 = vpop.xlane.xlu1 %2739  ;;  %v2834_v61 = vmul.f32 %v2826_v7, %v6526_v16 }
 0x7c8   : > { %v5958_v62 = vpop.eup %5957  ;;  %v2804_v41 = vpop.xlane.xlu0 %2803  ;;  %v2750_v9 = vmax.f32 %v2740_v60, 1e-24  ;;  %2857 = vrot.lane.b32.xlu0 %v2835_v56, %s6281_s11  ;;  %v2847_v20 = vmul.f32 %v5956_v55, %v6546_v25 }
 0x7c9   : > { %v2814_v43 = vmax.f32 %v2804_v41, 1e-24  ;;  %2855 = vrot.lane.b32.xlu1 %v2834_v61, %s6281_s11  ;;  %v2844_v0 = vmul.f32 %v5958_v62, %v6536_v21 }
 0x7ca   : > { %5971 = vrsqrt.f32 %v2750_v9 }
 0x7cb   : > { %v5960_v63 = vpop.eup %5959  ;;  %5973 = vrsqrt.f32 %v2814_v43 }
 0x7cc   : > { %v5962_v10 = vpop.eup %5961  ;;  %v2743_v2 = vpop.xlane.xlu0 %2742  ;;  %3053 = vrot.lane.b32.xlu0 %v2847_v20, %s6280_s16  ;;  %v2829_v3 = vmul.f32 %v5960_v63, %v7117_v58 }
 0x7cd   : > { %v2751_v4 = vmax.f32 %v2743_v2, 1e-24  ;;  %2956 = vrot.lane.b32.xlu1 %v2844_v0, %s6280_s16  ;;  %v2828_v6 = vmul.f32 %v5962_v10, %v7117_v58 }
 0x7ce   : > { %v2837_v11 = vmul.f32 %v2829_v3, %v6532_v19 }
 0x7cf   : > { %v5964_v12 = vpop.eup %5963  ;;  %5975 = vrsqrt.f32 %v2751_v4  ;;  %v2836_v5 = vmul.f32 %v2828_v6, %v6536_v21 }
 0x7d0   : > { %v5966_v30 = vpop.eup %5965  ;;  %2952 = vrot.lane.b32.xlu0 %v2837_v11, %s6281_s11  ;;  %v2849_v37 = vmul.f32 %v5964_v12, %v6562_v31 }
 0x7d1   : > { %2950 = vrot.lane.b32.xlu1 %v2836_v5, %s6281_s11  ;;  %v2846_v33 = vmul.f32 %v5966_v30, %v6552_v27 }
 0x7d3   : > { %v5968_v15 = vpop.eup %5967 }
 0x7d4   : > { %v5970_v44 = vpop.eup %5969  ;;  %3148 = vrot.lane.b32.xlu0 %v2849_v37, %s6280_s16  ;;  %v2831_v18 = vmul.f32 %v5968_v15, %v7117_v58 }
 0x7d5   : > { %3051 = vrot.lane.b32.xlu1 %v2846_v33, %s6280_s16  ;;  %v2830_v40 = vmul.f32 %v5970_v44, %v7117_v58 }
 0x7d6   : > { %v2839_v51 = vmul.f32 %v2831_v18, %v6546_v25  ;;  %v2852_v18 = vld [vmem:[#allocation9 + $0x28] sm:$0xff] }
 0x7d7   : > { %v5972_v49 = vpop.eup %5971  ;;  %v2838_v48 = vmul.f32 %v2830_v40, %v6552_v27 }
 0x7d8   : > { %v5974_v38 = vpop.eup %5973  ;;  %3047 = vrot.lane.b32.xlu0 %v2839_v51, %s6281_s11  ;;  %v2832_v47 = vmul.f32 %v5972_v49, %v7117_v58 }
 0x7d9   : > { %3045 = vrot.lane.b32.xlu1 %v2838_v48, %s6281_s11  ;;  %v2848_v59 = vmul.f32 %v5974_v38, %v6572_v34 }
 0x7da   : > { %v2840_v52 = vmul.f32 %v2832_v47, %v6572_v34 }
 0x7dc   : > { %v5976_v13 = vpop.eup %5975  ;;  %3140 = vrot.lane.b32.xlu0 %v2840_v52, %s6281_s11  ;;  %v2851_v52 = vld [vmem:[#allocation9 + $0x20] sm:$0xff] }
 0x7dd   : > { %3146 = vrot.lane.b32.xlu1 %v2848_v59, %s6280_s16  ;;  %v2833_v42 = vmul.f32 %v5976_v13, %v7117_v58 }
 0x7df   : > { %v2841_v8 = vmul.f32 %v2833_v42, %v6562_v31 }
 0x7e1   : > { %3142 = vrot.lane.b32.xlu1 %v2841_v8, %s6281_s11  ;;  %v5532_v45 = vpop.f32.mrf.mxu1  ;;  %s7558_s11 = scalar_lea.hbm %s7614_s7, %s5238_s17 }
 0x7e3   : > { %v2254_v53 = vpop.f32.mrf.mxu1 }
 0x7e4   : > { %5552 = vmatprep.mubr.msk.f32.mxu0 %vm513_vm1, %v2254_v53 }
 0x7e5   : > { %v5539_v24 = vpop.f32.mrf.mxu0  ;;  %5553 = vmatmul.mubr.msk.f32.gmra.mxu0 %vm513_vm1, %v5532_v45 }
 0x7e7   : > { %v2341_v57 = vpop.f32.mrf.mxu0 }
 0x7e8   : > { %5555 = vmatprep.mubr.msk.f32.mxu0 %vm513_vm1, %v2341_v57 }
 0x7e9   : > { %v5546_v39 = vpop.f32.mrf.mxu1  ;;  %5556 = vmatmul.mubr.msk.f32.gmra.mxu0 %vm513_vm1, %v5539_v24 }
 0x7eb   : > { %v2428_v1 = vpop.f32.mrf.mxu1 }
 0x7ec   : > { %5558 = vmatprep.mubr.msk.f32.mxu0 %vm513_vm1, %v2428_v1 }
 0x7ed   : > { %5559 = vmatmul.mubr.msk.f32.gmra.mxu0 %vm513_vm1, %v5546_v39  ;;  %v7188_v2 = vpop.f32.mrf.mxu1 }
 0x7ef   : > { %v7192_v4 = vpop.f32.mrf.mxu1 }
 0x7f1   : > { %v7196_v11 = vpop.f32.mrf.mxu1 }
 0x7f3   : > { %v7200_v5 = vpop.f32.mrf.mxu1 }
 0x7f5   : > { %v7204_v37 = vpop.f32.mrf.mxu1 }
 0x7f7   : > { %v7208_v33 = vpop.f32.mrf.mxu1 }
 0x7f9   : > { %v7214_v49 = vpop.f32.mrf.mxu1 }
 0x7fb   : > { %v7218_v38 = vpop.f32.mrf.mxu1 }
 0x82d   : > { %v2862_v50 = vpop.permute.xlu0 %2861 }
 0x831   : > { %v2864_v58 = vpop.permute.xlu1 %2863 }
 0x832   : > { %5575 = vmatprep.subr.msk.mxu0 %vm513_vm1, %v2864_v58 }
 0x833   : > { %5576 = vmatpush3.xpose.msk.msra.mxu0 %vm513_vm1, %v2864_v58 }
 0x834   : > { %5577 = vmatprep.subr.msk.mxu0 %vm513_vm1, %v2862_v50 }
 0x835   : > { %v2959_v46 = vpop.permute.xlu1 %2958 }
 0x836   : > { %5582 = vmatprep.subr.msk.mxu1 %vm513_vm1, %v2959_v46 }
 0x837   : > { %5578 = vmatpush3.xpose.msk.msra.mxu0 %vm513_vm1, %v2862_v50  ;;  %5583 = vmatpush3.xpose.msk.msra.mxu1 %vm513_vm1, %v2959_v46 }
 0x83a   : > { %v2858_v54 = vpop.permute.xlu0 %2857 }
 0x83b   : > { %v2856_v26 = vpop.permute.xlu1 %2855 }
 0x83c   : > { %5579 = vmatprep.mubr.msk.f32.mxu0 %vm513_vm1, %v2856_v26 }
 0x83d   : > { %5580 = vmatmul.mubr.msk.f32.vlgmr.msra.gmra.mxu0 %vm513_vm1, %v2858_v54 }
 0x83e   : > { %v3054_v7 = vpop.permute.xlu0 %3053 }
 0x83f   : > { %v2957_v56 = vpop.permute.xlu1 %2956  ;;  %5589 = vmatprep.subr.msk.mxu0 %vm513_vm1, %v3054_v7 }
 0x840   : > { %5584 = vmatprep.subr.msk.mxu1 %vm513_vm1, %v2957_v56  ;;  %5590 = vmatpush3.xpose.msk.msra.mxu0 %vm513_vm1, %v3054_v7 }
 0x841   : > { %5585 = vmatpush3.xpose.msk.msra.mxu1 %vm513_vm1, %v2957_v56 }
 0x842   : > { %v2953_v55 = vpop.permute.xlu0 %2952 }
 0x843   : > { %v2951_v60 = vpop.permute.xlu1 %2950 }
 0x844   : > { %5586 = vmatprep.mubr.msk.f32.mxu1 %vm513_vm1, %v2951_v60 }
 0x845   : > { %5587 = vmatmul.mubr.msk.f32.vlgmr.msra.gmra.mxu1 %vm513_vm1, %v2953_v55 }
 0x846   : > { %v3149_v61 = vpop.permute.xlu0 %3148 }
 0x847   : > { %v3052_v62 = vpop.permute.xlu1 %3051  ;;  %5596 = vmatprep.subr.msk.mxu1 %vm513_vm1, %v3149_v61 }
 0x848   : > { %5591 = vmatprep.subr.msk.mxu0 %vm513_vm1, %v3052_v62  ;;  %5597 = vmatpush3.xpose.msk.msra.mxu1 %vm513_vm1, %v3149_v61 }
 0x849   : > { %5592 = vmatpush3.xpose.msk.msra.mxu0 %vm513_vm1, %v3052_v62 }
 0x84a   : > { %v3048_v41 = vpop.permute.xlu0 %3047 }
 0x84b   : > { %v3046_v9 = vpop.permute.xlu1 %3045 }
 0x84c   : > { %5593 = vmatprep.mubr.msk.f32.mxu0 %vm513_vm1, %v3046_v9 }
 0x84d   : > { %5594 = vmatmul.mubr.msk.f32.vlgmr.msra.gmra.mxu0 %vm513_vm1, %v3048_v41 }
 0x84e   : > { %v3141_v43 = vpop.permute.xlu0 %3140 }
 0x84f   : > { %v3147_v20 = vpop.permute.xlu1 %3146  ;;  %5600 = vmatprep.mubr.msk.f32.mxu1 %vm513_vm1, %v3141_v43 }
 0x850   : > { %5598 = vmatprep.subr.msk.mxu1 %vm513_vm1, %v3147_v20 }
 0x851   : > { %5599 = vmatpush3.xpose.msk.msra.mxu1 %vm513_vm1, %v3147_v20 }
 0x853   : > { %v3143_v63 = vpop.permute.xlu1 %3142 }
 0x854   : > { %5601 = vmatmul.mubr.msk.f32.vlgmr.msra.gmra.mxu1 %vm513_vm1, %v3143_v63 }
 0x85f   : > { %v7184_v0 = vpop.f32.mrf.mxu0 }
 0x861   : > { %v7186_v10 = vpop.f32.mrf.mxu0 }
 0x8a5   : > { %v7190_v3 = vpop.f32.mrf.mxu0 }
 0x8a7   : > { %v7194_v6 = vpop.f32.mrf.mxu0 }
 0x8a9   : > { %v7198_v12 = vpop.f32.mrf.mxu0 }
 0x8ab   : > { %v7202_v30 = vpop.f32.mrf.mxu0 }
 0x8ad   : > { %v7206_v15 = vpop.f32.mrf.mxu0 }
 0x8af   : > { %v7210_v44 = vpop.f32.mrf.mxu0 }
 0x8fd   : > { %v5581_v40 = vpop.f32.mrf.mxu0 }
 0x8fe   : > { %v7212_v51 = vadd.f32 %v5581_v40, %v2852_v18 }
 0x8ff   : > { %v2939_v45 = vpop.f32.mrf.mxu0 }
 0x900   : > { %v3236_v48 = vsel %vm1018_vm2, %v7212_v51, -inf  ;;  %v2940_v24 = vadd.f32 %v2939_v45, %v2851_v52 }
 0x901   : > { %3237 = vmax.xlane.f32.xlu1 %v3236_v48 }
 0x902   : > { %v3233_v50 = vsel %vm1018_vm2, %v2940_v24, -inf }
 0x905   : > { %v5588_v47 = vpop.f32.mrf.mxu1 }
 0x906   : > { %v3040_v42 = vadd.f32 %v5588_v47, %v2852_v18 }
 0x907   : > { %v3034_v59 = vpop.f32.mrf.mxu1 }
 0x908   : > { %v3035_v13 = vadd.f32 %v3034_v59, %v2851_v52  ;;  %v3242_v57 = vsel %vm1018_vm2, %v3040_v42, -inf }
 0x90a   : > { %v3239_v8 = vsel %vm1018_vm2, %v3035_v13, -inf }
 0x90b   : > { %3240 = vmax.xlane.f32.xlu0 %v3239_v8 }
 0x90d   : > { %v5595_v53 = vpop.f32.mrf.mxu0 }
 0x90e   : > { %v7222_v58 = vadd.f32 %v5595_v53, %v2852_v18 }
 0x90f   : > { %3243 = vmax.xlane.f32.xlu0 %v3242_v57  ;;  %v3129_v39 = vpop.f32.mrf.mxu0 }
 0x910   : > { %v3130_v1 = vadd.f32 %v3129_v39, %v2851_v52  ;;  %v3248_v56 = vsel %vm1018_vm2, %v7222_v58, -inf }
 0x912   : > { %v3245_v46 = vsel %vm1018_vm2, %v3130_v1, -inf }
 0x913   : > { %3234 = vmax.xlane.f32.xlu0 %v3233_v50  ;;  %3246 = vmax.xlane.f32.xlu1 %v3245_v46 }
 0x914   : > { %v5602_v54 = vpop.f32.mrf.mxu1 }
 0x915   : > { %v3230_v26 = vadd.f32 %v5602_v54, %v2852_v18 }
 0x916   : > { %v3224_v7 = vpop.f32.mrf.mxu1 }
 0x917   : > { %v3225_v55 = vadd.f32 %v3224_v7, %v2851_v52  ;;  %3249 = vmax.xlane.f32.xlu0 %v3248_v56  ;;  %v3254_v61 = vsel %vm1018_vm2, %v3230_v26, -inf }
 0x919   : > { %v3251_v60 = vsel %vm1018_vm2, %v3225_v55, -inf }
 0x91a   : > { %3252 = vmax.xlane.f32.xlu1 %v3251_v60 }
 0x91b   : > { %3255 = vmax.xlane.f32.xlu0 %v3254_v61 }
 0x98a   : > { %v3238_v63 = vpop.xlane.xlu1 %3237 }
 0x98b   : > { %v3258_v56 = vsub.f32 %v7212_v51, %v3238_v63 }
 0x994   : > { %v3241_v62 = vpop.xlane.xlu0 %3240 }
 0x995   : > { %v3259_v41 = vsub.f32 %v3035_v13, %v3241_v62 }
 0x997   : > { %v3269_v9 = vmul.f32 1.442695, %v3259_v41 }
 0x998   : > { %v3244_v43 = vpop.xlane.xlu0 %3243 }
 0x999   : > { %5977 = vpow2.f32 %v3269_v9  ;;  %v3260_v20 = vsub.f32 %v3040_v42, %v3244_v43 }
 0x99b   : > { %v3271_v18 = vmul.f32 1.442695, %v3260_v20 }
 0x99c   : > { %v3235_v40 = vpop.xlane.xlu0 %3234  ;;  %v3247_v48 = vpop.xlane.xlu1 %3246 }
 0x99d   : > { %5979 = vpow2.f32 %v3271_v18  ;;  %v3257_v60 = vsub.f32 %v2940_v24, %v3235_v40  ;;  %v3261_v62 = vsub.f32 %v3130_v1, %v3247_v48 }
 0x99f   : > { %v3265_v61 = vmul.f32 1.442695, %v3257_v60  ;;  %v3273_v41 = vmul.f32 1.442695, %v3261_v62 }
 0x9a0   : > { %v3250_v47 = vpop.xlane.xlu0 %3249 }
 0x9a1   : > { %v3262_v1 = vsub.f32 %v7222_v58, %v3250_v47 }
 0x9a3   : > { %v3253_v52 = vpop.xlane.xlu1 %3252  ;;  %v3275_v18 = vmul.f32 1.442695, %v3262_v1 }
 0x9a4   : > { %v3263_v59 = vsub.f32 %v3225_v55, %v3253_v52  ;;  %v3256_v8 = vpop.xlane.xlu0 %3255  ;;  %v3267_v55 = vmul.f32 1.442695, %v3258_v56 }
 0x9a5   : > { %v3264_v45 = vsub.f32 %v3230_v26, %v3256_v8 }
 0x9a6   : > { %v7230_v53 = vpop.eup %5977  ;;  %v3277_v57 = vmul.f32 1.442695, %v3263_v59 }
 0x9a7   : > { %v3279_v39 = vmul.f32 1.442695, %v3264_v45  ;;  %v3287_v13 = vsel %vm1018_vm2, %v7230_v53, 0.0 }
 0x9a8   : > { %5981 = vpow2.f32 %v3277_v57  ;;  %3288 = vadd.xlane.f32.xlu1 %v3287_v13 }
 0x9a9   : > { %5983 = vpow2.f32 %v3279_v39 }
 0x9aa   : > { %v7234_v42 = vpop.eup %5979  ;;  %5985 = vpow2.f32 %v3267_v55 }
 0x9ab   : > { %v3290_v50 = vsel %vm1018_vm2, %v7234_v42, 0.0  ;;  %5987 = vpow2.f32 %v3265_v61 }
 0x9ac   : > { %3291 = vadd.xlane.f32.xlu0 %v3290_v50  ;;  %5989 = vpow2.f32 %v3273_v41 }
 0x9ad   : > { %5991 = vpow2.f32 %v3275_v18 }
 0x9b5   : > { %v7238_v46 = vpop.eup %5981 }
 0x9b6   : > { %v7240_v54 = vpop.eup %5983  ;;  %v3299_v26 = vsel %vm1018_vm2, %v7238_v46, 0.0 }
 0x9b7   : > { %3300 = vadd.xlane.f32.xlu1 %v3299_v26  ;;  %v3302_v7 = vsel %vm1018_vm2, %v7240_v54, 0.0  ;;  %v7257_v9 = vpop.eup %5985 }
 0x9b8   : > { %3303 = vadd.xlane.f32.xlu0 %v3302_v7  ;;  %v3284_v43 = vsel %vm1018_vm2, %v7257_v9, 0.0  ;;  %v7261_v20 = vpop.eup %5987 }
 0x9b9   : > { %v3281_v51 = vsel %vm1018_vm2, %v7261_v20, 0.0  ;;  %v7265_v63 = vpop.eup %5989 }
 0x9ba   : > { %v3293_v24 = vsel %vm1018_vm2, %v7265_v63, 0.0  ;;  %v7282_v58 = vpop.eup %5991 }
 0x9bb   : > { %v3296_v40 = vsel %vm1018_vm2, %v7282_v58, 0.0 }
 0x9c8   : > { %3323 = vrot.lane.b32.xlu1 %v6524_v14, %s6282_s15 }
 0x9cc   : > { %3410 = vrot.lane.b32.xlu1 %v6532_v19, %s6282_s15 }
 0x9ce   : > { %3321 = vrot.lane.b32.xlu0 %v6526_v16, %s6282_s15 }
 0x9d0   : > { %3408 = vrot.lane.b32.xlu1 %v6536_v21, %s6282_s15 }
 0x9d4   : > { %3495 = vrot.lane.b32.xlu1 %v6552_v27, %s6282_s15 }
 0x9ed   : > { %3285 = vadd.xlane.f32.xlu0 %v3284_v43 }
 0x9f8   : > { %3282 = vadd.xlane.f32.xlu1 %v3281_v51 }
 0x9fc   : > { %3294 = vadd.xlane.f32.xlu1 %v3293_v24 }
 0xa03   : > { %3497 = vrot.lane.b32.xlu0 %v6546_v25, %s6282_s15 }
 0xa0d   : > { %3582 = vrot.lane.b32.xlu1 %v6572_v34, %s6282_s15 }
 0xa11   : > { %3871 = vrot.lane.b32.xlu1 %v6544_v23, %s6283_s30 }
 0xa15   : > { %3809 = vrot.lane.b32.xlu1 %v6530_v17, %s6284_s9 }
 0xa19   : > { %3875 = vrot.lane.b32.xlu1 %v6556_v28, %s6283_s30 }
 0xa1d   : > { %3811 = vrot.lane.b32.xlu1 %v6556_v28, %s6284_s9 }
 0xa21   : > { %3879 = vrot.lane.b32.xlu1 %v6570_v32, %s6283_s30 }
 0xa22   : > { %3297 = vadd.xlane.f32.xlu0 %v3296_v40 }
 0xa25   : > { %3815 = vrot.lane.b32.xlu1 %v6570_v32, %s6284_s9 }
 0xa29   : > { %3883 = vrot.lane.b32.xlu1 %v6584_v36, %s6283_s30 }
 0xa2d   : > { %3821 = vrot.lane.b32.xlu1 %v6576_v35, %s6284_s9 }
 0xa31   : > { %v3289_v48 = vpop.xlane.xlu1 %3288 }
 0xa32   : > { %5993 = vrcp.f32 %v3289_v48 }
 0xa35   : > { %v3292_v28 = vpop.xlane.xlu0 %3291 }
 0xa36   : > { %5995 = vrcp.f32 %v3292_v28 }
 0xa38   : > { %3584 = vrot.lane.b32.xlu0 %v6562_v31, %s6282_s15  ;;  %s6286_s15 = smov [#allocation12]  }
 0xa3c   : > { %3873 = vrot.lane.b32.xlu0 %v6530_v17, %s6283_s30 }
 0xa3f   : > { %v5994_v47 = vpop.eup %5993 }
 0xa40   : > { %3807 = vrot.lane.b32.xlu0 %v6544_v23, %s6284_s9  ;;  %v3301_v32 = vpop.xlane.xlu1 %3300  ;;  %v3315_v52 = vmul.f32 %v5994_v47, %v7230_v53 }
 0xa41   : > { %5997 = vrcp.f32 %v3301_v32  ;;  %v3304_v59 = vpop.xlane.xlu0 %3303 }
 0xa42   : > { %5614 = vmatprep.mubr.msk.f32.mxu1 %vm1018_vm2, %v3315_v52 }
 0xa43   : > { %v5996_v23 = vpop.eup %5995 }
 0xa44   : > { %3877 = vrot.lane.b32.xlu0 %v6540_v22, %s6283_s30  ;;  %v3324_v8 = vpop.permute.xlu1 %3323  ;;  %v3316_v57 = vmul.f32 %v5996_v23, %v7234_v42 }
 0xa45   : > { %v3322_v45 = vpop.permute.xlu0 %3321  ;;  %5603 = vmatprep.subr.mxu0 %v3324_v8 }
 0xa46   : > { %5604 = vmatpush3.msra.mxu0 %v3324_v8 }
 0xa47   : > { %5605 = vmatprep.subr.mxu0 %v3322_v45 }
 0xa48   : > { %3881 = vrot.lane.b32.xlu0 %v6560_v29, %s6283_s30  ;;  %5606 = vmatpush3.msra.mxu0 %v3322_v45  ;;  %v3411_v17 = vpop.permute.xlu1 %3410 }
 0xa49   : > { %5610 = vmatprep.subr.mxu1 %v3411_v17 }
 0xa4a   : > { %5611 = vmatpush3.msra.mxu1 %v3411_v17 }
 0xa4c   : > { %3813 = vrot.lane.b32.xlu0 %v6540_v22, %s6284_s9  ;;  %v3409_v53 = vpop.permute.xlu1 %3408 }
 0xa4d   : > { %5612 = vmatprep.subr.mxu1 %v3409_v53 }
 0xa4e   : > { %v5998_v39 = vpop.eup %5997  ;;  %5613 = vmatpush3.msra.mxu1 %v3409_v53 }
 0xa4f   : > { %5615 = vmatmul.mubr.msk.f32.vlgmr.msra.gmra.mxu1 %vm1018_vm2, %v3316_v57  ;;  %v3319_v13 = vmul.f32 %v5998_v39, %v7238_v46 }
 0xa50   : > { %3885 = vrot.lane.b32.xlu0 %v6576_v35, %s6283_s30  ;;  %v3496_v42 = vpop.permute.xlu1 %3495 }
 0xa51   : > { %5628 = vmatprep.mubr.msk.f32.mxu1 %vm1018_vm2, %v3319_v13 }
 0xa54   : > { %3817 = vrot.lane.b32.xlu0 %v6560_v29, %s6284_s9 }
 0xa58   : > { %3819 = vrot.lane.b32.xlu0 %v6584_v36, %s6284_s9 }
 0xa76   : > { %v3286_v22 = vpop.xlane.xlu0 %3285 }
 0xa77   : > { %5999 = vrcp.f32 %v3286_v22 }
 0xa7a   : > { %v3498_v50 = vpop.permute.xlu0 %3497 }
 0xa7b   : > { %5617 = vmatprep.subr.mxu0 %v3498_v50 }
 0xa81   : > { %v3283_v26 = vpop.xlane.xlu1 %3282 }
 0xa82   : > { %6001 = vrcp.f32 %v3283_v26 }
 0xa84   : > { %v6000_v35 = vpop.eup %5999 }
 0xa85   : > { %v3295_v7 = vpop.xlane.xlu1 %3294  ;;  %v3314_v36 = vmul.f32 %v6000_v35, %v7257_v9 }
 0xa86   : > { %6003 = vrcp.f32 %v3295_v7 }
 0xa87   : > { %6005 = vrcp.f32 %v3304_v59 }
 0xa89   : > { %v3583_v46 = vpop.permute.xlu1 %3582 }
 0xa8d   : > { %v3872_v56 = vpop.permute.xlu1 %3871 }
 0xa8e   : > { %v3895_v55 = vsel %vm513_vm1, %v3872_v56, 0.0 }
 0xa8f   : > { %v6002_v60 = vpop.eup %6001  ;;  %3896 = vadd.xlane.f32.xlu1 %v3895_v55 }
 0xa90   : > { %v3313_v29 = vmul.f32 %v6002_v60, %v7261_v20 }
 0xa91   : > { %v3810_v43 = vpop.permute.xlu1 %3809 }
 0xa92   : > { %5607 = vmatprep.mubr.msk.f32.mxu0 %vm1018_vm2, %v3313_v29  ;;  %v3834_v52 = vsel %vm513_vm1, %v3810_v43, 0.0  ;;  %v3669_v29 = vld [vmem:[#allocation10 + $0x10] sm:$0xff] }
 0xa93   : > { %v6004_v61 = vpop.eup %6003  ;;  %5608 = vmatmul.mubr.msk.f32.vlgmr.msra.gmra.mxu0 %vm1018_vm2, %v3314_v36 }
 0xa94   : > { %5618 = vmatpush3.msra.mxu0 %v3498_v50  ;;  %v3317_v62 = vmul.f32 %v6004_v61, %v7265_v63  ;;  %v6006_v51 = vpop.eup %6005 }
 0xa95   : > { %5619 = vmatprep.subr.mxu0 %v3496_v42  ;;  %v3320_v9 = vmul.f32 %v6006_v51, %v7240_v54  ;;  %v3876_v24 = vpop.permute.xlu1 %3875 }
 0xa96   : > { %5620 = vmatpush3.msra.mxu0 %v3496_v42  ;;  %5621 = vmatprep.mubr.msk.f32.mxu0 %vm1018_vm2, %v3317_v62  ;;  %v3901_v45 = vsel %vm513_vm1, %v3876_v24, 0.0 }
 0xa97   : > { %5631 = vmatprep.subr.mxu0 %v3669_v29 }
 0xa99   : > { %v3812_v28 = vpop.permute.xlu1 %3811 }
 0xa9d   : > { %v3880_v59 = vpop.permute.xlu1 %3879 }
 0xa9e   : > { %v3907_v13 = vsel %vm513_vm1, %v3880_v59, 0.0 }
 0xaa1   : > { %v3816_v57 = vpop.permute.xlu1 %3815 }
 0xaa2   : > { %v3843_v26 = vsel %vm513_vm1, %v3816_v57, 0.0 }
 0xaa5   : > { %v3884_v50 = vpop.permute.xlu1 %3883 }
 0xaa6   : > { %v3913_v56 = vsel %vm513_vm1, %v3884_v50, 0.0 }
 0xaa9   : > { %v3822_v55 = vpop.permute.xlu1 %3821 }
 0xaaa   : > { %v3852_v60 = vsel %vm513_vm1, %v3822_v55, 0.0 }
 0xaab   : > { %v3298_v41 = vpop.xlane.xlu0 %3297 }
 0xaac   : > { %6007 = vrcp.f32 %v3298_v41 }
 0xaaf   : > { %v3585_v20 = vpop.permute.xlu0 %3584 }
 0xab0   : > { %5624 = vmatprep.subr.mxu1 %v3585_v20 }
 0xab1   : > { %5625 = vmatpush3.msra.mxu1 %v3585_v20 }
 0xab2   : > { %5626 = vmatprep.subr.mxu1 %v3583_v46 }
 0xab3   : > { %v3874_v1 = vpop.permute.xlu0 %3873  ;;  %5627 = vmatpush3.msra.mxu1 %v3583_v46 }
 0xab4   : > { %v3898_v63 = vsel %vm513_vm1, %v3874_v1, 0.0  ;;  %5629 = vmatmul.mubr.msk.f32.vlgmr.msra.gmra.mxu1 %vm1018_vm2, %v3320_v9 }
 0xab5   : > { %3899 = vadd.xlane.f32.xlu0 %v3898_v63 }
 0xab7   : > { %v3808_v18 = vpop.permute.xlu0 %3807 }
 0xab8   : > { %v3831_v40 = vsel %vm513_vm1, %v3808_v18, 0.0 }
 0xab9   : > { %v6008_v48 = vpop.eup %6007  ;;  %3832 = vadd.xlane.f32.xlu0 %v3831_v40 }
 0xaba   : > { %v3318_v47 = vmul.f32 %v6008_v48, %v7282_v58  ;;  %v3837_v58 = vsel %vm513_vm1, %v3812_v28, 0.0 }
 0xabb   : > { %v3878_v32 = vpop.permute.xlu0 %3877 }
 0xabc   : > { %v3904_v54 = vsel %vm513_vm1, %v3878_v32, 0.0  ;;  %5622 = vmatmul.mubr.msk.f32.vlgmr.msra.gmra.mxu0 %vm1018_vm2, %v3318_v47 }
 0xabd   : > { %3905 = vadd.xlane.f32.xlu1 %v3904_v54  ;;  %3835 = vadd.xlane.f32.xlu0 %v3834_v52 }
 0xabe   : > { %5632 = vmatpush3.msra.mxu0 %v3669_v29 }
 0xabf   : > { %v3882_v8 = vpop.permute.xlu0 %3881 }
 0xac0   : > { %v3910_v17 = vsel %vm513_vm1, %v3882_v8, 0.0 }
 0xac1   : > { %3911 = vadd.xlane.f32.xlu1 %v3910_v17  ;;  %3902 = vadd.xlane.f32.xlu0 %v3901_v45  ;;  %v7347_v17 = vstv %s5195_s18 }
 0xac3   : > { %v3814_v23 = vpop.permute.xlu0 %3813 }
 0xac4   : > { %v3840_v53 = vsel %vm513_vm1, %v3814_v23, 0.0 }
 0xac5   : > { %3841 = vadd.xlane.f32.xlu1 %v3840_v53  ;;  %3838 = vadd.xlane.f32.xlu0 %v3837_v58 }
 0xac7   : > { %v3886_v39 = vpop.permute.xlu0 %3885 }
 0xac8   : > { %v3916_v22 = vsel %vm513_vm1, %v3886_v39, 0.0 }
 0xac9   : > { %3917 = vadd.xlane.f32.xlu1 %v3916_v22  ;;  %3908 = vadd.xlane.f32.xlu0 %v3907_v13 }
 0xacb   : > { %v3818_v42 = vpop.permute.xlu0 %3817 }
 0xacc   : > { %v3846_v7 = vsel %vm513_vm1, %v3818_v42, 0.0 }
 0xacd   : > { %3847 = vadd.xlane.f32.xlu1 %v3846_v7  ;;  %3844 = vadd.xlane.f32.xlu0 %v3843_v26 }
 0xacf   : > { %v3820_v46 = vpop.permute.xlu0 %3819 }
 0xad0   : > { %v3849_v35 = vsel %vm513_vm1, %v3820_v46, 0.0 }
 0xad1   : > { %3850 = vadd.xlane.f32.xlu1 %v3849_v35  ;;  %3914 = vadd.xlane.f32.xlu0 %v3913_v56 }
 0xad5   : > { %3853 = vadd.xlane.f32.xlu0 %v3852_v60 }
 0xb0f   : > { %v5616_v57 = vpop.f32.mrf.mxu1 }
 0xb11   : > { %v3486_v55 = vpop.f32.mrf.mxu1 }
 0xb18   : > { %v3897_v36 = vpop.xlane.xlu1 %3896 }
 0xb19   : > { %v3919_v61 = vmax.f32 %v3897_v36, 1e-24 }
 0xb1b   : > { %6009 = vrsqrt.f32 %v3919_v61 }
 0xb28   : > { %v6010_v62 = vpop.eup %6009 }
 0xb29   : > { %v3953_v41 = vmul.f32 %v6010_v62, %v6526_v16 }
 0xb2b   : > { %3972 = vrot.lane.b32.xlu0 %v3953_v41, %s6283_s30 }
 0xb3e   : > { %v3900_v43 = vpop.xlane.xlu0 %3899 }
 0xb3f   : > { %v3920_v51 = vmax.f32 %v3900_v43, 1e-24 }
 0xb41   : > { %6011 = vrsqrt.f32 %v3920_v51 }
 0xb42   : > { %v3833_v20 = vpop.xlane.xlu0 %3832 }
 0xb43   : > { %v3855_v9 = vmax.f32 %v3833_v20, 1e-24 }
 0xb45   : > { %6013 = vrsqrt.f32 %v3855_v9 }
 0xb46   : > { %v3836_v24 = vpop.xlane.xlu0 %3835  ;;  %v3906_v1 = vpop.xlane.xlu1 %3905 }
 0xb47   : > { %v3856_v63 = vmax.f32 %v3836_v24, 1e-24  ;;  %v3922_v18 = vmax.f32 %v3906_v1, 1e-24 }
 0xb49   : > { %6015 = vrsqrt.f32 %v3856_v63 }
 0xb4a   : > { %6017 = vrsqrt.f32 %v3922_v18  ;;  %v3903_v40 = vpop.xlane.xlu0 %3902  ;;  %v3912_v48 = vpop.xlane.xlu1 %3911 }
 0xb4b   : > { %v3921_v28 = vmax.f32 %v3903_v40, 1e-24  ;;  %v3924_v47 = vmax.f32 %v3912_v48, 1e-24 }
 0xb4d   : > { %6019 = vrsqrt.f32 %v3921_v28 }
 0xb4e   : > { %v6012_v32 = vpop.eup %6011  ;;  %6021 = vrsqrt.f32 %v3924_v47  ;;  %v3839_v52 = vpop.xlane.xlu0 %3838 }
 0xb4f   : > { %v3842_v54 = vpop.xlane.xlu1 %3841  ;;  %v3857_v59 = vmax.f32 %v3839_v52, 1e-24  ;;  %v3954_v45 = vmul.f32 %v6012_v32, %v6524_v14 }
 0xb50   : > { %v3858_v8 = vmax.f32 %v3842_v54, 1e-24 }
 0xb51   : > { %6023 = vrsqrt.f32 %v3857_v59  ;;  %3974 = vrot.lane.b32.xlu1 %v3954_v45, %s6283_s30 }
 0xb52   : > { %v6014_v23 = vpop.eup %6013  ;;  %6025 = vrsqrt.f32 %v3858_v8  ;;  %v3909_v58 = vpop.xlane.xlu0 %3908 }
 0xb53   : > { %v3918_v53 = vpop.xlane.xlu1 %3917  ;;  %v3923_v39 = vmax.f32 %v3909_v58, 1e-24  ;;  %v5609_v22 = vpop.f32.mrf.mxu0  ;;  %v3937_v50 = vmul.f32 %v6014_v23, %v7347_v17 }
 0xb54   : > { %v3926_v13 = vmax.f32 %v3918_v53, 1e-24 }
 0xb55   : > { %6027 = vrsqrt.f32 %v3923_v39  ;;  %v3399_v42 = vpop.f32.mrf.mxu0  ;;  %v3945_v26 = vmul.f32 %v3937_v50, %v6526_v16 }
 0xb56   : > { %v6016_v7 = vpop.eup %6015  ;;  %6029 = vrsqrt.f32 %v3926_v13  ;;  %5633 = vmatprep.mubr.msk.f32.mxu0 %vm513_vm1, %v3399_v42  ;;  %v3845_v46 = vpop.xlane.xlu0 %3844 }
 0xb57   : > { %v3848_v56 = vpop.xlane.xlu1 %3847  ;;  %v6018_v35 = vpop.eup %6017  ;;  %v3859_v60 = vmax.f32 %v3845_v46, 1e-24  ;;  %5634 = vmatmul.mubr.msk.f32.vlgmr.msra.gmra.mxu0 %vm513_vm1, %v5609_v22  ;;  %3966 = vrot.lane.b32.xlu1 %v3945_v26, %s6284_s9  ;;  %v3938_v36 = vmul.f32 %v6016_v7, %v7347_v17 }
 0xb58   : > { %v3860_v29 = vmax.f32 %v3848_v56, 1e-24  ;;  %5636 = vmatprep.mubr.msk.f32.mxu0 %vm513_vm1, %v3486_v55  ;;  %v3956_v51 = vmul.f32 %v6018_v35, %v6532_v19 }
 0xb59   : > { %6031 = vrsqrt.f32 %v3859_v60  ;;  %v3946_v61 = vmul.f32 %v3938_v36, %v6524_v14 }
 0xb5a   : > { %v6020_v62 = vpop.eup %6019  ;;  %6033 = vrsqrt.f32 %v3860_v29  ;;  %v3915_v41 = vpop.xlane.xlu0 %3914 }
 0xb5b   : > { %v3851_v43 = vpop.xlane.xlu1 %3850  ;;  %v6022_v20 = vpop.eup %6021  ;;  %v3925_v9 = vmax.f32 %v3915_v41, 1e-24  ;;  %5637 = vmatmul.mubr.msk.f32.gmra.mxu0 %vm513_vm1, %v5616_v57  ;;  %3968 = vrot.lane.b32.xlu0 %v3946_v61, %s6284_s9  ;;  %v3955_v40 = vmul.f32 %v6020_v62, %v6536_v21 }
 0xb5c   : > { %v3861_v24 = vmax.f32 %v3851_v43, 1e-24  ;;  %4069 = vrot.lane.b32.xlu1 %v3956_v51, %s6283_s30  ;;  %v3958_v1 = vmul.f32 %v6022_v20, %v6546_v25 }
 0xb5d   : > { %6035 = vrsqrt.f32 %v3925_v9 }
 0xb5e   : > { %v6024_v63 = vpop.eup %6023  ;;  %6037 = vrsqrt.f32 %v3861_v24  ;;  %v3854_v18 = vpop.xlane.xlu0 %3853 }
 0xb5f   : > { %v6026_v48 = vpop.eup %6025  ;;  %v3862_v28 = vmax.f32 %v3854_v18, 1e-24  ;;  %4164 = vrot.lane.b32.xlu0 %v3958_v1, %s6283_s30  ;;  %v3939_v47 = vmul.f32 %v6024_v63, %v7347_v17 }
 0xb60   : > { %4067 = vrot.lane.b32.xlu1 %v3955_v40, %s6283_s30  ;;  %v3940_v32 = vmul.f32 %v6026_v48, %v7347_v17 }
 0xb61   : > { %6039 = vrsqrt.f32 %v3862_v28  ;;  %v3947_v52 = vmul.f32 %v3939_v47, %v6536_v21 }
 0xb62   : > { %v6028_v54 = vpop.eup %6027  ;;  %v3948_v59 = vmul.f32 %v3940_v32, %v6532_v19 }
 0xb63   : > { %v6030_v8 = vpop.eup %6029  ;;  %v3957_v23 = vmul.f32 %v6028_v54, %v6552_v27 }
 0xb64   : > { %4061 = vrot.lane.b32.xlu1 %v3947_v52, %s6284_s9  ;;  %4063 = vrot.lane.b32.xlu0 %v3948_v59, %s6284_s9  ;;  %v3960_v58 = vmul.f32 %v6030_v8, %v6562_v31  ;;  %v2663_v52 = vadd.f32 %v7188_v2, %v7184_v0  ;;  %v2683_v0 = vadd.f32 %v7204_v37, %v7198_v12 }
 0xb66   : > { %v6032_v45 = vpop.eup %6031 }
 0xb67   : > { %v6034_v53 = vpop.eup %6033  ;;  %v3941_v57 = vmul.f32 %v6032_v45, %v7347_v17  ;;  %v2673_v45 = vadd.f32 %v7196_v11, %v7190_v3  ;;  %v2693_v3 = vadd.f32 %v7214_v49, %v7206_v15 }
 0xb68   : > { %4162 = vrot.lane.b32.xlu1 %v3957_v23, %s6283_s30  ;;  %4259 = vrot.lane.b32.xlu0 %v3960_v58, %s6283_s30  ;;  %v3942_v39 = vmul.f32 %v6034_v53, %v7347_v17  ;;  %v2668_v58 = vadd.f32 %v7200_v5, %v7194_v6 }
 0xb69   : > { %v3949_v13 = vmul.f32 %v3941_v57, %v6552_v27 }
 0xb6a   : > { %v6036_v22 = vpop.eup %6035  ;;  %v3950_v50 = vmul.f32 %v3942_v39, %v6546_v25 }
 0xb6b   : > { %v6038_v42 = vpop.eup %6037  ;;  %v3959_v46 = vmul.f32 %v6036_v22, %v6572_v34 }
 0xb6c   : > { %4156 = vrot.lane.b32.xlu1 %v3949_v13, %s6284_s9  ;;  %4158 = vrot.lane.b32.xlu0 %v3950_v50, %s6284_s9  ;;  %v3943_v26 = vmul.f32 %v6038_v42, %v7347_v17  ;;  %v2678_v13 = vadd.f32 %v7208_v33, %v7202_v30  ;;  %v3963_v42 = vld [vmem:[#allocation9 + $0x38] sm:$0xff] }
 0xb6e   : > { %v6040_v7 = vpop.eup %6039  ;;  %v3951_v56 = vmul.f32 %v3943_v26, %v6572_v34 }
 0xb6f   : > { %v3944_v35 = vmul.f32 %v6040_v7, %v7347_v17  ;;  %v3962_v7 = vld [vmem:[#allocation9 + $0x30] sm:$0xff] }
 0xb70   : > { %4257 = vrot.lane.b32.xlu1 %v3959_v46, %s6283_s30  ;;  %4251 = vrot.lane.b32.xlu0 %v3951_v56, %s6284_s9  ;;  %s6194_s30 = sshll.u32 %s6286_s15, 4  ;;  %s6195_s30 = int_to_ptr.vmem [resolvable:$false] %s6194_s30 }
 0xb71   : > { %v3952_v55 = vmul.f32 %v3944_v35, %v6562_v31  ;;  %p6197_p11 = scmp.lt.s32.totalorder %s7560_s23, %s6195_s30 }
 0xb74   : > { %4253 = vrot.lane.b32.xlu1 %v3952_v55, %s6284_s9  ;;  %v5630_v60 = vpop.f32.mrf.mxu1  ;;  %s6196_s9 = scalar_lea.vmem %s6195_s30, 2048 }
 0xb75   : > { %p6198_p9 = scmp.lt.s32.totalorder %s6196_s9, %s6190_s20 }
 0xb76   : > { %v3660_v61 = vpop.f32.mrf.mxu1 }
 0xb77   : > { %p6199_p1 = por %p6198_p9, %p6197_p11 }
 0xb79   : > { %p6200_p6 = pnand %p6199_p1, %p6193_p5 }
 0xb7c   : > { %v5623_v29 = vpop.f32.mrf.mxu0 }
 0xb7e   : > { %v3573_v36 = vpop.f32.mrf.mxu0 }
 0xb7f   : > { %5639 = vmatprep.mubr.msk.f32.mxu0 %vm513_vm1, %v3573_v36 }
 0xb80   : > { %5640 = vmatmul.mubr.msk.f32.gmra.mxu0 %vm513_vm1, %v5623_v29 }
 0xb81   : > { %5642 = vmatprep.mubr.msk.f32.mxu0 %vm513_vm1, %v3660_v61 }
 0xb84   : > { %5643 = vmatmul.mubr.msk.f32.gmra.mxu0 %vm513_vm1, %v5630_v60 }
 0xb9d   : > { %v3973_v62 = vpop.permute.xlu0 %3972 }
 0xbc3   : > { %v3975_v17 = vpop.permute.xlu1 %3974 }
 0xbc4   : > { %5645 = vmatprep.subr.msk.mxu1 %vm513_vm1, %v3975_v17 }
 0xbc5   : > { %5646 = vmatpush3.xpose.msk.msra.mxu1 %vm513_vm1, %v3975_v17 }
 0xbc6   : > { %5647 = vmatprep.subr.msk.mxu1 %vm513_vm1, %v3973_v62 }
 0xbc9   : > { %5648 = vmatpush3.xpose.msk.msra.mxu1 %vm513_vm1, %v3973_v62  ;;  %v3967_v41 = vpop.permute.xlu1 %3966 }
 0xbca   : > { %5649 = vmatprep.mubr.msk.f32.mxu1 %vm513_vm1, %v3967_v41 }
 0xbcd   : > { %v3969_v43 = vpop.permute.xlu0 %3968 }
 0xbce   : > { %v4070_v51 = vpop.permute.xlu1 %4069  ;;  %5650 = vmatmul.mubr.msk.f32.vlgmr.msra.gmra.mxu1 %vm513_vm1, %v3969_v43 }
 0xbcf   : > { %5652 = vmatprep.subr.msk.mxu1 %vm513_vm1, %v4070_v51 }
 0xbd0   : > { %5653 = vmatpush3.xpose.msk.msra.mxu1 %vm513_vm1, %v4070_v51 }
 0xbd1   : > { %v4165_v20 = vpop.permute.xlu0 %4164 }
 0xbd2   : > { %v4068_v9 = vpop.permute.xlu1 %4067  ;;  %5659 = vmatprep.subr.msk.mxu0 %vm513_vm1, %v4165_v20 }
 0xbd3   : > { %5654 = vmatprep.subr.msk.mxu1 %vm513_vm1, %v4068_v9  ;;  %5660 = vmatpush3.xpose.msk.msra.mxu0 %vm513_vm1, %v4165_v20 }
 0xbd4   : > { %5655 = vmatpush3.xpose.msk.msra.mxu1 %vm513_vm1, %v4068_v9 }
 0xbd6   : > { %v4064_v24 = vpop.permute.xlu0 %4063  ;;  %v4062_v1 = vpop.permute.xlu1 %4061 }
 0xbd7   : > { %5656 = vmatprep.mubr.msk.f32.mxu1 %vm513_vm1, %v4062_v1 }
 0xbd8   : > { %5657 = vmatmul.mubr.msk.f32.vlgmr.msra.gmra.mxu1 %vm513_vm1, %v4064_v24 }
 0xbda   : > { %v4260_v63 = vpop.permute.xlu0 %4259  ;;  %v4163_v18 = vpop.permute.xlu1 %4162 }
 0xbdb   : > { %5661 = vmatprep.subr.msk.mxu0 %vm513_vm1, %v4163_v18  ;;  %5666 = vmatprep.subr.msk.mxu1 %vm513_vm1, %v4260_v63 }
 0xbdc   : > { %5662 = vmatpush3.xpose.msk.msra.mxu0 %vm513_vm1, %v4163_v18  ;;  %5667 = vmatpush3.xpose.msk.msra.mxu1 %vm513_vm1, %v4260_v63 }
 0xbde   : > { %v4159_v40 = vpop.permute.xlu0 %4158  ;;  %v4157_v48 = vpop.permute.xlu1 %4156 }
 0xbdf   : > { %5663 = vmatprep.mubr.msk.f32.mxu0 %vm513_vm1, %v4157_v48 }
 0xbe0   : > { %5664 = vmatmul.mubr.msk.f32.vlgmr.msra.gmra.mxu0 %vm513_vm1, %v4159_v40 }
 0xbe2   : > { %v4252_v28 = vpop.permute.xlu0 %4251  ;;  %v4258_v47 = vpop.permute.xlu1 %4257 }
 0xbe3   : > { %5668 = vmatprep.subr.msk.mxu1 %vm513_vm1, %v4258_v47  ;;  %5670 = vmatprep.mubr.msk.f32.mxu1 %vm513_vm1, %v4252_v28 }
 0xbe4   : > { %5669 = vmatpush3.xpose.msk.msra.mxu1 %vm513_vm1, %v4258_v47 }
 0xbe6   : > { %v4254_v32 = vpop.permute.xlu1 %4253 }
 0xbe7   : > { %5671 = vmatmul.mubr.msk.f32.vlgmr.msra.gmra.mxu1 %vm513_vm1, %v4254_v32 }
 0xc17   : > { %v5635_v54 = vpop.f32.mrf.mxu0 }
 0xc18   : > { %v7420_v59 = vadd.f32 %v5635_v54, %v2663_v52 }
 0xc19   : > { %v7422_v8 = vpop.f32.mrf.mxu0 }
 0xc1b   : > { %v5638_v23 = vpop.f32.mrf.mxu0 }
 0xc1c   : > { %v7428_v53 = vadd.f32 %v5638_v23, %v2673_v45 }
 0xc1d   : > { %v3770_v57 = vpop.f32.mrf.mxu0 }
 0xc1e   : > { %v7430_v39 = vadd.f32 %v3770_v57, %v2668_v58 }
 0xc40   : > { %v5641_v2 = vpop.f32.mrf.mxu0 }
 0xc41   : > { %v7436_v22 = vadd.f32 %v5641_v2, %v2683_v0 }
 0xc42   : > { %v3780_v50 = vpop.f32.mrf.mxu0 }
 0xc43   : > { %v7440_v11 = vadd.f32 %v3780_v50, %v2678_v13 }
 0xc44   : > { %v5644_v6 = vpop.f32.mrf.mxu0 }
 0xc45   : > { %v7442_v5 = vadd.f32 %v5644_v6, %v2693_v3 }
 0xc46   : > { %v7447_v60 = vpop.f32.mrf.mxu0 }
 0xc8e   : > { %v5651_v26 = vpop.f32.mrf.mxu1 }
 0xc8f   : > { %v4056_v46 = vadd.f32 %v5651_v26, %v3963_v42 }
 0xc90   : > { %v4050_v12 = vpop.f32.mrf.mxu1 }
 0xc91   : > { %v4051_v37 = vadd.f32 %v4050_v12, %v3962_v7  ;;  %v4347_v56 = vsel %vm1018_vm2, %v4056_v46, -inf }
 0xc92   : > { %4348 = vmax.xlane.f32.xlu1 %v4347_v56 }
 0xc93   : > { %v4344_v30 = vsel %vm1018_vm2, %v4051_v37, -inf }
 0xc94   : > { %4345 = vmax.xlane.f32.xlu0 %v4344_v30 }
 0xc98   : > { %v5658_v33 = vpop.f32.mrf.mxu1 }
 0xc99   : > { %v4151_v49 = vadd.f32 %v5658_v33, %v3963_v42 }
 0xc9a   : > { %v4145_v35 = vpop.f32.mrf.mxu1 }
 0xc9b   : > { %v4146_v15 = vadd.f32 %v4145_v35, %v3962_v7  ;;  %v4353_v61 = vsel %vm1018_vm2, %v4151_v49, -inf }
 0xc9d   : > { %v4350_v55 = vsel %vm1018_vm2, %v4146_v15, -inf }
 0xc9e   : > { %4351 = vmax.xlane.f32.xlu0 %v4350_v55 }
 0xca0   : > { %v5665_v29 = vpop.f32.mrf.mxu0 }
 0xca1   : > { %v7449_v36 = vadd.f32 %v5665_v29, %v3963_v42 }
 0xca2   : > { %4354 = vmax.xlane.f32.xlu0 %v4353_v61  ;;  %v4240_v17 = vpop.f32.mrf.mxu0 }
 0xca3   : > { %v7452_v62 = vadd.f32 %v4240_v17, %v3962_v7  ;;  %v4359_v41 = vsel %vm1018_vm2, %v7449_v36, -inf }
 0xca5   : > { %v4356_v43 = vsel %vm1018_vm2, %v7452_v62, -inf }
 0xca6   : > { %4360 = vmax.xlane.f32.xlu0 %v4359_v41  ;;  %4357 = vmax.xlane.f32.xlu1 %v4356_v43 }
 0xca7   : > { %v5672_v51 = vpop.f32.mrf.mxu1 }
 0xca8   : > { %v4341_v20 = vadd.f32 %v5672_v51, %v3963_v42 }
 0xca9   : > { %v4335_v9 = vpop.f32.mrf.mxu1 }
 0xcaa   : > { %v4336_v24 = vadd.f32 %v4335_v9, %v3962_v7  ;;  %v4365_v1 = vsel %vm1018_vm2, %v4341_v20, -inf }
 0xcab   : > { %4366 = vmax.xlane.f32.xlu0 %v4365_v1 }
 0xcac   : > { %v4362_v63 = vsel %vm1018_vm2, %v4336_v24, -inf }
 0xcad   : > { %4363 = vmax.xlane.f32.xlu1 %v4362_v63 }
 0xd1b   : > { %v4349_v18 = vpop.xlane.xlu1 %4348 }
 0xd1c   : > { %v4369_v40 = vsub.f32 %v4056_v46, %v4349_v18 }
 0xd1d   : > { %v4346_v48 = vpop.xlane.xlu0 %4345 }
 0xd1e   : > { %v4378_v28 = vmul.f32 1.442695, %v4369_v40  ;;  %v4368_v47 = vsub.f32 %v4051_v37, %v4346_v48 }
 0xd20   : > { %6041 = vpow2.f32 %v4378_v28  ;;  %v4376_v32 = vmul.f32 1.442695, %v4368_v47 }
 0xd22   : > { %6043 = vpow2.f32 %v4376_v32 }
 0xd27   : > { %v4352_v52 = vpop.xlane.xlu0 %4351 }
 0xd28   : > { %v4370_v54 = vsub.f32 %v4146_v15, %v4352_v52 }
 0xd2a   : > { %v4380_v45 = vmul.f32 1.442695, %v4370_v54 }
 0xd2b   : > { %v4355_v23 = vpop.xlane.xlu0 %4354 }
 0xd2c   : > { %6045 = vpow2.f32 %v4380_v45  ;;  %v4371_v58 = vsub.f32 %v4151_v49, %v4355_v23 }
 0xd2d   : > { %v7460_v57 = vpop.eup %6041 }
 0xd2e   : > { %v4382_v0 = vmul.f32 1.442695, %v4371_v58  ;;  %v4395_v2 = vsel %vm1018_vm2, %v7460_v57, 0.0 }
 0xd2f   : > { %v6044_v13 = vpop.eup %6043  ;;  %v4361_v50 = vpop.xlane.xlu0 %4360  ;;  %4396 = vadd.xlane.f32.xlu0 %v4395_v2 }
 0xd30   : > { %6047 = vpow2.f32 %v4382_v0  ;;  %v4392_v3 = vsel %vm1018_vm2, %v6044_v13, 0.0  ;;  %v4358_v6 = vpop.xlane.xlu1 %4357  ;;  %v4373_v61 = vsub.f32 %v7449_v36, %v4361_v50 }
 0xd31   : > { %4393 = vadd.xlane.f32.xlu1 %v4392_v3  ;;  %v4372_v41 = vsub.f32 %v7452_v62, %v4358_v6  ;;  %v4780_v3 = vld [vmem:[#allocation10 + $0x18] sm:$0xff] }
 0xd32   : > { %v4386_v17 = vmul.f32 1.442695, %v4373_v61 }
 0xd33   : > { %v4384_v43 = vmul.f32 1.442695, %v4372_v41 }
 0xd34   : > { %v4367_v42 = vpop.xlane.xlu0 %4366 }
 0xd35   : > { %v4375_v26 = vsub.f32 %v4341_v20, %v4367_v42 }
 0xd36   : > { %v4364_v7 = vpop.xlane.xlu1 %4363 }
 0xd37   : > { %v4390_v46 = vmul.f32 1.442695, %v4375_v26  ;;  %v4374_v12 = vsub.f32 %v4336_v24, %v4364_v7 }
 0xd39   : > { %v7465_v37 = vpop.eup %6045  ;;  %6049 = vpow2.f32 %v4390_v46  ;;  %v4388_v56 = vmul.f32 1.442695, %v4374_v12 }
 0xd3a   : > { %v4398_v30 = vsel %vm1018_vm2, %v7465_v37, 0.0 }
 0xd3b   : > { %6051 = vpow2.f32 %v4388_v56  ;;  %4399 = vadd.xlane.f32.xlu1 %v4398_v30 }
 0xd3c   : > { %6053 = vpow2.f32 %v4386_v17 }
 0xd3d   : > { %v7469_v33 = vpop.eup %6047  ;;  %6055 = vpow2.f32 %v4384_v43 }
 0xd3e   : > { %v4401_v35 = vsel %vm1018_vm2, %v7469_v33, 0.0 }
 0xd3f   : > { %4402 = vadd.xlane.f32.xlu0 %v4401_v35 }
 0xd46   : > { %v7473_v15 = vpop.eup %6049 }
 0xd47   : > { %v4413_v49 = vsel %vm1018_vm2, %v7473_v15, 0.0 }
 0xd48   : > { %v7477_v55 = vpop.eup %6051  ;;  %4414 = vadd.xlane.f32.xlu0 %v4413_v49  ;;  %v2658_v49 = vadd.f32 %v7192_v4, %v7186_v10 }
 0xd49   : > { %v4410_v29 = vsel %vm1018_vm2, %v7477_v55, 0.0  ;;  %v7489_v51 = vpop.eup %6053 }
 0xd4a   : > { %4411 = vadd.xlane.f32.xlu1 %v4410_v29  ;;  %v5228_v29 = vld [vmem:[%s7613_s6] ss:$0 sm:$0xff]  ;;  %v3799_v61 = vadd.f32 %v7422_v8, %v2658_v49 }
 0xd5b   : > { %4434 = vrot.lane.b32.xlu1 %v6524_v14, %s6285_s12  ;;  %v4407_v14 = vsel %vm1018_vm2, %v7489_v51, 0.0 }
 0xd5e   : > { %4432 = vrot.lane.b32.xlu0 %v6526_v16, %s6285_s12  ;;  %v7493_v16 = vpop.eup %6055 }
 0xd5f   : > { %4521 = vrot.lane.b32.xlu1 %v6532_v19, %s6285_s12  ;;  %v4404_v19 = vsel %vm1018_vm2, %v7493_v16, 0.0 }
 0xd62   : > { %4608 = vrot.lane.b32.xlu0 %v6546_v25, %s6285_s12 }
 0xd63   : > { %4519 = vrot.lane.b32.xlu1 %v6536_v21, %s6285_s12 }
 0xd67   : > { %4606 = vrot.lane.b32.xlu1 %v6552_v27, %s6285_s12 }
 0xd81   : > { %4408 = vadd.xlane.f32.xlu0 %v4407_v14 }
 0xd8b   : > { %4405 = vadd.xlane.f32.xlu1 %v4404_v19 }
 0xd97   : > { %4695 = vrot.lane.b32.xlu0 %v6562_v31, %s6285_s12 }
 0xd9c   : > { %4693 = vrot.lane.b32.xlu1 %v6572_v34, %s6285_s12 }
 0xdb8   : > { %v4397_v25 = vpop.xlane.xlu0 %4396 }
 0xdba   : > { %v4394_v21 = vpop.xlane.xlu1 %4393 }
 0xdbb   : > { %6057 = vrcp.f32 %v4394_v21 }
 0xdbc   : > { %6059 = vrcp.f32 %v4397_v25 }
 0xdc4   : > { %v4400_v36 = vpop.xlane.xlu1 %4399 }
 0xdc5   : > { %6061 = vrcp.f32 %v4400_v36  ;;  %v2688_v36 = vadd.f32 %v7218_v38, %v7210_v44 }
 0xdc8   : > { %v6058_v27 = vpop.eup %6057  ;;  %v4403_v20 = vpop.xlane.xlu0 %4402 }
 0xdc9   : > { %v4424_v62 = vmul.f32 %v6058_v27, %v6044_v13  ;;  %6063 = vrcp.f32 %v4403_v20  ;;  %v6060_v63 = vpop.eup %6059  ;;  %v3805_v20 = vadd.f32 %v7447_v60, %v2688_v36 }
 0xdca   : > { %v4425_v40 = vmul.f32 %v6060_v63, %v7460_v57 }
 0xdcb   : > { %5677 = vmatprep.mubr.msk.f32.mxu0 %vm1018_vm2, %v4424_v62 }
 0xdd1   : > { %v4415_v9 = vpop.xlane.xlu0 %4414 }
 0xdd2   : > { %v6062_v18 = vpop.eup %6061 }
 0xdd3   : > { %v4412_v24 = vpop.xlane.xlu1 %4411  ;;  %v4426_v28 = vmul.f32 %v6062_v18, %v7465_v37 }
 0xdd4   : > { %6065 = vrcp.f32 %v4412_v24 }
 0xdd5   : > { %v4433_v1 = vpop.permute.xlu0 %4432  ;;  %6067 = vrcp.f32 %v4415_v9 }
 0xdd6   : > { %v6064_v47 = vpop.eup %6063 }
 0xdd7   : > { %v4435_v31 = vpop.permute.xlu1 %4434  ;;  %v4427_v52 = vmul.f32 %v6064_v47, %v7469_v33 }
 0xdd8   : > { %5673 = vmatprep.subr.mxu0 %v4435_v31 }
 0xdd9   : > { %v4609_v34 = vpop.permute.xlu0 %4608  ;;  %5674 = vmatpush3.msra.mxu0 %v4435_v31 }
 0xdda   : > { %5675 = vmatprep.subr.mxu0 %v4433_v1  ;;  %5687 = vmatprep.subr.mxu1 %v4609_v34 }
 0xddb   : > { %5676 = vmatpush3.msra.mxu0 %v4433_v1  ;;  %5688 = vmatpush3.msra.mxu1 %v4609_v34  ;;  %v4522_v48 = vpop.permute.xlu1 %4521 }
 0xddc   : > { %5678 = vmatmul.mubr.msk.f32.vlgmr.msra.gmra.mxu0 %vm1018_vm2, %v4425_v40  ;;  %5680 = vmatprep.subr.mxu0 %v4522_v48 }
 0xddd   : > { %5681 = vmatpush3.msra.mxu0 %v4522_v48  ;;  %5684 = vmatprep.mubr.msk.f32.mxu0 %vm1018_vm2, %v4426_v28 }
 0xddf   : > { %v4520_v32 = vpop.permute.xlu1 %4519 }
 0xde0   : > { %5682 = vmatprep.subr.mxu0 %v4520_v32 }
 0xde1   : > { %v6066_v54 = vpop.eup %6065  ;;  %5683 = vmatpush3.msra.mxu0 %v4520_v32 }
 0xde2   : > { %5685 = vmatmul.mubr.msk.f32.vlgmr.msra.gmra.mxu0 %vm1018_vm2, %v4427_v52  ;;  %v4430_v45 = vmul.f32 %v6066_v54, %v7477_v55  ;;  %v6068_v2 = vpop.eup %6067 }
 0xde3   : > { %v4607_v23 = vpop.permute.xlu1 %4606  ;;  %v4431_v50 = vmul.f32 %v6068_v2, %v7473_v15 }
 0xde4   : > { %5689 = vmatprep.subr.mxu1 %v4607_v23  ;;  %5698 = vmatprep.mubr.msk.f32.mxu0 %vm1018_vm2, %v4430_v45 }
 0xde5   : > { %5690 = vmatpush3.msra.mxu1 %v4607_v23 }
 0xde6   : > { %5701 = vmatprep.subr.mxu1 %v4780_v3 }
 0xe0a   : > { %v4409_v58 = vpop.xlane.xlu0 %4408 }
 0xe0b   : > { %6069 = vrcp.f32 %v4409_v58 }
 0xe0e   : > { %v4696_v57 = vpop.permute.xlu0 %4695 }
 0xe0f   : > { %5694 = vmatprep.subr.mxu0 %v4696_v57 }
 0xe10   : > { %5695 = vmatpush3.msra.mxu0 %v4696_v57 }
 0xe14   : > { %v4406_v0 = vpop.xlane.xlu1 %4405 }
 0xe15   : > { %6071 = vrcp.f32 %v4406_v0 }
 0xe18   : > { %v4694_v13 = vpop.permute.xlu1 %4693  ;;  %v6070_v6 = vpop.eup %6069 }
 0xe19   : > { %5696 = vmatprep.subr.mxu0 %v4694_v13  ;;  %v4429_v7 = vmul.f32 %v6070_v6, %v7489_v51 }
 0xe1a   : > { %5697 = vmatpush3.msra.mxu0 %v4694_v13 }
 0xe1b   : > { %5699 = vmatmul.mubr.msk.f32.vlgmr.msra.gmra.mxu0 %vm1018_vm2, %v4431_v50 }
 0xe22   : > { %v6072_v42 = vpop.eup %6071 }
 0xe23   : > { %v4428_v26 = vmul.f32 %v6072_v42, %v7493_v16 }
 0xe25   : > { %5691 = vmatprep.mubr.msk.f32.mxu1 %vm1018_vm2, %v4428_v26 }
 0xe26   : > { %5692 = vmatmul.mubr.msk.f32.vlgmr.msra.gmra.mxu1 %vm1018_vm2, %v4429_v7 }
 0xe27   : > { %5702 = vmatpush3.msra.mxu1 %v4780_v3 }
 0xe9c   : > { %v5679_v46 = vpop.f32.mrf.mxu0 }
 0xe9e   : > { %v4510_v12 = vpop.f32.mrf.mxu0 }
 0xe9f   : > { %5703 = vmatprep.mubr.msk.f32.mxu1 %vm513_vm1, %v4510_v12 }
 0xea0   : > { %5704 = vmatmul.mubr.msk.f32.vlgmr.msra.gmra.mxu1 %vm513_vm1, %v5679_v46 }
 0xea2   : > { %v5686_v37 = vpop.f32.mrf.mxu0 }
 0xea4   : > { %v4597_v56 = vpop.f32.mrf.mxu0 }
 0xea5   : > { %5706 = vmatprep.mubr.msk.f32.mxu1 %vm513_vm1, %v4597_v56 }
 0xea6   : > { %5707 = vmatmul.mubr.msk.f32.gmra.mxu1 %vm513_vm1, %v5686_v37 }
 0xedb   : > { %v5700_v30 = vpop.f32.mrf.mxu0 }
 0xedd   : > { %v4771_v15 = vpop.f32.mrf.mxu0 }
 0xee6   : > { %v5693_v33 = vpop.f32.mrf.mxu1 }
 0xee8   : > { %v4684_v35 = vpop.f32.mrf.mxu1 }
 0xee9   : > { %5709 = vmatprep.mubr.msk.f32.mxu1 %vm513_vm1, %v4684_v35 }
 0xeea   : > { %5710 = vmatmul.mubr.msk.f32.gmra.mxu1 %vm513_vm1, %v5693_v33 }
 0xeeb   : > { %5712 = vmatprep.mubr.msk.f32.mxu1 %vm513_vm1, %v4771_v15 }
 0xeee   : > { %5713 = vmatmul.mubr.msk.f32.gmra.mxu1 %vm513_vm1, %v5700_v30 }
 0xf60   : > { %v5705_v55 = vpop.f32.mrf.mxu1 }
 0xf61   : > { %v4911_v17 = vadd.f32 %v5705_v55, %v7420_v59 }
 0xf62   : > { %v4871_v41 = vpop.f32.mrf.mxu1 }
 0xf63   : > { %v4926_v43 = vadd.f32 %v5228_v29, %v4911_v17  ;;  %v4910_v51 = vadd.f32 %v4871_v41, %v3799_v61 }
 0xf65   : > { %4934 = vst.msk [vmem:[%s7531_s14 + $0x8] sm:$0xff] %vm375_vm0, %v4926_v43  ;;  %v4925_v10 = vadd.f32 %v5228_v29, %v4910_v51 }
 0xf66   : > { %v5708_v4 = vpop.f32.mrf.mxu1 }
 0xf67   : > { %4933 = vst.msk [vmem:[%s7531_s14] sm:$0xff] %vm375_vm0, %v4925_v10  ;;  %v4913_v8 = vadd.f32 %v5708_v4, %v7428_v53 }
 0xf68   : > { %v4881_v59 = vpop.f32.mrf.mxu1 }
 0xf69   : > { %v4928_v14 = vadd.f32 %v5228_v29, %v4913_v8  ;;  %v4912_v16 = vadd.f32 %v4881_v59, %v7430_v39 }
 0xf6b   : > { %4936 = vst.msk [vmem:[%s7531_s14 + $0x18] sm:$0xff] %vm375_vm0, %v4928_v14  ;;  %v4927_v19 = vadd.f32 %v5228_v29, %v4912_v16 }
 0xf6d   : > { %4935 = vst.msk [vmem:[%s7531_s14 + $0x10] sm:$0xff] %vm375_vm0, %v4927_v19 }
 0xfaa   : > { %v5711_v21 = vpop.f32.mrf.mxu1 }
 0xfab   : > { %v4915_v25 = vadd.f32 %v5711_v21, %v7436_v22 }
 0xfac   : > { %v4891_v27 = vpop.f32.mrf.mxu1 }
 0xfad   : > { %v4930_v53 = vadd.f32 %v5228_v29, %v4915_v25  ;;  %v4914_v62 = vadd.f32 %v4891_v27, %v7440_v11 }
 0xfae   : > { %v5714_v39 = vpop.f32.mrf.mxu1 }
 0xfaf   : > { %4938 = vst.msk [vmem:[%s7531_s14 + $0x28] sm:$0xff] %vm375_vm0, %v4930_v53  ;;  %v4929_v9 = vadd.f32 %v5228_v29, %v4914_v62  ;;  %v4917_v24 = vadd.f32 %v5714_v39, %v7442_v5 }
 0xfb0   : > { %v4901_v22 = vpop.f32.mrf.mxu1 }
 0xfb1   : > { %4937 = vst.msk [vmem:[%s7531_s14 + $0x20] sm:$0xff] %vm375_vm0, %v4929_v9  ;;  %v4932_v44 = vadd.f32 %v5228_v29, %v4917_v24  ;;  %v4916_v38 = vadd.f32 %v4901_v22, %v3805_v20 }
 0xfb3   : > { %4940 = vst.msk [vmem:[%s7531_s14 + $0x38] sm:$0xff] %vm375_vm0, %v4932_v44  ;;  %v4931_v11 = vadd.f32 %v5228_v29, %v4916_v38 }
 0xfb5   : > { %4939 = vst.msk [vmem:[%s7531_s14 + $0x30] sm:$0xff] %vm375_vm0, %v4931_v11 }
 0xfb6   : > { %6203 = shalt.err (!%p6200_p6)
}
 0xfb7   : > { %s6204_s18 = scalar_lea.hbm %s7558_s11, 1024  ;;  %s6208_s13 = scalar_lea.hbm %s7614_s7, 2048 }
 0xfb8   : > { %p6205_p7 = scmp.ne.s32.totalorder %s7558_s11, %s6204_s18  ;;  %p6209_p0 = scmp.lt.s32.totalorder %s7558_s11, %s7614_s7 }
 0xfb9   : > { %p6210_p2 = scmp.lt.s32.totalorder %s6208_s13, %s6204_s18 }
 0xfba   : > { %p6206_p4 = pnand %p6205_p7, %p7639_p13 }
 0xfbb   : > { %p6211_p12 = por %p6210_p2, %p6209_p0 }
 0xfbc   : > { %p6207_p8 = pneg %p6206_p4 }
 0xfbe   : > { %p6212_p10 = pnand %p6211_p12, %p6207_p8 }
 0xfc0   : > { %6215 = shalt.err (!%p6212_p10)
}
 0xfc1   : > { %s6287_s10 = smov 128   ;;  %s6288_s16 = smov 8  }
 0xfc2   : > { %5733 = dma.vmem_to_hbm [thread:$0]  (%p7639_p13), %s7560_s23, 1024, %s7558_s11, %s4942_s28, %s6287_s10, %s6287_s10, %s6288_s16  }
 0xfc3 PF: > { %s4971_s20 = sand.u32 1, %s6254_s24   ;;  %p7640_p3 = scmp.ne.s32.totalorder %s7623_s8, 0 }
 0xfc4   : > { %p7641_p5 = scmp.ge.s32.totalorder %s6266_s27, 2  ;;  %s4972_s15 = scalar_lea.sflag [#allocation4], %s4971_s20 }
 0xfc6   : > { %p5753_p11 = pnand %p7641_p5, %p7640_p3 }
 0xfc8   : > { %p5754_p9 = pneg %p5753_p11 }
 0xfca   : > { %6249 = dma.done.wait (%p5754_p9), %s4972_s15, 1024  }
 0xfcb   : > { %6251 = vsyncadd (%p5754_p9), %s4972_s15, 4294966272  ;;  %p23_p1 = scmp.ge.s32.totalorder %s6423_s19, 4   ;;  %s7642_s24 = smov %s6258_s25 }
 0xfcc   : > { %s7643_s25 = smov %s6262_s26  ;;  %s7644_s26 = smov %s6439_s22 }
 0xfcd   : > { %s7645_s27 = smov %s6423_s19  ;;  %25 = sbr.rel (!%p23_p1) target bundleno = 10 (0xa), region = 113 }
 0xfd2   :  { %4977 = vsyncpa [#allocation3], 1 }
 0xfd3   :  { %4979 = vsyncpa [#allocation3 + $0x1], 1 }
 0xfd4   :  { %4980 = vsyncpa [#allocation8], 1 }
 0xfd5   :  { %4981 = vsyncpa [#allocation11], 1 }
 0xfd6   :  { %4982 = vsyncpa [#allocation4], 1 }
 0xfd7   :  { %4984 = vsyncpa [#allocation4 + $0x1], 1 }
 0xfd8   :  { %4985 = vsyncpa [#allocation5], 1 }
 0xfd9   :  { %4987 = vsyncpa [#allocation5 + $0x1], 1 }

</bundles_post_ra>
